<compile_context>
chip_gen: v5e
topology: v5e:2x2
jax: 0.10.0
libtpu: 0.0.40
codegen_flags: <defaults>
</compile_context>

<pallas_src>
import functools

import jax
import jax.numpy as jnp
from jax.experimental import pallas as pl
from jax.experimental.pallas import tpu as pltpu

VMEM_SPEC = pl.BlockSpec(memory_space=pltpu.MemorySpace.VMEM)


# ----------------------------- in-kernel helpers ---------------------------

def _bn_relu_pool(z, g, b, m):
    """Training-mode BN (biased var, eps=1e-5) + ReLU + 2x2 maxpool.

    z: (C, 4*m) conv output, columns grouped into 4 pool-parity blocks of size m.
    Returns (C, m)."""
    mean = jnp.mean(z, axis=1, keepdims=True)
    var = jnp.mean(jnp.square(z - mean), axis=1, keepdims=True)
    z = (z - mean) * jax.lax.rsqrt(var + 1e-5) * g + b
    z = jnp.maximum(z, 0.0)
    return jnp.maximum(jnp.maximum(z[:, 0:m], z[:, m:2 * m]),
                       jnp.maximum(z[:, 2 * m:3 * m], z[:, 3 * m:4 * m]))


def _attend(fb, fcv, fd):
    """Position-attention core for one batch element (projections already done).

    fb, fcv: (C/2, HW); fd: (C, HW).  Returns feat_e (C, HW)."""
    # attention_s[i, j] = softmax_j( sum_k fb[k, i] * fcv[k, j] )
    s = jax.lax.dot_general(fb, fcv, (((0,), (0,)), ((), ())),
                            preferred_element_type=jnp.float32)        # (HW, HW)
    s = s - jnp.max(s, axis=-1, keepdims=True)
    e = jnp.exp(s)
    att = e / jnp.sum(e, axis=-1, keepdims=True)                       # exact softmax
    # feat_e = feat_d @ attention_s^T
    return jax.lax.dot_general(fd, att, (((1,), (1,)), ((), ())),
                               preferred_element_type=jnp.float32)     # (C, HW)


# ------------------------------ Pallas kernels -----------------------------

def _stage1_kernel(p_ref, w_ref, g_ref, b_ref,
                   wb_ref, bb_ref, wc_ref, bc_ref, wd_ref, bd_ref,
                   o_ref, *, batch, hw):
    # conv1 as a lane-dense matmul: (6, 25) @ (25, 4*B*hw) -> (6, 4*B*hw)
    z = jnp.dot(w_ref[...], p_ref[...], preferred_element_type=jnp.float32)
    pooled = _bn_relu_pool(z, g_ref[...], b_ref[...], batch * hw)       # (6, B*hw)
    # SA projections hoisted out of the batch loop: 3 wide lane-dense matmuls.
    fb_all = jnp.dot(wb_ref[...], pooled, preferred_element_type=jnp.float32) + bb_ref[...]
    fc_all = jnp.dot(wc_ref[...], pooled, preferred_element_type=jnp.float32) + bc_ref[...]
    fd_all = jnp.dot(wd_ref[...], pooled, preferred_element_type=jnp.float32) + bd_ref[...]
    # Per-batch (HW, HW) attention.  Python unroll is fine at small B; for large B
    # switch to a fori_loop / batch grid so live ranges of the (hw,hw) temporaries
    # stay bounded.
    fes = []
    for b in range(batch):
        sl = slice(b * hw, (b + 1) * hw)
        fes.append(_attend(fb_all[:, sl], fc_all[:, sl], fd_all[:, sl]))
    # Residual + one contiguous lane-dense store of the whole (6, B*hw) slab.
    o_ref[...] = jnp.concatenate(fes, axis=1) + pooled


def _stage2_kernel(p_ref, w_ref, g_ref, b_ref,
                   wb_ref, bb_ref, wc_ref, bc_ref, wd_ref, bd_ref,
                   fw1_ref, fb1_ref, fw2_ref, fb2_ref, fw3_ref, fb3_ref,
                   o_ref, *, batch, hw, channels):
    # conv2 as a lane-dense matmul: (16, 150) @ (150, 4*B*hw) -> (16, 4*B*hw)
    z = jnp.dot(w_ref[...], p_ref[...], preferred_element_type=jnp.float32)
    pooled = _bn_relu_pool(z, g_ref[...], b_ref[...], batch * hw)       # (16, B*hw)
    # SA projections hoisted out of the batch loop.
    fb_all = jnp.dot(wb_ref[...], pooled, preferred_element_type=jnp.float32) + bb_ref[...]
    fc_all = jnp.dot(wc_ref[...], pooled, preferred_element_type=jnp.float32) + bc_ref[...]
    fd_all = jnp.dot(wd_ref[...], pooled, preferred_element_type=jnp.float32) + bd_ref[...]
    fes = []
    for b in range(batch):
        sl = slice(b * hw, (b + 1) * hw)
        fes.append(_attend(fb_all[:, sl], fc_all[:, sl], fd_all[:, sl]))
    y2 = jnp.concatenate(fes, axis=1) + pooled                          # (16, B*hw)
    # sup=0 default -> + zeros_like(y) is a no-op.
    # FC stack batched across B.  NCHW flatten feature index = c*hw + q, so fc1 is
    # a per-channel accumulation of (B, hw) @ (hw, 120) against the pre-permuted
    # fc1 weight stack; one small reshape exposes the (C, B, hw) view.
    y3 = y2.reshape(channels, batch, hw)                                # (C, B, hw)
    acc = fb1_ref[...] + jnp.dot(y3[0], fw1_ref[0],
                                 preferred_element_type=jnp.float32)    # (B, 120)
    for c in range(1, channels):
        acc = acc + jnp.dot(y3[c], fw1_ref[c], preferred_element_type=jnp.float32)
    h1 = jnp.maximum(acc, 0.0)                                          # (B, 120)
    h2 = jnp.maximum(
        jnp.dot(h1, fw2_ref[...], preferred_element_type=jnp.float32)
        + fb2_ref[...], 0.0)                                            # (B, 84)
    # Single (B, 11) store.
    o_ref[...] = (jnp.dot(h2, fw3_ref[...], preferred_element_type=jnp.float32)
                  + fb3_ref[...])


# -------------------------------- JAX glue ---------------------------------

def _conv_pool_patches(img, k, pool):
    """img: (B, C, H, W) -> patches (C*k*k, pool*pool*B*OHp*OWp).

    Slice-based (no gather): one contiguous window slice per (kh, kw) tap, then
    reshape/transpose to group columns by 2x2-pool parity (ph, pw).  Row order is
    (c, kh, kw) to match conv_w.reshape(Cout, Cin*k*k).  Column order is
    (ph, pw, b, ohp, owp) where the conv-output position is
    (pool*ohp + ph, pool*owp + pw)."""
    B, C, H, W = img.shape
    OHp, OWp = (H - k + 1) // pool, (W - k + 1) // pool
    taps = []
    for kh in range(k):
        for kw in range(k):
            win = jax.lax.slice(img, (0, 0, kh, kw),
                                (B, C, kh + pool * OHp, kw + pool * OWp))
            win = win.reshape(B, C, OHp, pool, OWp, pool)
            win = win.transpose(1, 3, 5, 0, 2, 4)        # (C, ph, pw, B, ohp, owp)
            taps.append(win.reshape(C, pool * pool * B * OHp * OWp))
    p = jnp.stack(taps, axis=1)                          # (C, k*k, cols)
    return p.reshape(C * k * k, pool * pool * B * OHp * OWp)


def prepare_params(p):
    """One-time layout prep of the PyTorch-style parameters for the kernels."""
    return {
        # conv biases intentionally dropped: a per-channel constant added right
        # before training-mode BatchNorm cancels exactly in (x - mean).
        "w1t": p["conv1_w"].reshape(6, 25),
        "bn1_g": p["bn1_g"].reshape(6, 1), "bn1_b": p["bn1_b"].reshape(6, 1),
        "w2t": p["conv2_w"].reshape(16, 150),
        "bn2_g": p["bn2_g"].reshape(16, 1), "bn2_b": p["bn2_b"].reshape(16, 1),
        "sa1_wb": p["sa1"]["wb"], "sa1_bb": p["sa1"]["bb"].reshape(3, 1),
        "sa1_wc": p["sa1"]["wc"], "sa1_bc": p["sa1"]["bc"].reshape(3, 1),
        "sa1_wd": p["sa1"]["wd"], "sa1_bd": p["sa1"]["bd"].reshape(6, 1),
        "sa2_wb": p["sa2"]["wb"], "sa2_bb": p["sa2"]["bb"].reshape(8, 1),
        "sa2_wc": p["sa2"]["wc"], "sa2_bc": p["sa2"]["bc"].reshape(8, 1),
        "sa2_wd": p["sa2"]["wd"], "sa2_bd": p["sa2"]["bd"].reshape(16, 1),
        # fc1 weight permuted once: stack[c, q, o] = fc1_w[o, c*16 + q]
        "fc1_wstack": p["fc1_w"].T.reshape(16, 16, 120),
        "fc1_b": p["fc1_b"].reshape(1, 120),
        "fc2_wt": p["fc2_w"].T, "fc2_b": p["fc2_b"].reshape(1, 84),
        "fc_wt": p["fc_w"].T, "fc_b": p["fc_b"].reshape(1, 11),
    }


def lenet_forward(x, kp):
    B = x.shape[0]

    # stage 1: conv1 -> bn1 -> relu1 -> pool1 -> sa1  (one fused pallas_call)
    p1 = _conv_pool_patches(x, 5, 2)                          # (25, 4*B*144)
    y1 = pl.pallas_call(
        functools.partial(_stage1_kernel, batch=B, hw=144),
        out_shape=jax.ShapeDtypeStruct((6, B * 144), jnp.float32),
        in_specs=[VMEM_SPEC] * 10,
        out_specs=VMEM_SPEC,
    )(p1, kp["w1t"], kp["bn1_g"], kp["bn1_b"],
      kp["sa1_wb"], kp["sa1_bb"], kp["sa1_wc"], kp["sa1_bc"],
      kp["sa1_wd"], kp["sa1_bd"])                             # (6, B*144)

    # stage 2: conv2 -> bn2 -> relu2 -> pool2 -> sa2 -> fc1 -> fc2 -> fc (fused)
    y1_img = y1.reshape(6, B, 12, 12).transpose(1, 0, 2, 3)   # (B, 6, 12, 12)
    p2 = _conv_pool_patches(y1_img, 5, 2)                     # (150, 4*B*16)
    out = pl.pallas_call(
        functools.partial(_stage2_kernel, batch=B, hw=16, channels=16),
        out_shape=jax.ShapeDtypeStruct((B, 11), jnp.float32),
        in_specs=[VMEM_SPEC] * 16,
        out_specs=VMEM_SPEC,
    )(p2, kp["w2t"], kp["bn2_g"], kp["bn2_b"],
      kp["sa2_wb"], kp["sa2_bb"], kp["sa2_wc"], kp["sa2_bc"],
      kp["sa2_wd"], kp["sa2_bd"],
      kp["fc1_wstack"], kp["fc1_b"], kp["fc2_wt"], kp["fc2_b"],
      kp["fc_wt"], kp["fc_b"])
    return out


def init_params(key):
    keys = jax.random.split(key, 26)
    it = iter(keys)

    def nrm(shape, scale=0.1):
        return scale * jax.random.normal(next(it), shape, dtype=jnp.float32)

    return {
        "conv1_w": nrm((6, 1, 5, 5)), "conv1_b": nrm((6,)),
        "bn1_g": 1.0 + nrm((6,)), "bn1_b": nrm((6,)),
        "conv2_w": nrm((16, 6, 5, 5)), "conv2_b": nrm((16,)),
        "bn2_g": 1.0 + nrm((16,)), "bn2_b": nrm((16,)),
        "fc1_w": nrm((120, 256)), "fc1_b": nrm((120,)),
        "fc2_w": nrm((84, 120)), "fc2_b": nrm((84,)),
        "fc_w": nrm((11, 84)), "fc_b": nrm((11,)),
        "sa1": {"wb": nrm((3, 6)), "bb": nrm((3,)),
                "wc": nrm((3, 6)), "bc": nrm((3,)),
                "wd": nrm((6, 6)), "bd": nrm((6,))},
        "sa2": {"wb": nrm((8, 16)), "bb": nrm((8,)),
                "wc": nrm((8, 16)), "bc": nrm((8,)),
                "wd": nrm((16, 16)), "bd": nrm((16,))},
    }


if __name__ == "__main__":
    key = jax.random.PRNGKey(0)
    pkey, xkey = jax.random.split(key)
    params = init_params(pkey)
    kparams = prepare_params(params)   # one-time weight permutation (not per-forward)
    # fc1 expects 256 = 16*4*4 features -> input spatial must be 28x28 (MNIST-like).
    x = jax.random.normal(xkey, (2, 1, 28, 28), dtype=jnp.float32)
    out = jax.jit(lenet_forward)(x, kparams)
    jax.block_until_ready(out)
    assert out.shape == (2, 11) and out.dtype == jnp.float32
    assert bool(jnp.all(jnp.isfinite(out)))
    print("KERNEL_OK")
</pallas_src>

<mosaic_0001>
module attributes {stable_mosaic.version = 11 : i64} {
  func.func @_stage1_kernel(%arg0: memref<25x1152xf32, #tpu.memory_space<vmem>>, %arg1: memref<6x25xf32, #tpu.memory_space<vmem>>, %arg2: memref<6x1xf32, #tpu.memory_space<vmem>>, %arg3: memref<6x1xf32, #tpu.memory_space<vmem>>, %arg4: memref<3x6xf32, #tpu.memory_space<vmem>>, %arg5: memref<3x1xf32, #tpu.memory_space<vmem>>, %arg6: memref<3x6xf32, #tpu.memory_space<vmem>>, %arg7: memref<3x1xf32, #tpu.memory_space<vmem>>, %arg8: memref<6x6xf32, #tpu.memory_space<vmem>>, %arg9: memref<6x1xf32, #tpu.memory_space<vmem>>, %arg10: memref<6x288xf32, #tpu.memory_space<vmem>>) attributes {dimension_semantics = [], scalar_prefetch = 0 : i64, scratch_operands = 0 : i64, tpu.core_type = #tpu.core_type<tc>} {
    %c0 = arith.constant 0 : index
    %c0_0 = arith.constant 0 : index
    %0 = vector.load %arg1[%c0, %c0_0] : memref<6x25xf32, #tpu.memory_space<vmem>>, vector<6x25xf32>
    %c0_1 = arith.constant 0 : index
    %c0_2 = arith.constant 0 : index
    %1 = vector.load %arg0[%c0_1, %c0_2] : memref<25x1152xf32, #tpu.memory_space<vmem>>, vector<25x1152xf32>
    %cst = arith.constant dense<0.000000e+00> : vector<6x1152xf32>
    %2 = tpu.matmul %0, %1, %cst {dimension_numbers = #tpu.dot_dimension_numbers<[1], [0], [0], [1], [0, 0, 1, 1], [], []>} : vector<6x25xf32>, vector<25x1152xf32>, vector<6x1152xf32> -> vector<6x1152xf32>
    %c0_3 = arith.constant 0 : index
    %c0_4 = arith.constant 0 : index
    %3 = vector.load %arg2[%c0_3, %c0_4] : memref<6x1xf32, #tpu.memory_space<vmem>>, vector<6x1xf32>
    %c0_5 = arith.constant 0 : index
    %c0_6 = arith.constant 0 : index
    %4 = vector.load %arg3[%c0_5, %c0_6] : memref<6x1xf32, #tpu.memory_space<vmem>>, vector<6x1xf32>
    %cst_7 = arith.constant dense<0.000000e+00> : vector<6xf32>
    %5 = vector.multi_reduction <add>, %2, %cst_7 [1] : vector<6x1152xf32> to vector<6xf32>
    %6 = vector.shape_cast %5 : vector<6xf32> to vector<6x1xf32>
    %cst_8 = arith.constant 1.152000e+03 : f32
    %7 = vector.broadcast %cst_8 : f32 to vector<6x1xf32>
    %8 = arith.divf %6, %7 : vector<6x1xf32>
    %9 = vector.broadcast %8 : vector<6x1xf32> to vector<6x1152xf32>
    %10 = arith.subf %2, %9 : vector<6x1152xf32>
    %11 = arith.mulf %10, %10 : vector<6x1152xf32>
    %cst_9 = arith.constant dense<0.000000e+00> : vector<6xf32>
    %12 = vector.multi_reduction <add>, %11, %cst_9 [1] : vector<6x1152xf32> to vector<6xf32>
    %13 = vector.shape_cast %12 : vector<6xf32> to vector<6x1xf32>
    %cst_10 = arith.constant 1.152000e+03 : f32
    %14 = vector.broadcast %cst_10 : f32 to vector<6x1xf32>
    %15 = arith.divf %13, %14 : vector<6x1xf32>
    %16 = vector.broadcast %8 : vector<6x1xf32> to vector<6x1152xf32>
    %17 = arith.subf %2, %16 : vector<6x1152xf32>
    %cst_11 = arith.constant 9.99999974E-6 : f32
    %18 = vector.broadcast %cst_11 : f32 to vector<6x1xf32>
    %19 = arith.addf %15, %18 : vector<6x1xf32>
    %20 = math.rsqrt %19 : vector<6x1xf32>
    %21 = vector.broadcast %20 : vector<6x1xf32> to vector<6x1152xf32>
    %22 = arith.mulf %17, %21 : vector<6x1152xf32>
    %23 = vector.broadcast %3 : vector<6x1xf32> to vector<6x1152xf32>
    %24 = arith.mulf %22, %23 : vector<6x1152xf32>
    %25 = vector.broadcast %4 : vector<6x1xf32> to vector<6x1152xf32>
    %26 = arith.addf %24, %25 : vector<6x1152xf32>
    %cst_12 = arith.constant 0.000000e+00 : f32
    %27 = vector.broadcast %cst_12 : f32 to vector<6x1152xf32>
    %28 = arith.maximumf %26, %27 : vector<6x1152xf32>
    %29 = vector.extract_strided_slice %28 {offsets = [0, 0], sizes = [6, 288], strides = [1, 1]} : vector<6x1152xf32> to vector<6x288xf32>
    %30 = vector.extract_strided_slice %28 {offsets = [0, 288], sizes = [6, 288], strides = [1, 1]} : vector<6x1152xf32> to vector<6x288xf32>
    %31 = arith.maximumf %29, %30 : vector<6x288xf32>
    %32 = vector.extract_strided_slice %28 {offsets = [0, 576], sizes = [6, 288], strides = [1, 1]} : vector<6x1152xf32> to vector<6x288xf32>
    %33 = vector.extract_strided_slice %28 {offsets = [0, 864], sizes = [6, 288], strides = [1, 1]} : vector<6x1152xf32> to vector<6x288xf32>
    %34 = arith.maximumf %32, %33 : vector<6x288xf32>
    %35 = arith.maximumf %31, %34 : vector<6x288xf32>
    %c0_13 = arith.constant 0 : index
    %c0_14 = arith.constant 0 : index
    %36 = vector.load %arg4[%c0_13, %c0_14] : memref<3x6xf32, #tpu.memory_space<vmem>>, vector<3x6xf32>
    %cst_15 = arith.constant dense<0.000000e+00> : vector<3x288xf32>
    %37 = tpu.matmul %36, %35, %cst_15 {dimension_numbers = #tpu.dot_dimension_numbers<[1], [0], [0], [1], [0, 0, 1, 1], [], []>} : vector<3x6xf32>, vector<6x288xf32>, vector<3x288xf32> -> vector<3x288xf32>
    %c0_16 = arith.constant 0 : index
    %c0_17 = arith.constant 0 : index
    %38 = vector.load %arg5[%c0_16, %c0_17] : memref<3x1xf32, #tpu.memory_space<vmem>>, vector<3x1xf32>
    %39 = vector.broadcast %38 : vector<3x1xf32> to vector<3x288xf32>
    %40 = arith.addf %37, %39 : vector<3x288xf32>
    %c0_18 = arith.constant 0 : index
    %c0_19 = arith.constant 0 : index
    %41 = vector.load %arg6[%c0_18, %c0_19] : memref<3x6xf32, #tpu.memory_space<vmem>>, vector<3x6xf32>
    %cst_20 = arith.constant dense<0.000000e+00> : vector<3x288xf32>
    %42 = tpu.matmul %41, %35, %cst_20 {dimension_numbers = #tpu.dot_dimension_numbers<[1], [0], [0], [1], [0, 0, 1, 1], [], []>} : vector<3x6xf32>, vector<6x288xf32>, vector<3x288xf32> -> vector<3x288xf32>
    %c0_21 = arith.constant 0 : index
    %c0_22 = arith.constant 0 : index
    %43 = vector.load %arg7[%c0_21, %c0_22] : memref<3x1xf32, #tpu.memory_space<vmem>>, vector<3x1xf32>
    %44 = vector.broadcast %43 : vector<3x1xf32> to vector<3x288xf32>
    %45 = arith.addf %42, %44 : vector<3x288xf32>
    %c0_23 = arith.constant 0 : index
    %c0_24 = arith.constant 0 : index
    %46 = vector.load %arg8[%c0_23, %c0_24] : memref<6x6xf32, #tpu.memory_space<vmem>>, vector<6x6xf32>
    %cst_25 = arith.constant dense<0.000000e+00> : vector<6x288xf32>
    %47 = tpu.matmul %46, %35, %cst_25 {dimension_numbers = #tpu.dot_dimension_numbers<[1], [0], [0], [1], [0, 0, 1, 1], [], []>} : vector<6x6xf32>, vector<6x288xf32>, vector<6x288xf32> -> vector<6x288xf32>
    %c0_26 = arith.constant 0 : index
    %c0_27 = arith.constant 0 : index
    %48 = vector.load %arg9[%c0_26, %c0_27] : memref<6x1xf32, #tpu.memory_space<vmem>>, vector<6x1xf32>
    %49 = vector.broadcast %48 : vector<6x1xf32> to vector<6x288xf32>
    %50 = arith.addf %47, %49 : vector<6x288xf32>
    %51 = vector.extract_strided_slice %40 {offsets = [0, 0], sizes = [3, 144], strides = [1, 1]} : vector<3x288xf32> to vector<3x144xf32>
    %52 = vector.extract_strided_slice %45 {offsets = [0, 0], sizes = [3, 144], strides = [1, 1]} : vector<3x288xf32> to vector<3x144xf32>
    %53 = vector.extract_strided_slice %50 {offsets = [0, 0], sizes = [6, 144], strides = [1, 1]} : vector<6x288xf32> to vector<6x144xf32>
    %cst_28 = arith.constant dense<0.000000e+00> : vector<144x144xf32>
    %54 = tpu.matmul %51, %52, %cst_28 {dimension_numbers = #tpu.dot_dimension_numbers<[0], [0], [1], [1], [0, 1, 1, 1], [], []>} : vector<3x144xf32>, vector<3x144xf32>, vector<144x144xf32> -> vector<144x144xf32>
    %cst_29 = arith.constant dense<0xFF800000> : vector<144xf32>
    %55 = vector.multi_reduction <maximumf>, %54, %cst_29 [1] : vector<144x144xf32> to vector<144xf32>
    %56 = vector.shape_cast %55 : vector<144xf32> to vector<144x1xf32>
    %57 = vector.broadcast %56 : vector<144x1xf32> to vector<144x144xf32>
    %58 = arith.subf %54, %57 : vector<144x144xf32>
    %59 = math.exp %58 : vector<144x144xf32>
    %cst_30 = arith.constant dense<0.000000e+00> : vector<144xf32>
    %60 = vector.multi_reduction <add>, %59, %cst_30 [1] : vector<144x144xf32> to vector<144xf32>
    %61 = vector.shape_cast %60 : vector<144xf32> to vector<144x1xf32>
    %62 = vector.broadcast %61 : vector<144x1xf32> to vector<144x144xf32>
    %63 = arith.divf %59, %62 : vector<144x144xf32>
    %cst_31 = arith.constant dense<0.000000e+00> : vector<6x144xf32>
    %64 = tpu.matmul %53, %63, %cst_31 {dimension_numbers = #tpu.dot_dimension_numbers<[1], [1], [0], [0], [0, 0, 1, 0], [], []>} : vector<6x144xf32>, vector<144x144xf32>, vector<6x144xf32> -> vector<6x144xf32>
    %65 = vector.extract_strided_slice %40 {offsets = [0, 144], sizes = [3, 144], strides = [1, 1]} : vector<3x288xf32> to vector<3x144xf32>
    %66 = vector.extract_strided_slice %45 {offsets = [0, 144], sizes = [3, 144], strides = [1, 1]} : vector<3x288xf32> to vector<3x144xf32>
    %67 = vector.extract_strided_slice %50 {offsets = [0, 144], sizes = [6, 144], strides = [1, 1]} : vector<6x288xf32> to vector<6x144xf32>
    %cst_32 = arith.constant dense<0.000000e+00> : vector<144x144xf32>
    %68 = tpu.matmul %65, %66, %cst_32 {dimension_numbers = #tpu.dot_dimension_numbers<[0], [0], [1], [1], [0, 1, 1, 1], [], []>} : vector<3x144xf32>, vector<3x144xf32>, vector<144x144xf32> -> vector<144x144xf32>
    %cst_33 = arith.constant dense<0xFF800000> : vector<144xf32>
    %69 = vector.multi_reduction <maximumf>, %68, %cst_33 [1] : vector<144x144xf32> to vector<144xf32>
    %70 = vector.shape_cast %69 : vector<144xf32> to vector<144x1xf32>
    %71 = vector.broadcast %70 : vector<144x1xf32> to vector<144x144xf32>
    %72 = arith.subf %68, %71 : vector<144x144xf32>
    %73 = math.exp %72 : vector<144x144xf32>
    %cst_34 = arith.constant dense<0.000000e+00> : vector<144xf32>
    %74 = vector.multi_reduction <add>, %73, %cst_34 [1] : vector<144x144xf32> to vector<144xf32>
    %75 = vector.shape_cast %74 : vector<144xf32> to vector<144x1xf32>
    %76 = vector.broadcast %75 : vector<144x1xf32> to vector<144x144xf32>
    %77 = arith.divf %73, %76 : vector<144x144xf32>
    %cst_35 = arith.constant dense<0.000000e+00> : vector<6x144xf32>
    %78 = tpu.matmul %67, %77, %cst_35 {dimension_numbers = #tpu.dot_dimension_numbers<[1], [1], [0], [0], [0, 0, 1, 0], [], []>} : vector<6x144xf32>, vector<144x144xf32>, vector<6x144xf32> -> vector<6x144xf32>
    %79 = tpu.concatenate %64, %78 in 1 : vector<6x144xf32>, vector<6x144xf32> -> vector<6x288xf32>
    %80 = arith.addf %79, %35 : vector<6x288xf32>
    %c0_36 = arith.constant 0 : index
    %c0_37 = arith.constant 0 : index
    %81 = vector.load %arg10[%c0_36, %c0_37] : memref<6x288xf32, #tpu.memory_space<vmem>>, vector<6x288xf32>
    tpu.vector_store %arg10[%c0_36, %c0_37], %80 {strides = array<i32>} : memref<6x288xf32, #tpu.memory_space<vmem>>, vector<6x288xf32>,
    return
  }
}

module attributes {stable_mosaic.version = 11 : i64} {
  func.func @_stage2_kernel(%arg0: memref<150x128xf32, #tpu.memory_space<vmem>>, %arg1: memref<16x150xf32, #tpu.memory_space<vmem>>, %arg2: memref<16x1xf32, #tpu.memory_space<vmem>>, %arg3: memref<16x1xf32, #tpu.memory_space<vmem>>, %arg4: memref<8x16xf32, #tpu.memory_space<vmem>>, %arg5: memref<8x1xf32, #tpu.memory_space<vmem>>, %arg6: memref<8x16xf32, #tpu.memory_space<vmem>>, %arg7: memref<8x1xf32, #tpu.memory_space<vmem>>, %arg8: memref<16x16xf32, #tpu.memory_space<vmem>>, %arg9: memref<16x1xf32, #tpu.memory_space<vmem>>, %arg10: memref<16x16x120xf32, #tpu.memory_space<vmem>>, %arg11: memref<1x120xf32, #tpu.memory_space<vmem>>, %arg12: memref<120x84xf32, #tpu.memory_space<vmem>>, %arg13: memref<1x84xf32, #tpu.memory_space<vmem>>, %arg14: memref<84x11xf32, #tpu.memory_space<vmem>>, %arg15: memref<1x11xf32, #tpu.memory_space<vmem>>, %arg16: memref<2x11xf32, #tpu.memory_space<vmem>>) attributes {dimension_semantics = [], scalar_prefetch = 0 : i64, scratch_operands = 0 : i64, tpu.core_type = #tpu.core_type<tc>} {
    %c0 = arith.constant 0 : index
    %c0_0 = arith.constant 0 : index
    %0 = vector.load %arg1[%c0, %c0_0] : memref<16x150xf32, #tpu.memory_space<vmem>>, vector<16x150xf32>
    %c0_1 = arith.constant 0 : index
    %c0_2 = arith.constant 0 : index
    %1 = vector.load %arg0[%c0_1, %c0_2] : memref<150x128xf32, #tpu.memory_space<vmem>>, vector<150x128xf32>
    %cst = arith.constant dense<0.000000e+00> : vector<16x128xf32>
    %2 = tpu.matmul %0, %1, %cst {dimension_numbers = #tpu.dot_dimension_numbers<[1], [0], [0], [1], [0, 0, 1, 1], [], []>} : vector<16x150xf32>, vector<150x128xf32>, vector<16x128xf32> -> vector<16x128xf32>
    %c0_3 = arith.constant 0 : index
    %c0_4 = arith.constant 0 : index
    %3 = vector.load %arg2[%c0_3, %c0_4] : memref<16x1xf32, #tpu.memory_space<vmem>>, vector<16x1xf32>
    %c0_5 = arith.constant 0 : index
    %c0_6 = arith.constant 0 : index
    %4 = vector.load %arg3[%c0_5, %c0_6] : memref<16x1xf32, #tpu.memory_space<vmem>>, vector<16x1xf32>
    %cst_7 = arith.constant dense<0.000000e+00> : vector<16xf32>
    %5 = vector.multi_reduction <add>, %2, %cst_7 [1] : vector<16x128xf32> to vector<16xf32>
    %6 = vector.shape_cast %5 : vector<16xf32> to vector<16x1xf32>
    %cst_8 = arith.constant 1.280000e+02 : f32
    %7 = vector.broadcast %cst_8 : f32 to vector<16x1xf32>
    %8 = arith.divf %6, %7 : vector<16x1xf32>
    %9 = vector.broadcast %8 : vector<16x1xf32> to vector<16x128xf32>
    %10 = arith.subf %2, %9 : vector<16x128xf32>
    %11 = arith.mulf %10, %10 : vector<16x128xf32>
    %cst_9 = arith.constant dense<0.000000e+00> : vector<16xf32>
    %12 = vector.multi_reduction <add>, %11, %cst_9 [1] : vector<16x128xf32> to vector<16xf32>
    %13 = vector.shape_cast %12 : vector<16xf32> to vector<16x1xf32>
    %cst_10 = arith.constant 1.280000e+02 : f32
    %14 = vector.broadcast %cst_10 : f32 to vector<16x1xf32>
    %15 = arith.divf %13, %14 : vector<16x1xf32>
    %16 = vector.broadcast %8 : vector<16x1xf32> to vector<16x128xf32>
    %17 = arith.subf %2, %16 : vector<16x128xf32>
    %cst_11 = arith.constant 9.99999974E-6 : f32
    %18 = vector.broadcast %cst_11 : f32 to vector<16x1xf32>
    %19 = arith.addf %15, %18 : vector<16x1xf32>
    %20 = math.rsqrt %19 : vector<16x1xf32>
    %21 = vector.broadcast %20 : vector<16x1xf32> to vector<16x128xf32>
    %22 = arith.mulf %17, %21 : vector<16x128xf32>
    %23 = vector.broadcast %3 : vector<16x1xf32> to vector<16x128xf32>
    %24 = arith.mulf %22, %23 : vector<16x128xf32>
    %25 = vector.broadcast %4 : vector<16x1xf32> to vector<16x128xf32>
    %26 = arith.addf %24, %25 : vector<16x128xf32>
    %cst_12 = arith.constant 0.000000e+00 : f32
    %27 = vector.broadcast %cst_12 : f32 to vector<16x128xf32>
    %28 = arith.maximumf %26, %27 : vector<16x128xf32>
    %29 = vector.extract_strided_slice %28 {offsets = [0, 0], sizes = [16, 32], strides = [1, 1]} : vector<16x128xf32> to vector<16x32xf32>
    %30 = vector.extract_strided_slice %28 {offsets = [0, 32], sizes = [16, 32], strides = [1, 1]} : vector<16x128xf32> to vector<16x32xf32>
    %31 = arith.maximumf %29, %30 : vector<16x32xf32>
    %32 = vector.extract_strided_slice %28 {offsets = [0, 64], sizes = [16, 32], strides = [1, 1]} : vector<16x128xf32> to vector<16x32xf32>
    %33 = vector.extract_strided_slice %28 {offsets = [0, 96], sizes = [16, 32], strides = [1, 1]} : vector<16x128xf32> to vector<16x32xf32>
    %34 = arith.maximumf %32, %33 : vector<16x32xf32>
    %35 = arith.maximumf %31, %34 : vector<16x32xf32>
    %c0_13 = arith.constant 0 : index
    %c0_14 = arith.constant 0 : index
    %36 = vector.load %arg4[%c0_13, %c0_14] : memref<8x16xf32, #tpu.memory_space<vmem>>, vector<8x16xf32>
    %cst_15 = arith.constant dense<0.000000e+00> : vector<8x32xf32>
    %37 = tpu.matmul %36, %35, %cst_15 {dimension_numbers = #tpu.dot_dimension_numbers<[1], [0], [0], [1], [0, 0, 1, 1], [], []>} : vector<8x16xf32>, vector<16x32xf32>, vector<8x32xf32> -> vector<8x32xf32>
    %c0_16 = arith.constant 0 : index
    %c0_17 = arith.constant 0 : index
    %38 = vector.load %arg5[%c0_16, %c0_17] : memref<8x1xf32, #tpu.memory_space<vmem>>, vector<8x1xf32>
    %39 = vector.broadcast %38 : vector<8x1xf32> to vector<8x32xf32>
    %40 = arith.addf %37, %39 : vector<8x32xf32>
    %c0_18 = arith.constant 0 : index
    %c0_19 = arith.constant 0 : index
    %41 = vector.load %arg6[%c0_18, %c0_19] : memref<8x16xf32, #tpu.memory_space<vmem>>, vector<8x16xf32>
    %cst_20 = arith.constant dense<0.000000e+00> : vector<8x32xf32>
    %42 = tpu.matmul %41, %35, %cst_20 {dimension_numbers = #tpu.dot_dimension_numbers<[1], [0], [0], [1], [0, 0, 1, 1], [], []>} : vector<8x16xf32>, vector<16x32xf32>, vector<8x32xf32> -> vector<8x32xf32>
    %c0_21 = arith.constant 0 : index
    %c0_22 = arith.constant 0 : index
    %43 = vector.load %arg7[%c0_21, %c0_22] : memref<8x1xf32, #tpu.memory_space<vmem>>, vector<8x1xf32>
    %44 = vector.broadcast %43 : vector<8x1xf32> to vector<8x32xf32>
    %45 = arith.addf %42, %44 : vector<8x32xf32>
    %c0_23 = arith.constant 0 : index
    %c0_24 = arith.constant 0 : index
    %46 = vector.load %arg8[%c0_23, %c0_24] : memref<16x16xf32, #tpu.memory_space<vmem>>, vector<16x16xf32>
    %cst_25 = arith.constant dense<0.000000e+00> : vector<16x32xf32>
    %47 = tpu.matmul %46, %35, %cst_25 {dimension_numbers = #tpu.dot_dimension_numbers<[1], [0], [0], [1], [0, 0, 1, 1], [], []>} : vector<16x16xf32>, vector<16x32xf32>, vector<16x32xf32> -> vector<16x32xf32>
    %c0_26 = arith.constant 0 : index
    %c0_27 = arith.constant 0 : index
    %48 = vector.load %arg9[%c0_26, %c0_27] : memref<16x1xf32, #tpu.memory_space<vmem>>, vector<16x1xf32>
    %49 = vector.broadcast %48 : vector<16x1xf32> to vector<16x32xf32>
    %50 = arith.addf %47, %49 : vector<16x32xf32>
    %51 = vector.extract_strided_slice %40 {offsets = [0, 0], sizes = [8, 16], strides = [1, 1]} : vector<8x32xf32> to vector<8x16xf32>
    %52 = vector.extract_strided_slice %45 {offsets = [0, 0], sizes = [8, 16], strides = [1, 1]} : vector<8x32xf32> to vector<8x16xf32>
    %53 = vector.extract_strided_slice %50 {offsets = [0, 0], sizes = [16, 16], strides = [1, 1]} : vector<16x32xf32> to vector<16x16xf32>
    %cst_28 = arith.constant dense<0.000000e+00> : vector<16x16xf32>
    %54 = tpu.matmul %51, %52, %cst_28 {dimension_numbers = #tpu.dot_dimension_numbers<[0], [0], [1], [1], [0, 1, 1, 1], [], []>} : vector<8x16xf32>, vector<8x16xf32>, vector<16x16xf32> -> vector<16x16xf32>
    %cst_29 = arith.constant dense<0xFF800000> : vector<16xf32>
    %55 = vector.multi_reduction <maximumf>, %54, %cst_29 [1] : vector<16x16xf32> to vector<16xf32>
    %56 = vector.shape_cast %55 : vector<16xf32> to vector<16x1xf32>
    %57 = vector.broadcast %56 : vector<16x1xf32> to vector<16x16xf32>
    %58 = arith.subf %54, %57 : vector<16x16xf32>
    %59 = math.exp %58 : vector<16x16xf32>
    %cst_30 = arith.constant dense<0.000000e+00> : vector<16xf32>
    %60 = vector.multi_reduction <add>, %59, %cst_30 [1] : vector<16x16xf32> to vector<16xf32>
    %61 = vector.shape_cast %60 : vector<16xf32> to vector<16x1xf32>
    %62 = vector.broadcast %61 : vector<16x1xf32> to vector<16x16xf32>
    %63 = arith.divf %59, %62 : vector<16x16xf32>
    %cst_31 = arith.constant dense<0.000000e+00> : vector<16x16xf32>
    %64 = tpu.matmul %53, %63, %cst_31 {dimension_numbers = #tpu.dot_dimension_numbers<[1], [1], [0], [0], [0, 0, 1, 0], [], []>} : vector<16x16xf32>, vector<16x16xf32>, vector<16x16xf32> -> vector<16x16xf32>
    %65 = vector.extract_strided_slice %40 {offsets = [0, 16], sizes = [8, 16], strides = [1, 1]} : vector<8x32xf32> to vector<8x16xf32>
    %66 = vector.extract_strided_slice %45 {offsets = [0, 16], sizes = [8, 16], strides = [1, 1]} : vector<8x32xf32> to vector<8x16xf32>
    %67 = vector.extract_strided_slice %50 {offsets = [0, 16], sizes = [16, 16], strides = [1, 1]} : vector<16x32xf32> to vector<16x16xf32>
    %cst_32 = arith.constant dense<0.000000e+00> : vector<16x16xf32>
    %68 = tpu.matmul %65, %66, %cst_32 {dimension_numbers = #tpu.dot_dimension_numbers<[0], [0], [1], [1], [0, 1, 1, 1], [], []>} : vector<8x16xf32>, vector<8x16xf32>, vector<16x16xf32> -> vector<16x16xf32>
    %cst_33 = arith.constant dense<0xFF800000> : vector<16xf32>
    %69 = vector.multi_reduction <maximumf>, %68, %cst_33 [1] : vector<16x16xf32> to vector<16xf32>
    %70 = vector.shape_cast %69 : vector<16xf32> to vector<16x1xf32>
    %71 = vector.broadcast %70 : vector<16x1xf32> to vector<16x16xf32>
    %72 = arith.subf %68, %71 : vector<16x16xf32>
    %73 = math.exp %72 : vector<16x16xf32>
    %cst_34 = arith.constant dense<0.000000e+00> : vector<16xf32>
    %74 = vector.multi_reduction <add>, %73, %cst_34 [1] : vector<16x16xf32> to vector<16xf32>
    %75 = vector.shape_cast %74 : vector<16xf32> to vector<16x1xf32>
    %76 = vector.broadcast %75 : vector<16x1xf32> to vector<16x16xf32>
    %77 = arith.divf %73, %76 : vector<16x16xf32>
    %cst_35 = arith.constant dense<0.000000e+00> : vector<16x16xf32>
    %78 = tpu.matmul %67, %77, %cst_35 {dimension_numbers = #tpu.dot_dimension_numbers<[1], [1], [0], [0], [0, 0, 1, 0], [], []>} : vector<16x16xf32>, vector<16x16xf32>, vector<16x16xf32> -> vector<16x16xf32>
    %79 = tpu.concatenate %64, %78 in 1 : vector<16x16xf32>, vector<16x16xf32> -> vector<16x32xf32>
    %80 = arith.addf %79, %35 : vector<16x32xf32>
    %81 = vector.shape_cast %80 : vector<16x32xf32> to vector<16x2x16xf32>
    %c0_36 = arith.constant 0 : index
    %c0_37 = arith.constant 0 : index
    %82 = vector.load %arg11[%c0_36, %c0_37] : memref<1x120xf32, #tpu.memory_space<vmem>>, vector<1x120xf32>
    %83 = vector.extract_strided_slice %81 {offsets = [0, 0, 0], sizes = [1, 2, 16], strides = [1, 1, 1]} : vector<16x2x16xf32> to vector<1x2x16xf32>
    %84 = vector.shape_cast %83 : vector<1x2x16xf32> to vector<2x16xf32>
    %c0_38 = arith.constant 0 : index
    %c0_39 = arith.constant 0 : index
    %c0_40 = arith.constant 0 : index
    %85 = vector.load %arg10[%c0_38, %c0_39, %c0_40] : memref<16x16x120xf32, #tpu.memory_space<vmem>>, vector<1x16x120xf32>
    %86 = vector.shape_cast %85 : vector<1x16x120xf32> to vector<16x120xf32>
    %cst_41 = arith.constant dense<0.000000e+00> : vector<2x120xf32>
    %87 = tpu.matmul %84, %86, %cst_41 {dimension_numbers = #tpu.dot_dimension_numbers<[1], [0], [0], [1], [0, 0, 1, 1], [], []>} : vector<2x16xf32>, vector<16x120xf32>, vector<2x120xf32> -> vector<2x120xf32>
    %88 = vector.broadcast %82 : vector<1x120xf32> to vector<2x120xf32>
    %89 = arith.addf %88, %87 : vector<2x120xf32>
    %90 = vector.extract_strided_slice %81 {offsets = [1, 0, 0], sizes = [1, 2, 16], strides = [1, 1, 1]} : vector<16x2x16xf32> to vector<1x2x16xf32>
    %91 = vector.shape_cast %90 : vector<1x2x16xf32> to vector<2x16xf32>
    %c1 = arith.constant 1 : index
    %c0_42 = arith.constant 0 : index
    %c0_43 = arith.constant 0 : index
    %92 = vector.load %arg10[%c1, %c0_42, %c0_43] : memref<16x16x120xf32, #tpu.memory_space<vmem>>, vector<1x16x120xf32>
    %93 = vector.shape_cast %92 : vector<1x16x120xf32> to vector<16x120xf32>
    %cst_44 = arith.constant dense<0.000000e+00> : vector<2x120xf32>
    %94 = tpu.matmul %91, %93, %cst_44 {dimension_numbers = #tpu.dot_dimension_numbers<[1], [0], [0], [1], [0, 0, 1, 1], [], []>} : vector<2x16xf32>, vector<16x120xf32>, vector<2x120xf32> -> vector<2x120xf32>
    %95 = arith.addf %89, %94 : vector<2x120xf32>
    %96 = vector.extract_strided_slice %81 {offsets = [2, 0, 0], sizes = [1, 2, 16], strides = [1, 1, 1]} : vector<16x2x16xf32> to vector<1x2x16xf32>
    %97 = vector.shape_cast %96 : vector<1x2x16xf32> to vector<2x16xf32>
    %c2 = arith.constant 2 : index
    %c0_45 = arith.constant 0 : index
    %c0_46 = arith.constant 0 : index
    %98 = vector.load %arg10[%c2, %c0_45, %c0_46] : memref<16x16x120xf32, #tpu.memory_space<vmem>>, vector<1x16x120xf32>
    %99 = vector.shape_cast %98 : vector<1x16x120xf32> to vector<16x120xf32>
    %cst_47 = arith.constant dense<0.000000e+00> : vector<2x120xf32>
    %100 = tpu.matmul %97, %99, %cst_47 {dimension_numbers = #tpu.dot_dimension_numbers<[1], [0], [0], [1], [0, 0, 1, 1], [], []>} : vector<2x16xf32>, vector<16x120xf32>, vector<2x120xf32> -> vector<2x120xf32>
    %101 = arith.addf %95, %100 : vector<2x120xf32>
    %102 = vector.extract_strided_slice %81 {offsets = [3, 0, 0], sizes = [1, 2, 16], strides = [1, 1, 1]} : vector<16x2x16xf32> to vector<1x2x16xf32>
    %103 = vector.shape_cast %102 : vector<1x2x16xf32> to vector<2x16xf32>
    %c3 = arith.constant 3 : index
    %c0_48 = arith.constant 0 : index
    %c0_49 = arith.constant 0 : index
    %104 = vector.load %arg10[%c3, %c0_48, %c0_49] : memref<16x16x120xf32, #tpu.memory_space<vmem>>, vector<1x16x120xf32>
    %105 = vector.shape_cast %104 : vector<1x16x120xf32> to vector<16x120xf32>
    %cst_50 = arith.constant dense<0.000000e+00> : vector<2x120xf32>
    %106 = tpu.matmul %103, %105, %cst_50 {dimension_numbers = #tpu.dot_dimension_numbers<[1], [0], [0], [1], [0, 0, 1, 1], [], []>} : vector<2x16xf32>, vector<16x120xf32>, vector<2x120xf32> -> vector<2x120xf32>
    %107 = arith.addf %101, %106 : vector<2x120xf32>
    %108 = vector.extract_strided_slice %81 {offsets = [4, 0, 0], sizes = [1, 2, 16], strides = [1, 1, 1]} : vector<16x2x16xf32> to vector<1x2x16xf32>
    %109 = vector.shape_cast %108 : vector<1x2x16xf32> to vector<2x16xf32>
    %c4 = arith.constant 4 : index
    %c0_51 = arith.constant 0 : index
    %c0_52 = arith.constant 0 : index
    %110 = vector.load %arg10[%c4, %c0_51, %c0_52] : memref<16x16x120xf32, #tpu.memory_space<vmem>>, vector<1x16x120xf32>
    %111 = vector.shape_cast %110 : vector<1x16x120xf32> to vector<16x120xf32>
    %cst_53 = arith.constant dense<0.000000e+00> : vector<2x120xf32>
    %112 = tpu.matmul %109, %111, %cst_53 {dimension_numbers = #tpu.dot_dimension_numbers<[1], [0], [0], [1], [0, 0, 1, 1], [], []>} : vector<2x16xf32>, vector<16x120xf32>, vector<2x120xf32> -> vector<2x120xf32>
    %113 = arith.addf %107, %112 : vector<2x120xf32>
    %114 = vector.extract_strided_slice %81 {offsets = [5, 0, 0], sizes = [1, 2, 16], strides = [1, 1, 1]} : vector<16x2x16xf32> to vector<1x2x16xf32>
    %115 = vector.shape_cast %114 : vector<1x2x16xf32> to vector<2x16xf32>
    %c5 = arith.constant 5 : index
    %c0_54 = arith.constant 0 : index
    %c0_55 = arith.constant 0 : index
    %116 = vector.load %arg10[%c5, %c0_54, %c0_55] : memref<16x16x120xf32, #tpu.memory_space<vmem>>, vector<1x16x120xf32>
    %117 = vector.shape_cast %116 : vector<1x16x120xf32> to vector<16x120xf32>
    %cst_56 = arith.constant dense<0.000000e+00> : vector<2x120xf32>
    %118 = tpu.matmul %115, %117, %cst_56 {dimension_numbers = #tpu.dot_dimension_numbers<[1], [0], [0], [1], [0, 0, 1, 1], [], []>} : vector<2x16xf32>, vector<16x120xf32>, vector<2x120xf32> -> vector<2x120xf32>
    %119 = arith.addf %113, %118 : vector<2x120xf32>
    %120 = vector.extract_strided_slice %81 {offsets = [6, 0, 0], sizes = [1, 2, 16], strides = [1, 1, 1]} : vector<16x2x16xf32> to vector<1x2x16xf32>
    %121 = vector.shape_cast %120 : vector<1x2x16xf32> to vector<2x16xf32>
    %c6 = arith.constant 6 : index
    %c0_57 = arith.constant 0 : index
    %c0_58 = arith.constant 0 : index
    %122 = vector.load %arg10[%c6, %c0_57, %c0_58] : memref<16x16x120xf32, #tpu.memory_space<vmem>>, vector<1x16x120xf32>
    %123 = vector.shape_cast %122 : vector<1x16x120xf32> to vector<16x120xf32>
    %cst_59 = arith.constant dense<0.000000e+00> : vector<2x120xf32>
    %124 = tpu.matmul %121, %123, %cst_59 {dimension_numbers = #tpu.dot_dimension_numbers<[1], [0], [0], [1], [0, 0, 1, 1], [], []>} : vector<2x16xf32>, vector<16x120xf32>, vector<2x120xf32> -> vector<2x120xf32>
    %125 = arith.addf %119, %124 : vector<2x120xf32>
    %126 = vector.extract_strided_slice %81 {offsets = [7, 0, 0], sizes = [1, 2, 16], strides = [1, 1, 1]} : vector<16x2x16xf32> to vector<1x2x16xf32>
    %127 = vector.shape_cast %126 : vector<1x2x16xf32> to vector<2x16xf32>
    %c7 = arith.constant 7 : index
    %c0_60 = arith.constant 0 : index
    %c0_61 = arith.constant 0 : index
    %128 = vector.load %arg10[%c7, %c0_60, %c0_61] : memref<16x16x120xf32, #tpu.memory_space<vmem>>, vector<1x16x120xf32>
    %129 = vector.shape_cast %128 : vector<1x16x120xf32> to vector<16x120xf32>
    %cst_62 = arith.constant dense<0.000000e+00> : vector<2x120xf32>
    %130 = tpu.matmul %127, %129, %cst_62 {dimension_numbers = #tpu.dot_dimension_numbers<[1], [0], [0], [1], [0, 0, 1, 1], [], []>} : vector<2x16xf32>, vector<16x120xf32>, vector<2x120xf32> -> vector<2x120xf32>
    %131 = arith.addf %125, %130 : vector<2x120xf32>
    %132 = vector.extract_strided_slice %81 {offsets = [8, 0, 0], sizes = [1, 2, 16], strides = [1, 1, 1]} : vector<16x2x16xf32> to vector<1x2x16xf32>
    %133 = vector.shape_cast %132 : vector<1x2x16xf32> to vector<2x16xf32>
    %c8 = arith.constant 8 : index
    %c0_63 = arith.constant 0 : index
    %c0_64 = arith.constant 0 : index
    %134 = vector.load %arg10[%c8, %c0_63, %c0_64] : memref<16x16x120xf32, #tpu.memory_space<vmem>>, vector<1x16x120xf32>
    %135 = vector.shape_cast %134 : vector<1x16x120xf32> to vector<16x120xf32>
    %cst_65 = arith.constant dense<0.000000e+00> : vector<2x120xf32>
    %136 = tpu.matmul %133, %135, %cst_65 {dimension_numbers = #tpu.dot_dimension_numbers<[1], [0], [0], [1], [0, 0, 1, 1], [], []>} : vector<2x16xf32>, vector<16x120xf32>, vector<2x120xf32> -> vector<2x120xf32>
    %137 = arith.addf %131, %136 : vector<2x120xf32>
    %138 = vector.extract_strided_slice %81 {offsets = [9, 0, 0], sizes = [1, 2, 16], strides = [1, 1, 1]} : vector<16x2x16xf32> to vector<1x2x16xf32>
    %139 = vector.shape_cast %138 : vector<1x2x16xf32> to vector<2x16xf32>
    %c9 = arith.constant 9 : index
    %c0_66 = arith.constant 0 : index
    %c0_67 = arith.constant 0 : index
    %140 = vector.load %arg10[%c9, %c0_66, %c0_67] : memref<16x16x120xf32, #tpu.memory_space<vmem>>, vector<1x16x120xf32>
    %141 = vector.shape_cast %140 : vector<1x16x120xf32> to vector<16x120xf32>
    %cst_68 = arith.constant dense<0.000000e+00> : vector<2x120xf32>
    %142 = tpu.matmul %139, %141, %cst_68 {dimension_numbers = #tpu.dot_dimension_numbers<[1], [0], [0], [1], [0, 0, 1, 1], [], []>} : vector<2x16xf32>, vector<16x120xf32>, vector<2x120xf32> -> vector<2x120xf32>
    %143 = arith.addf %137, %142 : vector<2x120xf32>
    %144 = vector.extract_strided_slice %81 {offsets = [10, 0, 0], sizes = [1, 2, 16], strides = [1, 1, 1]} : vector<16x2x16xf32> to vector<1x2x16xf32>
    %145 = vector.shape_cast %144 : vector<1x2x16xf32> to vector<2x16xf32>
    %c10 = arith.constant 10 : index
    %c0_69 = arith.constant 0 : index
    %c0_70 = arith.constant 0 : index
    %146 = vector.load %arg10[%c10, %c0_69, %c0_70] : memref<16x16x120xf32, #tpu.memory_space<vmem>>, vector<1x16x120xf32>
    %147 = vector.shape_cast %146 : vector<1x16x120xf32> to vector<16x120xf32>
    %cst_71 = arith.constant dense<0.000000e+00> : vector<2x120xf32>
    %148 = tpu.matmul %145, %147, %cst_71 {dimension_numbers = #tpu.dot_dimension_numbers<[1], [0], [0], [1], [0, 0, 1, 1], [], []>} : vector<2x16xf32>, vector<16x120xf32>, vector<2x120xf32> -> vector<2x120xf32>
    %149 = arith.addf %143, %148 : vector<2x120xf32>
    %150 = vector.extract_strided_slice %81 {offsets = [11, 0, 0], sizes = [1, 2, 16], strides = [1, 1, 1]} : vector<16x2x16xf32> to vector<1x2x16xf32>
    %151 = vector.shape_cast %150 : vector<1x2x16xf32> to vector<2x16xf32>
    %c11 = arith.constant 11 : index
    %c0_72 = arith.constant 0 : index
    %c0_73 = arith.constant 0 : index
    %152 = vector.load %arg10[%c11, %c0_72, %c0_73] : memref<16x16x120xf32, #tpu.memory_space<vmem>>, vector<1x16x120xf32>
    %153 = vector.shape_cast %152 : vector<1x16x120xf32> to vector<16x120xf32>
    %cst_74 = arith.constant dense<0.000000e+00> : vector<2x120xf32>
    %154 = tpu.matmul %151, %153, %cst_74 {dimension_numbers = #tpu.dot_dimension_numbers<[1], [0], [0], [1], [0, 0, 1, 1], [], []>} : vector<2x16xf32>, vector<16x120xf32>, vector<2x120xf32> -> vector<2x120xf32>
    %155 = arith.addf %149, %154 : vector<2x120xf32>
    %156 = vector.extract_strided_slice %81 {offsets = [12, 0, 0], sizes = [1, 2, 16], strides = [1, 1, 1]} : vector<16x2x16xf32> to vector<1x2x16xf32>
    %157 = vector.shape_cast %156 : vector<1x2x16xf32> to vector<2x16xf32>
    %c12 = arith.constant 12 : index
    %c0_75 = arith.constant 0 : index
    %c0_76 = arith.constant 0 : index
    %158 = vector.load %arg10[%c12, %c0_75, %c0_76] : memref<16x16x120xf32, #tpu.memory_space<vmem>>, vector<1x16x120xf32>
    %159 = vector.shape_cast %158 : vector<1x16x120xf32> to vector<16x120xf32>
    %cst_77 = arith.constant dense<0.000000e+00> : vector<2x120xf32>
    %160 = tpu.matmul %157, %159, %cst_77 {dimension_numbers = #tpu.dot_dimension_numbers<[1], [0], [0], [1], [0, 0, 1, 1], [], []>} : vector<2x16xf32>, vector<16x120xf32>, vector<2x120xf32> -> vector<2x120xf32>
    %161 = arith.addf %155, %160 : vector<2x120xf32>
    %162 = vector.extract_strided_slice %81 {offsets = [13, 0, 0], sizes = [1, 2, 16], strides = [1, 1, 1]} : vector<16x2x16xf32> to vector<1x2x16xf32>
    %163 = vector.shape_cast %162 : vector<1x2x16xf32> to vector<2x16xf32>
    %c13 = arith.constant 13 : index
    %c0_78 = arith.constant 0 : index
    %c0_79 = arith.constant 0 : index
    %164 = vector.load %arg10[%c13, %c0_78, %c0_79] : memref<16x16x120xf32, #tpu.memory_space<vmem>>, vector<1x16x120xf32>
    %165 = vector.shape_cast %164 : vector<1x16x120xf32> to vector<16x120xf32>
    %cst_80 = arith.constant dense<0.000000e+00> : vector<2x120xf32>
    %166 = tpu.matmul %163, %165, %cst_80 {dimension_numbers = #tpu.dot_dimension_numbers<[1], [0], [0], [1], [0, 0, 1, 1], [], []>} : vector<2x16xf32>, vector<16x120xf32>, vector<2x120xf32> -> vector<2x120xf32>
    %167 = arith.addf %161, %166 : vector<2x120xf32>
    %168 = vector.extract_strided_slice %81 {offsets = [14, 0, 0], sizes = [1, 2, 16], strides = [1, 1, 1]} : vector<16x2x16xf32> to vector<1x2x16xf32>
    %169 = vector.shape_cast %168 : vector<1x2x16xf32> to vector<2x16xf32>
    %c14 = arith.constant 14 : index
    %c0_81 = arith.constant 0 : index
    %c0_82 = arith.constant 0 : index
    %170 = vector.load %arg10[%c14, %c0_81, %c0_82] : memref<16x16x120xf32, #tpu.memory_space<vmem>>, vector<1x16x120xf32>
    %171 = vector.shape_cast %170 : vector<1x16x120xf32> to vector<16x120xf32>
    %cst_83 = arith.constant dense<0.000000e+00> : vector<2x120xf32>
    %172 = tpu.matmul %169, %171, %cst_83 {dimension_numbers = #tpu.dot_dimension_numbers<[1], [0], [0], [1], [0, 0, 1, 1], [], []>} : vector<2x16xf32>, vector<16x120xf32>, vector<2x120xf32> -> vector<2x120xf32>
    %173 = arith.addf %167, %172 : vector<2x120xf32>
    %174 = vector.extract_strided_slice %81 {offsets = [15, 0, 0], sizes = [1, 2, 16], strides = [1, 1, 1]} : vector<16x2x16xf32> to vector<1x2x16xf32>
    %175 = vector.shape_cast %174 : vector<1x2x16xf32> to vector<2x16xf32>
    %c15 = arith.constant 15 : index
    %c0_84 = arith.constant 0 : index
    %c0_85 = arith.constant 0 : index
    %176 = vector.load %arg10[%c15, %c0_84, %c0_85] : memref<16x16x120xf32, #tpu.memory_space<vmem>>, vector<1x16x120xf32>
    %177 = vector.shape_cast %176 : vector<1x16x120xf32> to vector<16x120xf32>
    %cst_86 = arith.constant dense<0.000000e+00> : vector<2x120xf32>
    %178 = tpu.matmul %175, %177, %cst_86 {dimension_numbers = #tpu.dot_dimension_numbers<[1], [0], [0], [1], [0, 0, 1, 1], [], []>} : vector<2x16xf32>, vector<16x120xf32>, vector<2x120xf32> -> vector<2x120xf32>
    %179 = arith.addf %173, %178 : vector<2x120xf32>
    %cst_87 = arith.constant 0.000000e+00 : f32
    %180 = vector.broadcast %cst_87 : f32 to vector<2x120xf32>
    %181 = arith.maximumf %179, %180 : vector<2x120xf32>
    %c0_88 = arith.constant 0 : index
    %c0_89 = arith.constant 0 : index
    %182 = vector.load %arg12[%c0_88, %c0_89] : memref<120x84xf32, #tpu.memory_space<vmem>>, vector<120x84xf32>
    %cst_90 = arith.constant dense<0.000000e+00> : vector<2x84xf32>
    %183 = tpu.matmul %181, %182, %cst_90 {dimension_numbers = #tpu.dot_dimension_numbers<[1], [0], [0], [1], [0, 0, 1, 1], [], []>} : vector<2x120xf32>, vector<120x84xf32>, vector<2x84xf32> -> vector<2x84xf32>
    %c0_91 = arith.constant 0 : index
    %c0_92 = arith.constant 0 : index
    %184 = vector.load %arg13[%c0_91, %c0_92] : memref<1x84xf32, #tpu.memory_space<vmem>>, vector<1x84xf32>
    %185 = vector.broadcast %184 : vector<1x84xf32> to vector<2x84xf32>
    %186 = arith.addf %183, %185 : vector<2x84xf32>
    %cst_93 = arith.constant 0.000000e+00 : f32
    %187 = vector.broadcast %cst_93 : f32 to vector<2x84xf32>
    %188 = arith.maximumf %186, %187 : vector<2x84xf32>
    %c0_94 = arith.constant 0 : index
    %c0_95 = arith.constant 0 : index
    %189 = vector.load %arg14[%c0_94, %c0_95] : memref<84x11xf32, #tpu.memory_space<vmem>>, vector<84x11xf32>
    %cst_96 = arith.constant dense<0.000000e+00> : vector<2x11xf32>
    %190 = tpu.matmul %188, %189, %cst_96 {dimension_numbers = #tpu.dot_dimension_numbers<[1], [0], [0], [1], [0, 0, 1, 1], [], []>} : vector<2x84xf32>, vector<84x11xf32>, vector<2x11xf32> -> vector<2x11xf32>
    %c0_97 = arith.constant 0 : index
    %c0_98 = arith.constant 0 : index
    %191 = vector.load %arg15[%c0_97, %c0_98] : memref<1x11xf32, #tpu.memory_space<vmem>>, vector<1x11xf32>
    %192 = vector.broadcast %191 : vector<1x11xf32> to vector<2x11xf32>
    %193 = arith.addf %190, %192 : vector<2x11xf32>
    %c0_99 = arith.constant 0 : index
    %c0_100 = arith.constant 0 : index
    %194 = vector.load %arg16[%c0_99, %c0_100] : memref<2x11xf32, #tpu.memory_space<vmem>>, vector<2x11xf32>
    tpu.vector_store %arg16[%c0_99, %c0_100], %193 {strides = array<i32>} : memref<2x11xf32, #tpu.memory_space<vmem>>, vector<2x11xf32>,
    return
  }
}

</mosaic_0001>

<bundles_post_ra>
// kernel: lenet_forward.2
= control target key start
LH: loop header
LB: loop body
LE: loop exit
PB: predicated region body
PF: predicated region fallthrough
CT: control target
= control target key end

     0   :  { %vm76_vm0 = vcmask 1040384   ;;  %vm72_vm1 = vcmask 203776   ;;  %vm286_vm2 = vcmask 1045504   ;;  %v2993_v63 = vmov 1152.0   ;;  %s4858_s0 = inlined_call_operand.vmem [shape: f32[25,1152], index: 0, kind: input, shape index: {}]   ;;  %s4859_s1 = inlined_call_operand.vmem [shape: f32[6,25], index: 1, kind: input, shape index: {}]   ;;  %s4860_s2 = inlined_call_operand.vmem [shape: f32[6,1], index: 2, kind: input, shape index: {}]   ;;  %s4861_s3 = inlined_call_operand.vmem [shape: f32[6,1], index: 3, kind: input, shape index: {}]   ;;  %s4862_s7 = inlined_call_operand.vmem [shape: f32[3,1], index: 7, kind: input, shape index: {}]   ;;  %s4863_s5 = inlined_call_operand.vmem [shape: f32[3,1], index: 5, kind: input, shape index: {}]   ;;  %s4864_s4 = inlined_call_operand.vmem [shape: f32[3,6], index: 4, kind: input, shape index: {}]   ;;  %s4865_s6 = inlined_call_operand.vmem [shape: f32[3,6], index: 6, kind: input, shape index: {}]   ;;  %s4866_s8 = inlined_call_operand.vmem [shape: f32[6,6], index: 8, kind: input, shape index: {}]   ;;  %s4867_s9 = inlined_call_operand.vmem [shape: f32[6,1], index: 9, kind: input, shape index: {}]   ;;  %s4868_s10 = inlined_call_operand.vmem [shape: f32[6,288], index: 10, kind: output, shape index: {}]  }
   0x1   :  { %v63_v0 = vld [vmem:[%s4858_s0 + $0xd8] sm:$0x1]  ;;  %v64_v1 = vld [vmem:[%s4858_s0 + $0xe0] sm:$0x1]  ;;  %v54_v2 = vld [vmem:[%s4858_s0 + $0x90] sm:$0xff]  ;;  %2773 = vrcp.f32 %v2993_v63  ;;  %vm418_vm7 = vcmask 785408  }
   0x2   :  { %2612 = vmatpush.msk.msra.mxu2 %vm76_vm0, %v63_v0  ;;  %2614 = vmatpush.msk.msra.mxu3 %vm76_vm0, %v64_v1  ;;  %v55_v3 = vld [vmem:[%s4858_s0 + $0x98] sm:$0xff]  ;;  %v45_v4 = vld [vmem:[%s4858_s0 + $0x48] sm:$0xff]  ;;  %v46_v5 = vld [vmem:[%s4858_s0 + $0x50] sm:$0xff]  ;;  %vm453_vm8 = vcmask 523264   ;;  %vm469_vm9 = vcmask 48128   ;;  %vm801_vm10 = vcmask 1042432  }
   0x3   :  { %v36_v6 = vld [vmem:[%s4858_s0] sm:$0xff]  ;;  %v37_v7 = vld [vmem:[%s4858_s0 + $0x8] sm:$0xff]  ;;  %v66_v10 = vld [vmem:[%s4858_s0 + $0xf0] sm:$0x1]  ;;  %vm746_vm11 = vcmask 23552   ;;  %vm950_vm12 = vcmask 130048  }
   0x4   :  { %117 = vmatpush.msra.mxu2 %v54_v2  ;;  %137 = vmatpush.msra.mxu3 %v55_v3  ;;  %v3083_v8 = vld [vmem:[%s4859_s1] sm:$0x3f]  ;;  %v65_v9 = vld [vmem:[%s4858_s0 + $0xe8] sm:$0x1]  ;;  %v47_v13 = vld [vmem:[%s4858_s0 + $0x58] sm:$0xff]  ;;  %s2998_s1 = smov 16  }
   0x5   :  { %v56_v11 = vld [vmem:[%s4858_s0 + $0xa0] sm:$0xff]  ;;  %v57_v12 = vld [vmem:[%s4858_s0 + $0xa8] sm:$0xff]  ;;  %v38_v15 = vld [vmem:[%s4858_s0 + $0x10] sm:$0xff] }
   0x6   :  { %118 = vmatpush.msra.mxu2 %v45_v4  ;;  %138 = vmatpush.msra.mxu3 %v46_v5  ;;  %v48_v14 = vld [vmem:[%s4858_s0 + $0x60] sm:$0xff]  ;;  %v39_v16 = vld [vmem:[%s4858_s0 + $0x18] sm:$0xff]  ;;  %v58_v19 = vld [vmem:[%s4858_s0 + $0xb0] sm:$0xff]  ;;  %v2994_v5 = vmov 0  }
   0x7   :  { %v67_v17 = vld [vmem:[%s4858_s0 + $0xf8] sm:$0x1]  ;;  %v68_v18 = vld [vmem:[%s4858_s0 + $0x100] sm:$0x1]  ;;  %v49_v21 = vld [vmem:[%s4858_s0 + $0x68] sm:$0xff]  ;;  %v2774_v0 = vpop.eup %2773  ;;  %2771 = vset.pattern.permute.xlu1 %v2994_v5  ;;  %2772 = vset.pattern.permute.xlu0 %v2994_v5 }
   0x8   :  { %119 = vmatpush.msra.mxu2 %v36_v6  ;;  %139 = vmatpush.msra.mxu3 %v37_v7  ;;  %v59_v20 = vld [vmem:[%s4858_s0 + $0xb8] sm:$0xff]  ;;  %v50_v22 = vld [vmem:[%s4858_s0 + $0x70] sm:$0xff]  ;;  %v40_v23 = vld [vmem:[%s4858_s0 + $0x20] sm:$0xff]  ;;  %v307_v1 = vmul.f32 1152.0, %v2774_v0  ;;  %vm311_vm3 = vweird.f32 %v2774_v0 }
   0x9   :  { %2613 = vmatmul.msk.f32.vlgmr.msra.gmra.mxu2 %vm72_vm1, %v3083_v8  ;;  %2615 = vmatmul.msk.f32.vlgmr.msra.gmra.mxu3 %vm72_vm1, %v3083_v8  ;;  %v41_v24 = vld [vmem:[%s4858_s0 + $0x28] sm:$0xff]  ;;  %v70_v26 = vld [vmem:[%s4858_s0 + $0x110] sm:$0x1]  ;;  %v60_v27 = vld [vmem:[%s4858_s0 + $0xc0] sm:$0xff] }
   0xa   :  { %2616 = vmatpush.msk.msrb.mxu2 %vm76_vm0, %v65_v9  ;;  %2618 = vmatpush.msk.msrb.mxu3 %vm76_vm0, %v66_v10  ;;  %v69_v25 = vld [vmem:[%s4858_s0 + $0x108] sm:$0x1]  ;;  %v51_v29 = vld [vmem:[%s4858_s0 + $0x78] sm:$0xff]  ;;  %v52_v30 = vld [vmem:[%s4858_s0 + $0x80] sm:$0xff]  ;;  %v308_v2 = vsub.f32 1.0, %v307_v1 }
   0xb   :  { %v61_v28 = vld [vmem:[%s4858_s0 + $0xc8] sm:$0xff]  ;;  %v42_v31 = vld [vmem:[%s4858_s0 + $0x30] sm:$0xff]  ;;  %v43_v32 = vld [vmem:[%s4858_s0 + $0x38] sm:$0xff] }
   0xc   :  { %157 = vmatpush.msrb.mxu2 %v56_v11  ;;  %177 = vmatpush.msrb.mxu3 %v57_v12  ;;  %v71_v33 = vld [vmem:[%s4858_s0 + $0x118] sm:$0x1]  ;;  %v62_v34 = vld [vmem:[%s4858_s0 + $0xd0] sm:$0xff]  ;;  %v53_v35 = vld [vmem:[%s4858_s0 + $0x88] sm:$0xff]  ;;  %v309_v3 = vmul.f32 %v2774_v0, %v308_v2 }
   0xd   :  { %v44_v36 = vld [vmem:[%s4858_s0 + $0x40] sm:$0xff] }
   0xe   :  { %158 = vmatpush.msrb.mxu2 %v47_v13  ;;  %178 = vmatpush.msrb.mxu3 %v48_v14  ;;  %v284_v4 = vld [vmem:[%s4860_s2] sm:$0x3f]  ;;  %v310_v6 = vadd.f32 %v2774_v0, %v309_v3  ;;  %s2995_s2 = smov 96  }
   0xf   :  { %374 = vperm.xlu1 %2771, %v284_v4  }
  0x10   :  { %159 = vmatpush.msrb.mxu2 %v38_v15  ;;  %179 = vmatpush.msrb.mxu3 %v39_v16  ;;  %v312_v7 = vsel %vm311_vm3, %v2774_v0, %v310_v6 }
  0x11   :  { %2617 = vmatmul.msk.f32.vlgmr.msrb.gmra.mxu2 %vm72_vm1, %v3083_v8  ;;  %2619 = vmatmul.msk.f32.vlgmr.msrb.gmra.mxu3 %vm72_vm1, %v3083_v8 }
  0x12   :  { %2620 = vmatpush.msk.msra.mxu2 %vm76_vm0, %v67_v17  ;;  %2622 = vmatpush.msk.msra.mxu3 %vm76_vm0, %v68_v18 }
  0x14   :  { %197 = vmatpush.msra.mxu2 %v58_v19  ;;  %217 = vmatpush.msra.mxu3 %v59_v20 }
  0x16   :  { %198 = vmatpush.msra.mxu2 %v49_v21  ;;  %218 = vmatpush.msra.mxu3 %v50_v22 }
  0x18   :  { %199 = vmatpush.msra.mxu2 %v40_v23  ;;  %219 = vmatpush.msra.mxu3 %v41_v24 }
  0x19   :  { %2621 = vmatmul.msk.f32.vlgmr.msra.gmra.mxu2 %vm72_vm1, %v3083_v8  ;;  %2623 = vmatmul.msk.f32.vlgmr.msra.gmra.mxu3 %vm72_vm1, %v3083_v8 }
  0x1a   :  { %2624 = vmatpush.msk.msrb.mxu2 %vm76_vm0, %v69_v25  ;;  %2626 = vmatpush.msk.msrb.mxu3 %vm76_vm0, %v70_v26 }
  0x1c   :  { %237 = vmatpush.msrb.mxu2 %v60_v27  ;;  %257 = vmatpush.msrb.mxu3 %v61_v28 }
  0x1e   :  { %238 = vmatpush.msrb.mxu2 %v51_v29  ;;  %258 = vmatpush.msrb.mxu3 %v52_v30 }
  0x20   :  { %239 = vmatpush.msrb.mxu2 %v42_v31  ;;  %259 = vmatpush.msrb.mxu3 %v43_v32 }
  0x21   :  { %2625 = vmatmul.msk.f32.vlgmr.msrb.gmra.mxu2 %vm72_vm1, %v3083_v8  ;;  %2627 = vmatmul.msk.f32.vlgmr.msrb.gmra.mxu3 %vm72_vm1, %v3083_v8 }
  0x22   :  { %2628 = vmatpush.msk.msra.mxu2 %vm76_vm0, %v71_v33 }
  0x24   :  { %277 = vmatpush.msra.mxu2 %v62_v34 }
  0x26   :  { %278 = vmatpush.msra.mxu2 %v53_v35 }
  0x28   :  { %279 = vmatpush.msra.mxu2 %v44_v36 }
  0x29   :  { %2629 = vmatmul.msk.f32.vlgmr.msra.gmra.mxu2 %vm72_vm1, %v3083_v8  ;;  %v285_v8 = vld [vmem:[%s4861_s3] sm:$0x3f]  ;;  %s2996_s3 = smov 64  }
  0x2a   :  { %388 = vperm.xlu1 %2771, %v285_v8  }
  0x8c   :  { %v121_v37 = vpop.f32.mrf.mxu2  ;;  %v141_v38 = vpop.f32.mrf.mxu3 }
  0x8d   :  { %v287_v41 = vsel %vm286_vm2, %v121_v37, 0.0  ;;  %v288_v42 = vsel %vm286_vm2, %v141_v38, 0.0 }
  0x8e   :  { %v289_v44 = vadd.f32 %v288_v42, %v287_v41 }
  0x94   :  { %v161_v39 = vpop.f32.mrf.mxu2  ;;  %v181_v40 = vpop.f32.mrf.mxu3 }
  0x95   :  { %v290_v43 = vsel %vm286_vm2, %v161_v39, 0.0  ;;  %v292_v48 = vsel %vm286_vm2, %v181_v40, 0.0 }
  0x96   :  { %v291_v45 = vadd.f32 %v290_v43, %v289_v44 }
  0x98   :  { %v293_v50 = vadd.f32 %v292_v48, %v291_v45 }
  0x9c   :  { %v201_v46 = vpop.f32.mrf.mxu2  ;;  %v221_v47 = vpop.f32.mrf.mxu3 }
  0x9d   :  { %v294_v49 = vsel %vm286_vm2, %v201_v46, 0.0  ;;  %v296_v52 = vsel %vm286_vm2, %v221_v47, 0.0 }
  0x9e   :  { %v295_v51 = vadd.f32 %v294_v49, %v293_v50 }
  0xa0   :  { %v297_v55 = vadd.f32 %v296_v52, %v295_v51 }
  0xa4   :  { %v241_v53 = vpop.f32.mrf.mxu2  ;;  %v261_v56 = vpop.f32.mrf.mxu3 }
  0xa5   :  { %v298_v54 = vsel %vm286_vm2, %v241_v53, 0.0  ;;  %v300_v58 = vsel %vm286_vm2, %v261_v56, 0.0 }
  0xa6   :  { %v299_v57 = vadd.f32 %v298_v54, %v297_v55 }
  0xa8   :  { %v301_v60 = vadd.f32 %v300_v58, %v299_v57 }
  0xac   :  { %v281_v59 = vpop.f32.mrf.mxu2 }
  0xad   :  { %v302_v61 = vsel %vm286_vm2, %v281_v59, 0.0 }
  0xae   :  { %v303_v62 = vadd.f32 %v302_v61, %v301_v60 }
  0xb0   :  { %304 = vadd.xlane.f32.xlu0 %v303_v62 }
 0x123   :  { %v305_v9 = vpop.xlane.xlu0 %304 }
 0x124   :  { %v313_v10 = vmul.f32 %v312_v7, %v305_v9 }
 0x126   :  { %v314_v11 = vsub.f32 %v121_v37, %v313_v10  ;;  %v3209_v12 = vsub.f32 %v141_v38, %v313_v10  ;;  %v316_v13 = vsub.f32 %v161_v39, %v313_v10  ;;  %v3211_v14 = vsub.f32 %v181_v40, %v313_v10 }
 0x127   :  { %v318_v15 = vsub.f32 %v201_v46, %v313_v10  ;;  %v319_v19 = vsub.f32 %v221_v47, %v313_v10  ;;  %v320_v24 = vsub.f32 %v241_v53, %v313_v10  ;;  %v321_v28 = vsub.f32 %v261_v56, %v313_v10  ;;  %v375_v53 = vpop.permute.xlu1 %374 }
 0x128   :  { %v323_v16 = vmul.f32 %v314_v11, %v314_v11  ;;  %v324_v17 = vmul.f32 %v3209_v12, %v3209_v12  ;;  %v325_v18 = vmul.f32 %v316_v13, %v316_v13  ;;  %v326_v20 = vmul.f32 %v3211_v14, %v3211_v14 }
 0x129   :  { %v327_v25 = vmul.f32 %v318_v15, %v318_v15  ;;  %v328_v29 = vmul.f32 %v319_v19, %v319_v19  ;;  %v322_v32 = vsub.f32 %v281_v59, %v313_v10  ;;  %v329_v33 = vmul.f32 %v320_v24, %v320_v24 }
 0x12a   :  { %v332_v21 = vsel %vm286_vm2, %v323_v16, 0.0  ;;  %v333_v22 = vsel %vm286_vm2, %v324_v17, 0.0  ;;  %v335_v26 = vsel %vm286_vm2, %v325_v18, 0.0  ;;  %v337_v30 = vsel %vm286_vm2, %v326_v20, 0.0 }
 0x12b   :  { %v334_v23 = vadd.f32 %v333_v22, %v332_v21  ;;  %v339_v34 = vsel %vm286_vm2, %v327_v25, 0.0  ;;  %v330_v36 = vmul.f32 %v321_v28, %v321_v28  ;;  %v341_v37 = vsel %vm286_vm2, %v328_v29, 0.0 }
 0x12c   :  { %v331_v39 = vmul.f32 %v322_v32, %v322_v32  ;;  %v343_v40 = vsel %vm286_vm2, %v329_v33, 0.0 }
 0x12d   :  { %v336_v27 = vadd.f32 %v335_v26, %v334_v23  ;;  %v345_v42 = vsel %vm286_vm2, %v330_v36, 0.0 }
 0x12e   :  { %v347_v44 = vsel %vm286_vm2, %v331_v39, 0.0 }
 0x12f   :  { %v338_v31 = vadd.f32 %v337_v30, %v336_v27  ;;  %v3226_v3 = vpop.permute.xlu1 %388 }
 0x131   :  { %v340_v35 = vadd.f32 %v339_v34, %v338_v31 }
 0x133   :  { %v342_v38 = vadd.f32 %v341_v37, %v340_v35  ;;  %v463_v35 = vld [vmem:[%s4863_s5] sm:$0x7] }
 0x135   :  { %v344_v41 = vadd.f32 %v343_v40, %v342_v38 }
 0x137   :  { %v346_v43 = vadd.f32 %v345_v42, %v344_v41 }
 0x139   :  { %v348_v45 = vadd.f32 %v347_v44, %v346_v43 }
 0x13b   :  { %349 = vadd.xlane.f32.xlu0 %v348_v45 }
 0x1ae   :  { %v350_v46 = vpop.xlane.xlu0 %349 }
 0x1af   :  { %v351_v47 = vmul.f32 %v350_v46, %v312_v7  ;;  %v462_v46 = vld [vmem:[%s4864_s4] sm:$0x7] }
 0x1b1   :  { %v352_v48 = vadd.f32 1e-05, %v351_v47 }
 0x1b3   :  { %2775 = vrsqrt.f32 %v352_v48  ;;  %vm359_vm5 = vweird.f32 %v352_v48 }
 0x1b9   :  { %v2776_v49 = vpop.eup %2775 }
 0x1ba   :  { %v354_v50 = vmul.f32 %v2776_v49, %v352_v48  ;;  %vm360_vm4 = vweird.f32 %v2776_v49 }
 0x1bb   :  { %vm361_vm6 = vmor %vm359_vm5, %vm360_vm4 }
 0x1bc   :  { %v355_v51 = vmul.f32 %v2776_v49, %v354_v50 }
 0x1be   :  { %v356_v52 = vmul.f32 0.5, %v355_v51 }
 0x1c0   :  { %v357_v54 = vsub.f32 1.5, %v356_v52 }
 0x1c2   :  { %v358_v55 = vmul.f32 %v2776_v49, %v357_v54 }
 0x1c4   :  { %v362_v56 = vsel %vm361_vm6, %v2776_v49, %v358_v55  ;;  %vm1634_vm6 = vcmask 916480  }
 0x1c5   :  { %v371_v57 = vmul.f32 %v362_v56, %v322_v32  ;;  %v369_v58 = vmul.f32 %v362_v56, %v320_v24  ;;  %v365_v59 = vmul.f32 %v362_v56, %v316_v13  ;;  %v367_v60 = vmul.f32 %v362_v56, %v318_v15  ;;  %v543_v32 = vld [vmem:[%s4862_s7] sm:$0x7] }
 0x1c6   :  { %v368_v61 = vmul.f32 %v362_v56, %v319_v19  ;;  %v363_v62 = vmul.f32 %v362_v56, %v314_v11  ;;  %v370_v2 = vmul.f32 %v362_v56, %v321_v28  ;;  %v364_v16 = vmul.f32 %v362_v56, %v3209_v12 }
 0x1c7   :  { %v385_v63 = vmul.f32 %v375_v53, %v371_v57  ;;  %v383_v0 = vmul.f32 %v375_v53, %v369_v58  ;;  %v379_v1 = vmul.f32 %v375_v53, %v365_v59  ;;  %v381_v4 = vmul.f32 %v375_v53, %v367_v60  ;;  %v542_v57 = vld [vmem:[%s4865_s6] sm:$0x7] }
 0x1c8   :  { %v382_v5 = vmul.f32 %v375_v53, %v368_v61  ;;  %v377_v6 = vmul.f32 %v375_v53, %v363_v62  ;;  %v384_v15 = vmul.f32 %v375_v53, %v370_v2  ;;  %v366_v18 = vmul.f32 %v362_v56, %v3211_v14  ;;  %v612_v58 = vld [vmem:[%s4866_s8] sm:$0x3f] }
 0x1c9   :  { %v399_v7 = vadd.f32 %v3226_v3, %v385_v63  ;;  %v397_v8 = vadd.f32 %v3226_v3, %v383_v0  ;;  %v3231_v9 = vadd.f32 %v3226_v3, %v379_v1  ;;  %v378_v19 = vmul.f32 %v375_v53, %v364_v16 }
 0x1ca   :  { %v398_v17 = vadd.f32 %v3226_v3, %v384_v15  ;;  %v380_v21 = vmul.f32 %v375_v53, %v366_v18  ;;  %v395_v25 = vadd.f32 %v3226_v3, %v381_v4  ;;  %v396_v14 = vadd.f32 %v3226_v3, %v382_v5 }
 0x1cb   :  { %v408_v10 = vmax.f32 %v399_v7, 0.0  ;;  %v406_v13 = vmax.f32 %v397_v8, 0.0  ;;  %v402_v11 = vmax.f32 %v3231_v9, 0.0  ;;  %v391_v38 = vadd.f32 %v3226_v3, %v377_v6 }
 0x1cc   :  { %v407_v20 = vmax.f32 %v398_v17, 0.0  ;;  %v394_v22 = vadd.f32 %v3226_v3, %v380_v21  ;;  %v404_v27 = vmax.f32 %v395_v25, 0.0  ;;  %v405_v30 = vmax.f32 %v396_v14, 0.0 }
 0x1cd   :  { %434 = vrot.lane.b32.xlu0 %v408_v10, %s2995_s2  ;;  %430 = vrot.lane.b32.xlu2 %v406_v13, %s2995_s2  ;;  %v400_v40 = vmax.f32 %v391_v38, 0.0  ;;  %v392_v47 = vadd.f32 %v3226_v3, %v378_v19 }
 0x1ce   :  { %412 = vrot.lane.b32.xlu1 %v402_v11, %s2995_s2  ;;  %v403_v23 = vmax.f32 %v394_v22, 0.0 }
 0x1cf   :  { %v401_v50 = vmax.f32 %v392_v47, 0.0 }
 0x1d5   :  { %432 = vrot.lane.b32.xlu2 %v407_v20, %s2995_s2  ;;  %466 = vperm.xlu0 %2772, %v463_v35  }
 0x1dd   :  { %414 = vrot.lane.b32.xlu2 %v403_v23, %s2995_s2 }
 0x227   :  { %v431_v24 = vpop.permute.xlu2 %430 }
 0x22f   :  { %v433_v26 = vpop.permute.xlu2 %432 }
 0x230   :  { %v436_v12 = vsel %vm418_vm7, %v431_v24, %v433_v26 }
 0x231   :  { %v441_v28 = vmax.f32 %v404_v27, %v436_v12 }
 0x233   :  { %447 = vrot.lane.b32.xlu1 %v441_v28, %s2996_s3 }
 0x237   :  { %v415_v36 = vpop.permute.xlu2 %414 }
 0x23b   :  { %416 = vrot.lane.b32.xlu1 %v404_v27, %s2995_s2 }
 0x23f   :  { %v435_v29 = vpop.permute.xlu0 %434 }
 0x240   :  { %v437_v31 = vsel %vm418_vm7, %v433_v26, %v435_v29  ;;  %v443_v34 = vmax.f32 %v406_v13, %v435_v29  ;;  %v413_v37 = vpop.permute.xlu1 %412 }
 0x241   :  { %v442_v33 = vmax.f32 %v405_v30, %v437_v31  ;;  %v419_v39 = vsel %vm418_vm7, %v413_v37, %v415_v36 }
 0x242   :  { %v424_v42 = vmax.f32 %v400_v40, %v419_v39 }
 0x243   :  { %449 = vrot.lane.b32.xlu2 %v442_v33, %s2996_s3  ;;  %546 = vperm.xlu1 %2771, %v543_v32  }
 0x247   :  { %v3295_v59 = vpop.permute.xlu0 %466 }
 0x24b   :  { %451 = vrot.lane.b32.xlu2 %v443_v34, %s2996_s3 }
 0x29d   :  { %v450_v41 = vpop.permute.xlu2 %449 }
 0x2a5   :  { %v448_v43 = vpop.permute.xlu1 %447  ;;  %v452_v48 = vpop.permute.xlu2 %451 }
 0x2a6   :  { %v454_v44 = vsel %vm453_vm8, %v448_v43, %v450_v41  ;;  %v455_v54 = vsel %vm453_vm8, %v450_v41, %v452_v48 }
 0x2a7   :  { %v3251_v45 = vmax.f32 %v424_v42, %v454_v44 }
 0x2a9   :  { %4893 = vst [vmem:[#allocation2_spill] sm:$0xff] %v3251_v45  ;;  %2630 = vmatpush.msk.msra.mxu3 %vm286_vm2, %v3251_v45 }
 0x2aa   :  { %2631 = vmatmul.msk.f32.vlgmr.msra.gmra.mxu3 %vm469_vm9, %v462_v46 }
 0x2ad   :  { %v417_v49 = vpop.permute.xlu1 %416 }
 0x2ae   :  { %v420_v51 = vsel %vm418_vm7, %v415_v36, %v417_v49  ;;  %v426_v52 = vmax.f32 %v402_v11, %v417_v49 }
 0x2af   :  { %v425_v53 = vmax.f32 %v401_v50, %v420_v51 }
 0x2b0   :  { %v3262_v55 = vmax.f32 %v426_v52, %v452_v48 }
 0x2b1   :  { %v3264_v56 = vmax.f32 %v425_v53, %v455_v54 }
 0x2b2   :  { %4894 = vst [vmem:[#allocation3_spill] sm:$0xff] %v3262_v55  ;;  %2634 = vmatpush.msk.msrb.mxu3 %vm286_vm2, %v3262_v55  ;;  %2646 = vmatpush.msk.msra.mxu1 %vm286_vm2, %v3262_v55 }
 0x2b3   :  { %4895 = vst [vmem:[#allocation4_spill] sm:$0xff] %v3264_v56  ;;  %2632 = vmatpush.msk.msrb.mxu2 %vm286_vm2, %v3264_v56  ;;  %2635 = vmatmul.msk.f32.vlgmr.msrb.gmra.mxu3 %vm469_vm9, %v462_v46 }
 0x2b4   :  { %2638 = vmatpush.msk.msra.mxu3 %vm286_vm2, %v3264_v56  ;;  %2644 = vmatpush.msk.msra.mxu0 %vm286_vm2, %v3264_v56 }
 0x2b5   :  { %2633 = vmatmul.msk.f32.vlgmr.msrb.gmra.mxu2 %vm469_vm9, %v462_v46  ;;  %2645 = vmatmul.msk.f32.vlgmr.msra.gmra.mxu0 %vm469_vm9, %v612_v58  ;;  %v3305_v1 = vpop.permute.xlu1 %546 }
 0x2b6   :  { %2642 = vmatpush.msk.msrb.mxu3 %vm286_vm2, %v3251_v45  ;;  %2636 = vmatpush.msk.msra.mxu2 %vm286_vm2, %v3251_v45 }
 0x2b7   :  { %2647 = vmatmul.msk.f32.vlgmr.msra.gmra.mxu1 %vm469_vm9, %v612_v58 }
 0x2b8   :  { %2640 = vmatpush.msk.msrb.mxu2 %vm286_vm2, %v3262_v55 }
 0x2bb   :  { %2639 = vmatmul.msk.f32.vlgmr.msra.gmra.mxu3 %vm469_vm9, %v542_v57 }
 0x2bd   :  { %2637 = vmatmul.msk.f32.vlgmr.msra.gmra.mxu2 %vm469_vm9, %v542_v57 }
 0x2c3   :  { %2643 = vmatmul.msk.f32.vlgmr.msrb.gmra.mxu3 %vm469_vm9, %v612_v58 }
 0x2c5   :  { %2641 = vmatmul.msk.f32.vlgmr.msrb.gmra.mxu2 %vm469_vm9, %v542_v57 }
 0x32d   :  { %v499_v60 = vpop.f32.mrf.mxu3 }
 0x32e   :  { %v500_v61 = vadd.f32 %v499_v60, %v3295_v59 }
 0x330   :  { %682 = vxpose.xlu2.b32.start.end [1/1] (short) %v500_v61, 128 }
 0x336   :  { %v3299_v62 = vpop.f32.mrf.mxu3 }
 0x338   :  { %v519_v63 = vpop.f32.mrf.mxu2 }
 0x339   :  { %v3302_v0 = vadd.f32 %v519_v63, %v3295_v59 }
 0x33b   :  { %714 = vxpose.xlu1.b32.start.end [1/1] (short) (narrow) %v3302_v0, 16 }
 0x33e   :  { %v589_v2 = vpop.f32.mrf.mxu3 }
 0x33f   :  { %v3308_v3 = vadd.f32 %v589_v2, %v3305_v1 }
 0x340   :  { %v569_v4 = vpop.f32.mrf.mxu2 }
 0x341   :  { %v570_v5 = vadd.f32 %v569_v4, %v3305_v1  ;;  %2667 = vmatpush.msk.msra.mxu3 %vm801_vm10, %v3308_v3 }
 0x343   :  { %2648 = vmatpush.msk.msra.mxu2 %vm801_vm10, %v570_v5 }
 0x346   :  { %v3344_v23 = vpop.f32.mrf.mxu3 }
 0x347   :  { %4896 = vst [vmem:[#allocation5_spill] sm:$0xff] %v3344_v23 }
 0x348   :  { %v3346_v24 = vpop.f32.mrf.mxu2 }
 0x3c9   :  { %v698_v6 = vpop.trf.xlu2 }
 0x3ca   :  { %2649 = vmatmul.msk.f32.vlgmr.msra.gmra.mxu2 %vm746_vm11, %v698_v6  ;;  %2668 = vmatmul.msk.f32.vlgmr.msra.gmra.mxu3 %vm746_vm11, %v698_v6 }
 0x3d1   :  { %v699_v7 = vpop.trf.xlu2 }
 0x3d2   :  { %2650 = vmatmul.msk.f32.gmra.mxu2 %vm746_vm11, %v699_v7  ;;  %2669 = vmatmul.msk.f32.gmra.mxu3 %vm746_vm11, %v699_v7 }
 0x3d9   :  { %v700_v8 = vpop.trf.xlu2 }
 0x3da   :  { %2651 = vmatmul.msk.f32.gmra.mxu2 %vm746_vm11, %v700_v8  ;;  %2670 = vmatmul.msk.f32.gmra.mxu3 %vm746_vm11, %v700_v8 }
 0x3df   :  { %v730_v38 = vpop.trf.xlu1 }
 0x3e1   :  { %v701_v9 = vpop.trf.xlu2 }
 0x3e2   :  { %2652 = vmatmul.msk.f32.gmra.mxu2 %vm746_vm11, %v701_v9  ;;  %2671 = vmatmul.msk.f32.gmra.mxu3 %vm746_vm11, %v701_v9 }
 0x3e7   :  { %v731_v46 = vpop.trf.xlu1 }
 0x3e9   :  { %v702_v10 = vpop.trf.xlu2 }
 0x3ea   :  { %2653 = vmatmul.msk.f32.gmra.mxu2 %vm746_vm11, %v702_v10  ;;  %2672 = vmatmul.msk.f32.gmra.mxu3 %vm746_vm11, %v702_v10 }
 0x3f1   :  { %v703_v13 = vpop.trf.xlu2 }
 0x3f2   :  { %2654 = vmatmul.msk.f32.gmra.mxu2 %vm746_vm11, %v703_v13  ;;  %2673 = vmatmul.msk.f32.gmra.mxu3 %vm746_vm11, %v703_v13 }
 0x3f9   :  { %v704_v11 = vpop.trf.xlu2 }
 0x3fa   :  { %2655 = vmatmul.msk.f32.gmra.mxu2 %vm746_vm11, %v704_v11  ;;  %2674 = vmatmul.msk.f32.gmra.mxu3 %vm746_vm11, %v704_v11 }
 0x401   :  { %v705_v15 = vpop.trf.xlu2 }
 0x402   :  { %2656 = vmatmul.msk.f32.gmra.mxu2 %vm746_vm11, %v705_v15  ;;  %2675 = vmatmul.msk.f32.gmra.mxu3 %vm746_vm11, %v705_v15 }
 0x409   :  { %v706_v16 = vpop.trf.xlu2 }
 0x40a   :  { %2657 = vmatmul.msk.f32.gmra.mxu2 %vm746_vm11, %v706_v16  ;;  %2676 = vmatmul.msk.f32.gmra.mxu3 %vm746_vm11, %v706_v16 }
 0x411   :  { %v707_v17 = vpop.trf.xlu2 }
 0x412   :  { %2658 = vmatmul.msk.f32.gmra.mxu2 %vm746_vm11, %v707_v17  ;;  %2677 = vmatmul.msk.f32.gmra.mxu3 %vm746_vm11, %v707_v17 }
 0x419   :  { %v708_v18 = vpop.trf.xlu2 }
 0x41a   :  { %2659 = vmatmul.msk.f32.gmra.mxu2 %vm746_vm11, %v708_v18  ;;  %2678 = vmatmul.msk.f32.gmra.mxu3 %vm746_vm11, %v708_v18 }
 0x421   :  { %v709_v19 = vpop.trf.xlu2 }
 0x422   :  { %2660 = vmatmul.msk.f32.gmra.mxu2 %vm746_vm11, %v709_v19  ;;  %2679 = vmatmul.msk.f32.gmra.mxu3 %vm746_vm11, %v709_v19 }
 0x429   :  { %v710_v20 = vpop.trf.xlu2 }
 0x42a   :  { %2661 = vmatmul.msk.f32.gmra.mxu2 %vm746_vm11, %v710_v20  ;;  %2680 = vmatmul.msk.f32.gmra.mxu3 %vm746_vm11, %v710_v20 }
 0x431   :  { %v711_v21 = vpop.trf.xlu2 }
 0x432   :  { %2662 = vmatmul.msk.f32.gmra.mxu2 %vm746_vm11, %v711_v21  ;;  %2681 = vmatmul.msk.f32.gmra.mxu3 %vm746_vm11, %v711_v21 }
 0x439   :  { %v712_v22 = vpop.trf.xlu2 }
 0x43a   :  { %2682 = vmatmul.msk.f32.gmra.mxu3 %vm746_vm11, %v712_v22  ;;  %2663 = vmatmul.msk.f32.gmra.mxu2 %vm746_vm11, %v712_v22 }
 0x441   :  { %v713_v35 = vpop.trf.xlu2 }
 0x442   :  { %2683 = vmatmul.msk.f32.gmra.mxu3 %vm746_vm11, %v713_v35  ;;  %2664 = vmatmul.msk.f32.gmra.mxu2 %vm746_vm11, %v713_v35 }
 0x44a   :  { %2684 = vmatmul.msk.f32.gmra.mxu3 %vm746_vm11, %v730_v38  ;;  %2665 = vmatmul.msk.f32.gmra.mxu2 %vm746_vm11, %v730_v38 }
 0x44d   :  { %v3348_v25 = vpop.f32.mrf.mxu2  ;;  %v3350_v26 = vpop.f32.mrf.mxu3 }
 0x44e   :  { %v951_v57 = vsel %vm950_vm12, %v3350_v26, -inf }
 0x44f   :  { %v952_v63 = vmax.f32 %v3348_v25, %v951_v57 }
 0x452   :  { %2685 = vmatmul.msk.f32.gmra.mxu3 %vm746_vm11, %v731_v46  ;;  %2666 = vmatmul.msk.f32.gmra.mxu2 %vm746_vm11, %v731_v46 }
 0x455   :  { %v3352_v27 = vpop.f32.mrf.mxu2  ;;  %v3354_v12 = vpop.f32.mrf.mxu3 }
 0x45d   :  { %v3356_v28 = vpop.f32.mrf.mxu2  ;;  %v3358_v14 = vpop.f32.mrf.mxu3 }
 0x465   :  { %v3360_v29 = vpop.f32.mrf.mxu2  ;;  %v3362_v30 = vpop.f32.mrf.mxu3 }
 0x46d   :  { %v3364_v31 = vpop.f32.mrf.mxu2  ;;  %v3366_v32 = vpop.f32.mrf.mxu3 }
 0x46e   :  { %v967_v38 = vsel %vm950_vm12, %v3366_v32, -inf }
 0x46f   :  { %v968_v46 = vmax.f32 %v3364_v31, %v967_v38 }
 0x475   :  { %v3368_v33 = vpop.f32.mrf.mxu2  ;;  %v3370_v34 = vpop.f32.mrf.mxu3 }
 0x476   :  { %v971_v22 = vsel %vm950_vm12, %v3370_v34, -inf }
 0x477   :  { %v972_v35 = vmax.f32 %v3368_v33, %v971_v22 }
 0x47d   :  { %v3374_v36 = vpop.f32.mrf.mxu2  ;;  %v3376_v37 = vpop.f32.mrf.mxu3 }
 0x47e   :  { %v975_v20 = vsel %vm950_vm12, %v3376_v37, -inf }
 0x47f   :  { %v976_v21 = vmax.f32 %v3374_v36, %v975_v20 }
 0x485   :  { %v3380_v39 = vpop.f32.mrf.mxu2  ;;  %v3382_v40 = vpop.f32.mrf.mxu3 }
 0x486   :  { %v979_v18 = vsel %vm950_vm12, %v3382_v40, -inf }
 0x487   :  { %v980_v19 = vmax.f32 %v3380_v39, %v979_v18 }
 0x48d   :  { %v3384_v41 = vpop.f32.mrf.mxu2  ;;  %v3386_v42 = vpop.f32.mrf.mxu3 }
 0x48e   :  { %v983_v16 = vsel %vm950_vm12, %v3386_v42, -inf }
 0x48f   :  { %v984_v17 = vmax.f32 %v3384_v41, %v983_v16 }
 0x495   :  { %v3388_v43 = vpop.f32.mrf.mxu2  ;;  %v3390_v44 = vpop.f32.mrf.mxu3 }
 0x496   :  { %v987_v11 = vsel %vm950_vm12, %v3390_v44, -inf }
 0x497   :  { %v988_v15 = vmax.f32 %v3388_v43, %v987_v11  ;;  %v613_v11 = vld [vmem:[%s4867_s9] sm:$0x3f]  ;;  %s2997_s9 = smov 112  }
 0x49d   :  { %v3394_v47 = vpop.f32.mrf.mxu2  ;;  %v3396_v48 = vpop.f32.mrf.mxu3 }
 0x49e   :  { %v991_v10 = vsel %vm950_vm12, %v3396_v48, -inf }
 0x49f   :  { %v992_v13 = vmax.f32 %v3394_v47, %v991_v10  ;;  %v955_v10 = vsel %vm950_vm12, %v3354_v12, -inf }
 0x4a5   :  { %v3398_v49 = vpop.f32.mrf.mxu2  ;;  %v3400_v50 = vpop.f32.mrf.mxu3 }
 0x4a6   :  { %v995_v4 = vsel %vm950_vm12, %v3400_v50, -inf }
 0x4a7   :  { %v996_v8 = vmax.f32 %v3398_v49, %v995_v4 }
 0x4ad   :  { %v3402_v51 = vpop.f32.mrf.mxu2  ;;  %v3404_v52 = vpop.f32.mrf.mxu3 }
 0x4ae   :  { %v999_v53 = vsel %vm950_vm12, %v3404_v52, -inf }
 0x4af   :  { %v1000_v54 = vmax.f32 %v3402_v51, %v999_v53 }
 0x4b1   :  { %1001 = vmax.xlane.f32.xlu1 %v1000_v54  ;;  %v963_v54 = vsel %vm950_vm12, %v3362_v30, -inf }
 0x4b5   :  { %v3411_v58 = vpop.f32.mrf.mxu2  ;;  %v3413_v60 = vpop.f32.mrf.mxu3 }
 0x4b6   :  { %v1003_v61 = vsel %vm950_vm12, %v3413_v60, -inf }
 0x4b7   :  { %v1004_v2 = vmax.f32 %v3411_v58, %v1003_v61  ;;  %v964_v61 = vmax.f32 %v3360_v29, %v963_v54 }
 0x4b9   :  { %953 = vmax.xlane.f32.xlu1 %v952_v63  ;;  %1005 = vmax.xlane.f32.xlu0 %v1004_v2  ;;  %v959_v63 = vsel %vm950_vm12, %v3358_v14, -inf }
 0x4ba   :  { %v960_v4 = vmax.f32 %v3356_v28, %v959_v63 }
 0x4bd   :  { %v3421_v5 = vpop.f32.mrf.mxu3  ;;  %v3423_v6 = vpop.f32.mrf.mxu2 }
 0x4be   :  { %v1007_v7 = vsel %vm950_vm12, %v3421_v5, -inf }
 0x4bf   :  { %v1008_v9 = vmax.f32 %v3423_v6, %v1007_v7 }
 0x4c1   :  { %997 = vmax.xlane.f32.xlu0 %v996_v8  ;;  %1009 = vmax.xlane.f32.xlu2 %v1008_v9 }
 0x4c5   :  { %v3450_v53 = vpop.f32.mrf.mxu3  ;;  %v3454_v57 = vpop.f32.mrf.mxu2 }
 0x4c9   :  { %993 = vmax.xlane.f32.xlu0 %v992_v13  ;;  %v956_v13 = vmax.f32 %v3352_v27, %v955_v10 }
 0x4cd   :  { %v3459_v2 = vpop.f32.mrf.mxu3  ;;  %v3464_v8 = vpop.f32.mrf.mxu2 }
 0x4ce   :  { %v1015_v7 = vsel %vm950_vm12, %v3459_v2, -inf }
 0x4cf   :  { %v1016_v9 = vmax.f32 %v3464_v8, %v1015_v7 }
 0x4d1   :  { %989 = vmax.xlane.f32.xlu0 %v988_v15  ;;  %1017 = vmax.xlane.f32.xlu1 %v1016_v9  ;;  %v1011_v9 = vsel %vm950_vm12, %v3450_v53, -inf }
 0x4d2   :  { %v1012_v10 = vmax.f32 %v3454_v57, %v1011_v9 }
 0x4d5   :  { %v3494_v63 = vpop.f32.mrf.mxu2 }
 0x4d9   :  { %985 = vmax.xlane.f32.xlu0 %v984_v17 }
 0x4e1   :  { %981 = vmax.xlane.f32.xlu0 %v980_v19 }
 0x4e9   :  { %977 = vmax.xlane.f32.xlu0 %v976_v21 }
 0x4f1   :  { %973 = vmax.xlane.f32.xlu0 %v972_v35 }
 0x4f9   :  { %969 = vmax.xlane.f32.xlu0 %v968_v46 }
 0x501   :  { %965 = vmax.xlane.f32.xlu0 %v964_v61  ;;  %v3488_v61 = vpop.f32.mrf.mxu3 }
 0x509   :  { %961 = vmax.xlane.f32.xlu0 %v960_v4 }
 0x511   :  { %957 = vmax.xlane.f32.xlu0 %v956_v13 }
 0x524   :  { %v3473_v15 = vpop.xlane.xlu1 %1001 }
 0x525   :  { %616 = vperm.xlu0 %2772, %v613_v11  }
 0x52c   :  { %v954_v16 = vpop.xlane.xlu1 %953  ;;  %v3475_v17 = vpop.xlane.xlu0 %1005 }
 0x52d   :  { %v1023_v18 = vsub.f32 %v3348_v25, %v954_v16  ;;  %v1024_v19 = vsub.f32 %v3350_v26, %v954_v16  ;;  %v1019_v26 = vsel %vm950_vm12, %v3488_v61, -inf }
 0x52e   :  { %v1020_v4 = vmax.f32 %v3494_v63, %v1019_v26 }
 0x52f   :  { %v1059_v20 = vmul.f32 1.442695, %v1023_v18  ;;  %v1061_v21 = vmul.f32 1.442695, %v1024_v19 }
 0x531   :  { %2777 = vpow2.f32 %v1059_v20 }
 0x532   :  { %2779 = vpow2.f32 %v1061_v21 }
 0x534   :  { %v3479_v22 = vpop.xlane.xlu0 %997 }
 0x537   :  { %v3481_v35 = vpop.eup %2777 }
 0x538   :  { %4897 = vst [vmem:[#allocation6_spill] sm:$0xff] %v3481_v35  ;;  %v3483_v38 = vpop.eup %2779 }
 0x539   :  { %4898 = vst [vmem:[#allocation7_spill] sm:$0xff] %v3483_v38  ;;  %v1131_v46 = vsel %vm950_vm12, %v3483_v38, 0.0 }
 0x53a   :  { %v1132_v54 = vadd.f32 %v3481_v35, %v1131_v46 }
 0x53c   :  { %1133 = vadd.xlane.f32.xlu1 %v1132_v54  ;;  %v3490_v25 = vpop.xlane.xlu0 %993 }
 0x544   :  { %1021 = vmax.xlane.f32.xlu1 %v1020_v4  ;;  %v3497_v7 = vpop.xlane.xlu0 %989 }
 0x54c   :  { %v986_v13 = vpop.xlane.xlu0 %985 }
 0x54f   :  { %1013 = vmax.xlane.f32.xlu0 %v1012_v10 }
 0x554   :  { %v3502_v11 = vpop.xlane.xlu0 %981 }
 0x55c   :  { %v978_v16 = vpop.xlane.xlu0 %977 }
 0x55d   :  { %v1036_v23 = vsub.f32 %v3376_v37, %v978_v16 }
 0x564   :  { %v974_v18 = vpop.xlane.xlu0 %973 }
 0x56c   :  { %v970_v19 = vpop.xlane.xlu0 %969 }
 0x56d   :  { %v1032_v26 = vsub.f32 %v3366_v32, %v970_v19  ;;  %v1031_v56 = vsub.f32 %v3364_v31, %v970_v19  ;;  %v1035_v31 = vsub.f32 %v3374_v36, %v978_v16 }
 0x56f   :  { %v1077_v9 = vmul.f32 1.442695, %v1032_v26  ;;  %v1075_v10 = vmul.f32 1.442695, %v1031_v56  ;;  %v1083_v37 = vmul.f32 1.442695, %v1035_v31 }
 0x574   :  { %v966_v20 = vpop.xlane.xlu0 %965 }
 0x575   :  { %v1029_v56 = vsub.f32 %v3360_v29, %v966_v20 }
 0x577   :  { %v1071_v36 = vmul.f32 1.442695, %v1029_v56  ;;  %v1043_v56 = vsub.f32 %v3394_v47, %v3490_v25 }
 0x57c   :  { %v962_v21 = vpop.xlane.xlu0 %961 }
 0x57d   :  { %v1027_v46 = vsub.f32 %v3356_v28, %v962_v21  ;;  %v1028_v54 = vsub.f32 %v3358_v14, %v962_v21  ;;  %v1030_v28 = vsub.f32 %v3362_v30, %v966_v20  ;;  %v1039_v20 = vsub.f32 %v3384_v41, %v986_v13 }
 0x57e   :  { %v1044_v41 = vsub.f32 %v3396_v48, %v3490_v25 }
 0x57f   :  { %v1067_v4 = vmul.f32 1.442695, %v1027_v46  ;;  %v1069_v55 = vmul.f32 1.442695, %v1028_v54 }
 0x580   :  { %v1101_v48 = vmul.f32 1.442695, %v1044_v41 }
 0x581   :  { %2781 = vpow2.f32 %v1067_v4 }
 0x582   :  { %2783 = vpow2.f32 %v1069_v55  ;;  %v1085_v55 = vmul.f32 1.442695, %v1036_v23  ;;  %v1034_v23 = vsub.f32 %v3370_v34, %v974_v18 }
 0x583   :  { %2785 = vpow2.f32 %v1077_v9 }
 0x584   :  { %v958_v45 = vpop.xlane.xlu0 %957  ;;  %2787 = vpow2.f32 %v1075_v10  ;;  %v1081_v4 = vmul.f32 1.442695, %v1034_v23 }
 0x585   :  { %v1025_v38 = vsub.f32 %v3352_v27, %v958_v45  ;;  %v1026_v35 = vsub.f32 %v3354_v12, %v958_v45  ;;  %v1073_v45 = vmul.f32 1.442695, %v1030_v28 }
 0x587   :  { %v3512_v14 = vpop.eup %2781  ;;  %v1063_v32 = vmul.f32 1.442695, %v1025_v38  ;;  %v1065_v21 = vmul.f32 1.442695, %v1026_v35  ;;  %v1040_v35 = vsub.f32 %v3386_v42, %v986_v13  ;;  %v1033_v42 = vsub.f32 %v3368_v33, %v974_v18 }
 0x588   :  { %4899 = vst [vmem:[#allocation8_spill] sm:$0xff] %v3512_v14  ;;  %v3514_v46 = vpop.eup %2783  ;;  %v1038_v18 = vsub.f32 %v3382_v40, %v3502_v11 }
 0x589   :  { %4900 = vst [vmem:[#allocation9_spill] sm:$0xff] %v3514_v46  ;;  %2789 = vpow2.f32 %v1063_v32  ;;  %v1139_v27 = vsel %vm950_vm12, %v3514_v46, 0.0  ;;  %v3521_v30 = vpop.eup %2785  ;;  %v1093_v54 = vmul.f32 1.442695, %v1040_v35  ;;  %v1091_v32 = vmul.f32 1.442695, %v1039_v20 }
 0x58a   :  { %2791 = vpow2.f32 %v1065_v21  ;;  %v1140_v12 = vadd.f32 %v3512_v14, %v1139_v27  ;;  %4901 = vst [vmem:[#allocation10_spill] sm:$0xff] %v3521_v30  ;;  %v3524_v38 = vpop.eup %2787  ;;  %v1147_v16 = vsel %vm950_vm12, %v3521_v30, 0.0  ;;  %v1079_v33 = vmul.f32 1.442695, %v1033_v42 }
 0x58b   :  { %2793 = vpow2.f32 %v1085_v55  ;;  %4902 = vst [vmem:[#allocation11_spill] sm:$0xff] %v3524_v38  ;;  %v1148_v9 = vadd.f32 %v3524_v38, %v1147_v16  ;;  %v1037_v27 = vsub.f32 %v3380_v39, %v3502_v11  ;;  %v1042_v39 = vsub.f32 %v3390_v44, %v3497_v7 }
 0x58c   :  { %1141 = vadd.xlane.f32.xlu1 %v1140_v12  ;;  %2795 = vpow2.f32 %v1073_v45  ;;  %v1089_v45 = vmul.f32 1.442695, %v1038_v18  ;;  %v1041_v20 = vsub.f32 %v3388_v43, %v3497_v7 }
 0x58d   :  { %2797 = vpow2.f32 %v1083_v37  ;;  %v1087_v47 = vmul.f32 1.442695, %v1037_v27 }
 0x58e   :  { %2799 = vpow2.f32 %v1071_v36  ;;  %v1099_v36 = vmul.f32 1.442695, %v1043_v56 }
 0x58f   :  { %v3527_v29 = vpop.eup %2789  ;;  %2801 = vpow2.f32 %v1093_v54  ;;  %v1097_v54 = vmul.f32 1.442695, %v1042_v39 }
 0x590   :  { %4903 = vst [vmem:[#allocation12_spill] sm:$0xff] %v3527_v29  ;;  %v3531_v19 = vpop.eup %2791  ;;  %2803 = vpow2.f32 %v1081_v4 }
 0x591   :  { %4904 = vst [vmem:[#allocation13_spill] sm:$0xff] %v3531_v19  ;;  %v1135_v26 = vsel %vm950_vm12, %v3531_v19, 0.0  ;;  %v3539_v10 = vpop.eup %2793  ;;  %2805 = vpow2.f32 %v1091_v32  ;;  %v1046_v32 = vsub.f32 %v3400_v50, %v3479_v22 }
 0x592   :  { %v1136_v34 = vadd.f32 %v3527_v29, %v1135_v26  ;;  %v3541_v28 = vpop.eup %2795  ;;  %v1155_v55 = vsel %vm950_vm12, %v3539_v10, 0.0  ;;  %2807 = vpow2.f32 %v1079_v33  ;;  %v1045_v33 = vsub.f32 %v3398_v49, %v3479_v22 }
 0x593   :  { %4905 = vst [vmem:[#allocation14_spill] sm:$0xff] %v3541_v28  ;;  %v3545_v13 = vpop.eup %2797  ;;  %v1143_v31 = vsel %vm950_vm12, %v3541_v28, 0.0  ;;  %2809 = vpow2.f32 %v1101_v48  ;;  %v1105_v18 = vmul.f32 1.442695, %v1046_v32  ;;  %v1048_v48 = vsub.f32 %v3404_v52, %v3473_v15 }
 0x594   :  { %1137 = vadd.xlane.f32.xlu0 %v1136_v34  ;;  %1149 = vadd.xlane.f32.xlu1 %v1148_v9  ;;  %v3549_v21 = vpop.eup %2799  ;;  %v1156_v12 = vadd.f32 %v3545_v13, %v1155_v55  ;;  %2811 = vpow2.f32 %v1089_v45  ;;  %v1095_v34 = vmul.f32 1.442695, %v1041_v20  ;;  %v1103_v50 = vmul.f32 1.442695, %v1045_v33 }
 0x595   :  { %4906 = vst [vmem:[#allocation15_spill] sm:$0xff] %v3549_v21  ;;  %v1144_v40 = vadd.f32 %v3549_v21, %v1143_v31  ;;  %v3561_v37 = vpop.eup %2801  ;;  %2813 = vpow2.f32 %v1099_v36  ;;  %v1047_v22 = vsub.f32 %v3402_v51, %v3473_v15  ;;  %v1109_v45 = vmul.f32 1.442695, %v1048_v48 }
 0x596   :  { %v3563_v35 = vpop.eup %2803  ;;  %v1163_v16 = vsel %vm950_vm12, %v3561_v37, 0.0  ;;  %2815 = vpow2.f32 %v1087_v47  ;;  %v1050_v52 = vsub.f32 %v3413_v60, %v3475_v17  ;;  %v1049_v51 = vsub.f32 %v3411_v58, %v3475_v17 }
 0x597   :  { %v3565_v25 = vpop.eup %2805  ;;  %v1151_v23 = vsel %vm950_vm12, %v3563_v35, 0.0  ;;  %2817 = vpow2.f32 %v1097_v54  ;;  %v1107_v36 = vmul.f32 1.442695, %v1047_v22  ;;  %v3619_v20 = vpop.permute.xlu0 %616 }
 0x598   :  { %v3569_v11 = vpop.eup %2807  ;;  %v1164_v26 = vadd.f32 %v3565_v25, %v1163_v16  ;;  %2819 = vpow2.f32 %v1095_v34  ;;  %v1113_v15 = vmul.f32 1.442695, %v1050_v52  ;;  %v1010_v16 = vpop.xlane.xlu2 %1009  ;;  %4907 = vst [vmem:[#allocation16_spill] sm:$0xff] %v3619_v20 }
 0x599   :  { %v1152_v42 = vadd.f32 %v3569_v11, %v1151_v23  ;;  %v3579_v44 = vpop.eup %2809  ;;  %2821 = vpow2.f32 %v1105_v18  ;;  %v1052_v60 = vsub.f32 %v3421_v5, %v1010_v16  ;;  %v1051_v58 = vsub.f32 %v3423_v6, %v1010_v16 }
 0x59a   :  { %v3581_v4 = vpop.eup %2811  ;;  %v1171_v41 = vsel %vm950_vm12, %v3579_v44, 0.0  ;;  %2823 = vpow2.f32 %v1103_v50 }
 0x59b   :  { %v3583_v9 = vpop.eup %2813  ;;  %v1159_v7 = vsel %vm950_vm12, %v3581_v4, 0.0  ;;  %2825 = vpow2.f32 %v1109_v45  ;;  %v1117_v17 = vmul.f32 1.442695, %v1052_v60  ;;  %v1115_v33 = vmul.f32 1.442695, %v1051_v58 }
 0x59c   :  { %1145 = vadd.xlane.f32.xlu0 %v1144_v40  ;;  %1157 = vadd.xlane.f32.xlu1 %v1156_v12  ;;  %v3587_v43 = vpop.eup %2815  ;;  %v1172_v55 = vadd.f32 %v3583_v9, %v1171_v41  ;;  %2827 = vpow2.f32 %v1107_v36 }
 0x59d   :  { %v1160_v31 = vadd.f32 %v3587_v43, %v1159_v7  ;;  %v3597_v56 = vpop.eup %2817  ;;  %2829 = vpow2.f32 %v1113_v15 }
 0x59e   :  { %v3601_v27 = vpop.eup %2819  ;;  %v1167_v49 = vsel %vm950_vm12, %v3597_v56, 0.0 }
 0x59f   :  { %v1168_v40 = vadd.f32 %v3601_v27, %v1167_v49  ;;  %v3608_v12 = vpop.eup %2821 }
 0x5a0   :  { %v3612_v47 = vpop.eup %2823  ;;  %v1175_v39 = vsel %vm950_vm12, %v3608_v12, 0.0 }
 0x5a1   :  { %v1176_v23 = vadd.f32 %v3612_v47, %v1175_v39  ;;  %v3621_v54 = vpop.eup %2825 }
 0x5a2   :  { %v1179_v34 = vsel %vm950_vm12, %v3621_v54, 0.0 }
 0x5a4   :  { %1153 = vadd.xlane.f32.xlu0 %v1152_v42  ;;  %1165 = vadd.xlane.f32.xlu1 %v1164_v26  ;;  %v1111_v42 = vmul.f32 1.442695, %v1049_v51  ;;  %v3624_v26 = vpop.eup %2827 }
 0x5a5   :  { %v1180_v32 = vadd.f32 %v3624_v26, %v1179_v34  ;;  %v3630_v41 = vpop.eup %2829 }
 0x5a6   :  { %2831 = vpow2.f32 %v1111_v42  ;;  %v1183_v6 = vsel %vm950_vm12, %v3630_v41, 0.0 }
 0x5a7   :  { %2833 = vpow2.f32 %v1117_v17 }
 0x5a8   :  { %2835 = vpow2.f32 %v1115_v33 }
 0x5ac   :  { %1161 = vadd.xlane.f32.xlu0 %v1160_v31  ;;  %1173 = vadd.xlane.f32.xlu1 %v1172_v55  ;;  %v3635_v18 = vpop.eup %2831 }
 0x5ad   :  { %v1184_v50 = vadd.f32 %v3635_v18, %v1183_v6  ;;  %v3641_v48 = vpop.eup %2833 }
 0x5b4   :  { %1169 = vadd.xlane.f32.xlu0 %v1168_v40 }
 0x5bc   :  { %1177 = vadd.xlane.f32.xlu0 %v1176_v23 }
 0x5c2   :  { %v1014_v7 = vpop.xlane.xlu0 %1013 }
 0x5c3   :  { %v1054_v5 = vsub.f32 %v3450_v53, %v1014_v7  ;;  %v1053_v31 = vsub.f32 %v3454_v57, %v1014_v7  ;;  %v1187_v53 = vsel %vm950_vm12, %v3641_v48, 0.0  ;;  %v1018_v57 = vpop.xlane.xlu1 %1017 }
 0x5c4   :  { %1181 = vadd.xlane.f32.xlu0 %v1180_v32  ;;  %v1056_v52 = vsub.f32 %v3459_v2, %v1018_v57  ;;  %v1055_v51 = vsub.f32 %v3464_v8, %v1018_v57  ;;  %v540_v2 = vadd.f32 %v3299_v62, %v3295_v59  ;;  %v610_v32 = vadd.f32 %v3346_v24, %v3305_v1 }
 0x5c5   :  { %1630 = vrot.lane.b32.xlu1 %v3302_v0, %s2997_s9  ;;  %v1121_v55 = vmul.f32 1.442695, %v1054_v5  ;;  %v1119_v49 = vmul.f32 1.442695, %v1053_v31  ;;  %v3643_v0 = vpop.eup %2835 }
 0x5c6   :  { %v1188_v22 = vadd.f32 %v3643_v0, %v1187_v53  ;;  %v1125_v15 = vmul.f32 1.442695, %v1056_v52  ;;  %v1123_v23 = vmul.f32 1.442695, %v1055_v51 }
 0x5c7   :  { %2837 = vpow2.f32 %v1121_v55 }
 0x5c8   :  { %2839 = vpow2.f32 %v1119_v49 }
 0x5c9   :  { %2841 = vpow2.f32 %v1125_v15 }
 0x5ca   :  { %2843 = vpow2.f32 %v1123_v23 }
 0x5cb   :  { %v3667_v8 = vpop.xlane.xlu1 %1133 }
 0x5cc   :  { %1185 = vadd.xlane.f32.xlu0 %v1184_v50 }
 0x5cd   :  { %v3648_v45 = vpop.eup %2837 }
 0x5ce   :  { %v3650_v40 = vpop.eup %2839  ;;  %v1191_v36 = vsel %vm950_vm12, %v3648_v45, 0.0 }
 0x5cf   :  { %v1192_v39 = vadd.f32 %v3650_v40, %v1191_v36  ;;  %v3657_v16 = vpop.eup %2841 }
 0x5d0   :  { %4908 = vst [vmem:[#allocation17_spill] sm:$0xff] %v3657_v16  ;;  %v3659_v42 = vpop.eup %2843  ;;  %v1195_v60 = vsel %vm950_vm12, %v3657_v16, 0.0 }
 0x5d1   :  { %4909 = vst [vmem:[#allocation18_spill] sm:$0xff] %v3659_v42  ;;  %v1196_v34 = vadd.f32 %v3659_v42, %v1195_v60 }
 0x5d3   :  { %v1022_v58 = vpop.xlane.xlu1 %1021 }
 0x5d4   :  { %1189 = vadd.xlane.f32.xlu0 %v1188_v22  ;;  %v1058_v17 = vsub.f32 %v3488_v61, %v1022_v58  ;;  %v1057_v7 = vsub.f32 %v3494_v63, %v1022_v58 }
 0x5d6   :  { %v1129_v5 = vmul.f32 1.442695, %v1058_v17  ;;  %v1127_v6 = vmul.f32 1.442695, %v1057_v7 }
 0x5d8   :  { %2845 = vpow2.f32 %v1129_v5 }
 0x5d9   :  { %2847 = vpow2.f32 %v1127_v6 }
 0x5dc   :  { %1193 = vadd.xlane.f32.xlu0 %v1192_v39 }
 0x5de   :  { %v3678_v62 = vpop.eup %2845 }
 0x5df   :  { %4910 = vst [vmem:[#allocation19_spill] sm:$0xff] %v3678_v62  ;;  %v3680_v31 = vpop.eup %2847  ;;  %v1199_v61 = vsel %vm950_vm12, %v3678_v62, 0.0 }
 0x5e0   :  { %4911 = vst [vmem:[#allocation20_spill] sm:$0xff] %v3680_v31  ;;  %v1200_v24 = vadd.f32 %v3680_v31, %v1199_v61 }
 0x5ef   :  { %1197 = vadd.xlane.f32.xlu1 %v1196_v34 }
 0x5f0   :  { %1632 = vrot.lane.b32.xlu0 %v540_v2, %s2997_s9 }
 0x5ff   :  { %v3691_v50 = vpop.xlane.xlu1 %1141 }
 0x607   :  { %v3673_v33 = vpop.xlane.xlu0 %1137  ;;  %v3697_v53 = vpop.xlane.xlu1 %1149 }
 0x608   :  { %1705 = vrot.lane.b32.xlu1 %v610_v32, %s2997_s9 }
 0x60f   :  { %v3676_v59 = vpop.xlane.xlu0 %1145  ;;  %v3701_v57 = vpop.xlane.xlu1 %1157 }
 0x617   :  { %v3684_v1 = vpop.xlane.xlu0 %1153  ;;  %v3705_v52 = vpop.xlane.xlu1 %1165 }
 0x61a   :  { %1201 = vadd.xlane.f32.xlu0 %v1200_v24 }
 0x61f   :  { %v3687_v63 = vpop.xlane.xlu0 %1161  ;;  %v3715_v60 = vpop.xlane.xlu1 %1173 }
 0x627   :  { %v3689_v55 = vpop.xlane.xlu0 %1169 }
 0x62e   :  { %1703 = vrot.lane.b32.xlu0 %v3308_v3, %s2997_s9 }
 0x62f   :  { %v3695_v49 = vpop.xlane.xlu0 %1177 }
 0x637   :  { %v3699_v22 = vpop.xlane.xlu0 %1181 }
 0x63f   :  { %v3703_v36 = vpop.xlane.xlu0 %1185 }
 0x640   :  { %vm1416_vm3 = vweird.f32 %v3703_v36  ;;  %v1420_v38 = vand.u32 2147483647, %v3703_v36 }
 0x647   :  { %v1190_v39 = vpop.xlane.xlu0 %1189 }
 0x648   :  { %2849 = vrcp.f32 %v1190_v39  ;;  %vm1432_vm15 = vweird.f32 %v1190_v39  ;;  %v1438_v29 = vand.u32 2147483648, %v1190_v39 }
 0x649   :  { %2851 = vrcp.f32 %v3703_v36 }
 0x64a   :  { %2853 = vrcp.f32 %v3699_v22  ;;  %v1439_v21 = vor.u32 1.1754944e-38, %v1438_v29 }
 0x64b   :  { %2855 = vrcp.f32 %v3695_v49 }
 0x64e   :  { %v3709_v51 = vpop.eup %2849 }
 0x64f   :  { %v3711_v3 = vpop.eup %2851  ;;  %v1428_v15 = vmul.f32 %v3709_v51, %v1190_v39  ;;  %v1194_v23 = vpop.xlane.xlu0 %1193  ;;  %vm1433_vm13 = vweird.f32 %v3709_v51 }
 0x650   :  { %2857 = vrcp.f32 %v1194_v23  ;;  %v1412_v34 = vmul.f32 %v3711_v3, %v3703_v36  ;;  %v3719_v2 = vpop.eup %2853  ;;  %v1454_v62 = vand.u32 2147483648, %v1194_v23  ;;  %vm1448_vm0 = vweird.f32 %v1194_v23  ;;  %vm3739_vm1 = vmor %vm1432_vm15, %vm1433_vm13 }
 0x651   :  { %2859 = vrcp.f32 %v3715_v60  ;;  %v1429_v58 = vsub.f32 1.0, %v1428_v15  ;;  %v3722_v17 = vpop.eup %2855  ;;  %v1396_v7 = vmul.f32 %v3719_v2, %v3699_v22  ;;  %vm1417_vm4 = vweird.f32 %v3711_v3 }
 0x652   :  { %v1413_v5 = vsub.f32 1.0, %v1412_v34  ;;  %2861 = vrcp.f32 %v3705_v52  ;;  %v1380_v16 = vmul.f32 %v3722_v17, %v3695_v49  ;;  %vm3767_vm8 = vmor %vm1416_vm3, %vm1417_vm4  ;;  %vm1401_vm9 = vweird.f32 %v3719_v2 }
 0x653   :  { %v1430_v6 = vmul.f32 %v3709_v51, %v1429_v58  ;;  %2863 = vrcp.f32 %v3689_v55  ;;  %v1397_v42 = vsub.f32 1.0, %v1396_v7  ;;  %v1452_v58 = vand.u32 2147483647, %v1194_v23 }
 0x654   :  { %v1414_v20 = vmul.f32 %v3711_v3, %v1413_v5  ;;  %2865 = vrcp.f32 %v3687_v63  ;;  %v1381_v46 = vsub.f32 1.0, %v1380_v16  ;;  %v1436_v5 = vand.u32 2147483647, %v1190_v39 }
 0x655   :  { %v1431_v31 = vadd.f32 %v3709_v51, %v1430_v6  ;;  %v1398_v14 = vmul.f32 %v3719_v2, %v1397_v42  ;;  %v1455_v6 = vor.u32 1.1754944e-38, %v1454_v62  ;;  %vm1453_vm5 = vcmp.eq.f32.partialorder %v1452_v58, 8.507059e+37 }
 0x656   :  { %v2858_v32 = vpop.eup %2857  ;;  %v1415_v39 = vadd.f32 %v3711_v3, %v1414_v20  ;;  %v1422_v42 = vand.u32 2147483648, %v3703_v36  ;;  %vm1437_vm7 = vcmp.eq.f32.partialorder %v1436_v5, 8.507059e+37  ;;  %v1382_v20 = vmul.f32 %v3722_v17, %v1381_v46 }
 0x657   :  { %v1444_v61 = vmul.f32 %v2858_v32, %v1194_v23  ;;  %v3728_v24 = vpop.eup %2859  ;;  %vm1449_vm14 = vweird.f32 %v2858_v32  ;;  %v1435_v23 = vsel %vm3739_vm1, %v3709_v51, %v1431_v31  ;;  %v1631_v51 = vpop.permute.xlu1 %1630  ;;  %2867 = vrcp.f32 %v3701_v57 }
 0x658   :  { %v1364_v19 = vmul.f32 %v3728_v24, %v3715_v60  ;;  %vm1450_vm2 = vmor %vm1448_vm0, %vm1449_vm14  ;;  %v1440_v29 = vsel %vm1437_vm7, %v1439_v21, %v1435_v23  ;;  %v1419_v46 = vsel %vm3767_vm8, %v3711_v3, %v1415_v39  ;;  %v1423_v21 = vor.u32 1.1754944e-38, %v1422_v42 }
 0x659   :  { %v1445_v15 = vsub.f32 1.0, %v1444_v61  ;;  %vm1400_vm13 = vweird.f32 %v3699_v22  ;;  %v1406_v36 = vand.u32 2147483648, %v3699_v22  ;;  %v1442_v7 = vmul.f32 %v3641_v48, %v1440_v29 }
 0x65a   :  { %v1365_v58 = vsub.f32 1.0, %v1364_v19  ;;  %vm1421_vm14 = vcmp.eq.f32.partialorder %v1420_v38, 8.507059e+37  ;;  %v1404_v3 = vand.u32 2147483647, %v3699_v22  ;;  %vm3787_vm15 = vmor %vm1400_vm13, %vm1401_vm9  ;;  %v1383_v48 = vadd.f32 %v3722_v17, %v1382_v20 }
 0x65b   :  { %v1446_v34 = vmul.f32 %v2858_v32, %v1445_v15  ;;  %v3743_v15 = vpop.eup %2861  ;;  %vm1385_vm0 = vweird.f32 %v3722_v17  ;;  %2869 = vrcp.f32 %v3684_v1  ;;  %vm1384_vm1 = vweird.f32 %v3695_v49 }
 0x65c   :  { %v3748_v28 = vpop.eup %2863  ;;  %v1366_v5 = vmul.f32 %v3728_v24, %v1365_v58  ;;  %v1390_v22 = vand.u32 2147483648, %v3695_v49  ;;  %v1388_v42 = vand.u32 2147483647, %v3695_v49  ;;  %vm3807_vm3 = vmor %vm1384_vm1, %vm1385_vm0  ;;  %vm1369_vm4 = vweird.f32 %v3728_v24 }
 0x65d   :  { %v1447_v61 = vadd.f32 %v2858_v32, %v1446_v34  ;;  %v1348_v31 = vmul.f32 %v3748_v28, %v3689_v55  ;;  %2871 = vrcp.f32 %v3697_v53  ;;  %vm1368_vm7 = vweird.f32 %v3715_v60 }
 0x65e   :  { %v1391_v49 = vor.u32 1.1754944e-38, %v1390_v22  ;;  %vm3829_vm8 = vmor %vm1368_vm7, %vm1369_vm4  ;;  %vm1353_vm9 = vweird.f32 %v3748_v28  ;;  %2873 = vrcp.f32 %v3676_v59  ;;  %vm1337_vm0 = vweird.f32 %v3743_v15 }
 0x65f   :  { %v1451_v16 = vsel %vm1450_vm2, %v2858_v32, %v1447_v61  ;;  %v3758_v32 = vpop.eup %2865  ;;  %v1349_v23 = vsub.f32 1.0, %v1348_v31  ;;  %vm1405_vm2 = vcmp.eq.f32.partialorder %v1404_v3, 8.507059e+37  ;;  %2875 = vrcp.f32 %v3691_v50 }
 0x660   :  { %v1456_v34 = vsel %vm1453_vm5, %v1455_v6, %v1451_v16  ;;  %v1424_v6 = vsel %vm1421_vm14, %v1423_v21, %v1419_v46  ;;  %v1316_v58 = vmul.f32 %v3758_v32, %v3687_v63  ;;  %vm1389_vm5 = vcmp.eq.f32.partialorder %v1388_v42, 8.507059e+37 }
 0x661   :  { %v1457_v62 = vmul.f32 %v3650_v40, %v1456_v34  ;;  %v1458_v30 = vmul.f32 %v3648_v45, %v1456_v34  ;;  %v1399_v40 = vadd.f32 %v3719_v2, %v1398_v14  ;;  %v1332_v14 = vmul.f32 %v3743_v15, %v3705_v52 }
 0x662   :  { %v1633_v61 = vpop.permute.xlu0 %1632  ;;  %v1425_v39 = vmul.f32 %v3635_v18, %v1424_v6  ;;  %v1426_v34 = vmul.f32 %v3630_v41, %v1424_v6  ;;  %v1387_v41 = vsel %vm3807_vm3, %v3722_v17, %v1383_v48  ;;  %v1367_v18 = vadd.f32 %v3728_v24, %v1366_v5 }
 0x663   :  { %1548 = vmatpush.xpose.msrb.mxu0 %v1457_v62  ;;  %2686 = vmatpush.xpose.msk.msrb.mxu1 %vm950_vm12, %v1458_v30  ;;  %v1635_v19 = vsel %vm1634_vm6, %v1631_v51, %v1633_v61  ;;  %v1441_v30 = vmul.f32 %v3643_v0, %v1440_v29  ;;  %v1403_v38 = vsel %vm3787_vm15, %v3719_v2, %v1399_v40  ;;  %v1407_v0 = vor.u32 1.1754944e-38, %v1406_v36  ;;  %v3803_v62 = vpop.eup %2867 }
 0x664   :  { %1670 = vxpose.xlu0.b32.start.end [1/1] (short) (narrow) %v1633_v61, 16  ;;  %1638 = vxpose.xlu2.b32.start.end [1/1] (short) %v1635_v19, 128  ;;  %v1333_v2 = vsub.f32 1.0, %v1332_v14  ;;  %v1350_v51 = vmul.f32 %v3748_v28, %v1349_v23  ;;  %v1372_v61 = vand.u32 2147483647, %v3715_v60  ;;  %v1374_v29 = vand.u32 2147483648, %v3715_v60  ;;  %v3824_v46 = vpop.eup %2869 }
 0x665   :  { %v1408_v31 = vsel %vm1405_vm2, %v1407_v0, %v1403_v38  ;;  %v1300_v17 = vmul.f32 %v3803_v62, %v3701_v57  ;;  %v1392_v21 = vsel %vm1389_vm5, %v1391_v49, %v1387_v41  ;;  %vm1352_vm14 = vweird.f32 %v3689_v55  ;;  %v3845_v6 = vpop.eup %2871 }
 0x666   :  { %v1409_v45 = vmul.f32 %v3624_v26, %v1408_v31  ;;  %v1410_v19 = vmul.f32 %v3621_v54, %v1408_v31  ;;  %v1334_v40 = vmul.f32 %v3743_v15, %v1333_v2  ;;  %v1371_v54 = vsel %vm3829_vm8, %v3728_v24, %v1367_v18  ;;  %vm3850_vm15 = vmor %vm1352_vm14, %vm1353_vm9  ;;  %v3866_v42 = vpop.eup %2873 }
 0x667   :  { %1549 = vmatpush.xpose.msrb.mxu0 %v1441_v30  ;;  %2687 = vmatpush.xpose.msk.msrb.mxu1 %vm950_vm12, %v1442_v7  ;;  %v1317_v30 = vsub.f32 1.0, %v1316_v58  ;;  %v1351_v26 = vadd.f32 %v3748_v28, %v1350_v51  ;;  %vm1373_vm13 = vcmp.eq.f32.partialorder %v1372_v61, 8.507059e+37  ;;  %v1375_v60 = vor.u32 1.1754944e-38, %v1374_v29  ;;  %v3882_v20 = vpop.eup %2875 }
 0x668   :  { %v1358_v7 = vand.u32 2147483648, %v3689_v55  ;;  %v1393_v3 = vmul.f32 %v3612_v47, %v1392_v21  ;;  %v1394_v14 = vmul.f32 %v3608_v12, %v1392_v21  ;;  %v1356_v5 = vand.u32 2147483647, %v3689_v55 }
 0x669   :  { %v1301_v24 = vsub.f32 1.0, %v1300_v17  ;;  %v1284_v16 = vmul.f32 %v3824_v46, %v3684_v1  ;;  %v1376_v23 = vsel %vm1373_vm13, %v1375_v60, %v1371_v54  ;;  %v1318_v47 = vmul.f32 %v3758_v32, %v1317_v30 }
 0x66a   :  { %v1355_v12 = vsel %vm3850_vm15, %v3748_v28, %v1351_v26  ;;  %v1335_v55 = vadd.f32 %v3743_v15, %v1334_v40  ;;  %v1359_v48 = vor.u32 1.1754944e-38, %v1358_v7  ;;  %v1340_v0 = vand.u32 2147483647, %v3705_v52 }
 0x66b   :  { %1550 = vmatpush.xpose.msrb.mxu0 %v1425_v39  ;;  %2688 = vmatpush.xpose.msk.msrb.mxu1 %vm950_vm12, %v1426_v34  ;;  %v1342_v22 = vand.u32 2147483648, %v3705_v52  ;;  %v1377_v39 = vmul.f32 %v3583_v9, %v1376_v23  ;;  %v1378_v34 = vmul.f32 %v3579_v44, %v1376_v23  ;;  %vm1357_vm1 = vcmp.eq.f32.partialorder %v1356_v5, 8.507059e+37 }
 0x66c   :  { %vm1336_vm2 = vweird.f32 %v3705_v52  ;;  %2877 = vrcp.f32 %v3667_v8  ;;  %v1268_v28 = vmul.f32 %v3845_v6, %v3697_v53  ;;  %v1302_v2 = vmul.f32 %v3803_v62, %v1301_v24 }
 0x66d   :  { %v1360_v58 = vsel %vm1357_vm1, %v1359_v48, %v1355_v12  ;;  %vm3872_vm3 = vmor %vm1336_vm2, %vm1337_vm0  ;;  %v1285_v9 = vsub.f32 1.0, %v1284_v16  ;;  %v1319_v52 = vadd.f32 %v3758_v32, %v1318_v47  ;;  %vm1321_vm4 = vweird.f32 %v3758_v32  ;;  %v3926_v16 = vpop.xlane.xlu1 %1197 }
 0x66e   :  { %v1339_v44 = vsel %vm3872_vm3, %v3743_v15, %v1335_v55  ;;  %2879 = vrcp.f32 %v3673_v33  ;;  %vm1341_vm5 = vcmp.eq.f32.partialorder %v1340_v0, 8.507059e+37  ;;  %v1343_v51 = vor.u32 1.1754944e-38, %v1342_v22 }
 0x66f   :  { %1551 = vmatpush.xpose.msrb.mxu0 %v1409_v45  ;;  %2689 = vmatpush.xpose.msk.msrb.mxu1 %vm950_vm12, %v1410_v19  ;;  %v1326_v41 = vand.u32 2147483648, %v3687_v63  ;;  %v1361_v18 = vmul.f32 %v3601_v27, %v1360_v58  ;;  %v1362_v49 = vmul.f32 %v3597_v56, %v1360_v58  ;;  %vm1320_vm7 = vweird.f32 %v3687_v63 }
 0x670   :  { %v1324_v15 = vand.u32 2147483647, %v3687_v63  ;;  %v1269_v61 = vsub.f32 1.0, %v1268_v28  ;;  %v1252_v29 = vmul.f32 %v3866_v42, %v3676_v59  ;;  %v1344_v45 = vsel %vm1341_vm5, %v1343_v51, %v1339_v44  ;;  %vm3892_vm8 = vmor %vm1320_vm7, %vm1321_vm4 }
 0x671   :  { %v1286_v17 = vmul.f32 %v3824_v46, %v1285_v9  ;;  %v1323_v56 = vsel %vm3892_vm8, %v3758_v32, %v1319_v52  ;;  %v1303_v27 = vadd.f32 %v3803_v62, %v1302_v2  ;;  %vm1305_vm9 = vweird.f32 %v3803_v62 }
 0x672   :  { %v3903_v63 = vpop.eup %2877  ;;  %v1236_v40 = vmul.f32 %v3882_v20, %v3691_v50  ;;  %v1327_v21 = vor.u32 1.1754944e-38, %v1326_v41  ;;  %v1308_v36 = vand.u32 2147483647, %v3701_v57  ;;  %v1310_v30 = vand.u32 2147483648, %v3701_v57 }
 0x673   :  { %1552 = vmatpush.xpose.msrb.mxu0 %v1393_v3  ;;  %2690 = vmatpush.xpose.msk.msrb.mxu1 %vm950_vm12, %v1394_v14  ;;  %v1345_v54 = vmul.f32 %v3565_v25, %v1344_v45  ;;  %v1346_v26 = vmul.f32 %v3561_v37, %v1344_v45  ;;  %vm1325_vm13 = vcmp.eq.f32.partialorder %v1324_v15, 8.507059e+37  ;;  %vm1304_vm14 = vweird.f32 %v3701_v57 }
 0x674   :  { %v3912_v32 = vpop.eup %2879  ;;  %v1270_v60 = vmul.f32 %v3845_v6, %v1269_v61  ;;  %v1328_v7 = vsel %vm1325_vm13, %v1327_v21, %v1323_v56  ;;  %vm3915_vm15 = vmor %vm1304_vm14, %vm1305_vm9  ;;  %v1253_v14 = vsub.f32 1.0, %v1252_v29  ;;  %v1287_v25 = vadd.f32 %v3824_v46, %v1286_v17  ;;  %v4939_v21 = vld [vmem:[#allocation10_spill] sm:$0xff] }
 0x675   :  { %v1307_v37 = vsel %vm3915_vm15, %v3803_v62, %v1303_v27  ;;  %vm1289_vm0 = vweird.f32 %v3824_v46  ;;  %v1237_v57 = vsub.f32 1.0, %v1236_v40  ;;  %vm1309_vm1 = vcmp.eq.f32.partialorder %v1308_v36, 8.507059e+37  ;;  %v4938_v27 = vld [vmem:[#allocation11_spill] sm:$0xff] }
 0x676   :  { %v1311_v5 = vor.u32 1.1754944e-38, %v1310_v30  ;;  %v1294_v24 = vand.u32 2147483648, %v3684_v1  ;;  %v1329_v23 = vmul.f32 %v3587_v43, %v1328_v7  ;;  %v1330_v38 = vmul.f32 %v3581_v4, %v1328_v7 }
 0x677   :  { %1553 = vmatpush.xpose.msrb.mxu0 %v1377_v39  ;;  %2691 = vmatpush.xpose.msk.msrb.mxu1 %vm950_vm12, %v1378_v34  ;;  %vm1288_vm2 = vweird.f32 %v3684_v1  ;;  %v1292_v47 = vand.u32 2147483647, %v3684_v1  ;;  %v1204_v62 = vmul.f32 %v3903_v63, %v3667_v8  ;;  %v1220_v12 = vmul.f32 %v3912_v32, %v3673_v33 }
 0x678   :  { %v1312_v55 = vsel %vm1309_vm1, %v1311_v5, %v1307_v37  ;;  %vm3936_vm3 = vmor %vm1288_vm2, %vm1289_vm0  ;;  %v1276_v0 = vand.u32 2147483647, %v3697_v53  ;;  %v1254_v43 = vmul.f32 %v3866_v42, %v1253_v14  ;;  %v1271_v1 = vadd.f32 %v3845_v6, %v1270_v60  ;;  %v4940_v14 = vld [vmem:[#allocation15_spill] sm:$0xff] }
 0x679   :  { %v1291_v4 = vsel %vm3936_vm3, %v3824_v46, %v1287_v25  ;;  %vm1273_vm4 = vweird.f32 %v3845_v6  ;;  %v1238_v22 = vmul.f32 %v3882_v20, %v1237_v57  ;;  %2881 = vrcp.f32 %v3926_v16  ;;  %v4941_v25 = vld [vmem:[#allocation14_spill] sm:$0xff] }
 0x67a   :  { %v1295_v39 = vor.u32 1.1754944e-38, %v1294_v24  ;;  %v1278_v34 = vand.u32 2147483648, %v3697_v53  ;;  %v1313_v28 = vmul.f32 %v3545_v13, %v1312_v55  ;;  %v1314_v2 = vmul.f32 %v3539_v10, %v1312_v55 }
 0x67b   :  { %1554 = vmatpush.xpose.msrb.mxu0 %v1361_v18  ;;  %2692 = vmatpush.xpose.msk.msrb.mxu1 %vm950_vm12, %v1362_v49  ;;  %vm1293_vm5 = vcmp.eq.f32.partialorder %v1292_v47, 8.507059e+37  ;;  %vm1272_vm7 = vweird.f32 %v3697_v53  ;;  %v1205_v58 = vsub.f32 1.0, %v1204_v62  ;;  %v1221_v46 = vsub.f32 1.0, %v1220_v12  ;;  %v4944_v62 = vld [vmem:[#allocation8_spill] sm:$0xff] }
 0x67c   :  { %v1296_v31 = vsel %vm1293_vm5, %v1295_v39, %v1291_v4  ;;  %vm3954_vm8 = vmor %vm1272_vm7, %vm1273_vm4  ;;  %v1255_v13 = vadd.f32 %v3866_v42, %v1254_v43  ;;  %vm1257_vm9 = vweird.f32 %v3866_v42  ;;  %vm1241_vm13 = vweird.f32 %v3882_v20  ;;  %v4945_v43 = vld [vmem:[#allocation9_spill] sm:$0xff] }
 0x67d   :  { %v1275_v44 = vsel %vm3954_vm8, %v3845_v6, %v1271_v1  ;;  %vm1277_vm14 = vcmp.eq.f32.partialorder %v1276_v0, 8.507059e+37  ;;  %v1279_v10 = vor.u32 1.1754944e-38, %v1278_v34  ;;  %v1262_v53 = vand.u32 2147483648, %v3676_v59  ;;  %v4946_v34 = vld [vmem:[#allocation12_spill] sm:$0xff] }
 0x67e   :  { %v1239_v52 = vadd.f32 %v3882_v20, %v1238_v22  ;;  %v1297_v51 = vmul.f32 %v3569_v11, %v1296_v31  ;;  %v1298_v41 = vmul.f32 %v3563_v35, %v1296_v31  ;;  %vm1256_vm15 = vweird.f32 %v3676_v59 }
 0x67f   :  { %1555 = vmatpush.xpose.msrb.mxu0 %v1345_v54  ;;  %2693 = vmatpush.xpose.msk.msrb.mxu1 %vm950_vm12, %v1346_v26  ;;  %v1260_v6 = vand.u32 2147483647, %v3676_v59  ;;  %v3971_v18 = vpop.eup %2881  ;;  %v1222_v49 = vmul.f32 %v3912_v32, %v1221_v46  ;;  %v1280_v15 = vsel %vm1277_vm14, %v1279_v10, %v1275_v44  ;;  %vm3974_vm0 = vmor %vm1256_vm15, %vm1257_vm9  ;;  %vm1240_vm1 = vweird.f32 %v3691_v50 }
 0x680   :  { %v1259_v35 = vsel %vm3974_vm0, %v3866_v42, %v1255_v13  ;;  %vm3985_vm2 = vmor %vm1240_vm1, %vm1241_vm13  ;;  %v1246_v59 = vand.u32 2147483648, %v3691_v50  ;;  %v1206_v29 = vmul.f32 %v3903_v63, %v1205_v58  ;;  %v1263_v45 = vor.u32 1.1754944e-38, %v1262_v53 }
 0x681   :  { %v1243_v19 = vsel %vm3985_vm2, %v3882_v20, %v1239_v52  ;;  %v1244_v17 = vand.u32 2147483647, %v3691_v50  ;;  %v1460_v42 = vmul.f32 %v3971_v18, %v3926_v16  ;;  %v1281_v40 = vmul.f32 %v4938_v27, %v1280_v15  ;;  %v4950_v52 = vld [vmem:[#allocation6_spill] sm:$0xff] }
 0x682   :  { %v1282_v36 = vmul.f32 %v4939_v21, %v1280_v15  ;;  %vm1261_vm3 = vcmp.eq.f32.partialorder %v1260_v6, 8.507059e+37  ;;  %v1223_v54 = vadd.f32 %v3912_v32, %v1222_v49  ;;  %vm1225_vm4 = vweird.f32 %v3912_v32  ;;  %v4951_v6 = vld [vmem:[#allocation7_spill] sm:$0xff] }
 0x683   :  { %1556 = vmatpush.xpose.msrb.mxu0 %v1329_v23  ;;  %2694 = vmatpush.xpose.msk.msrb.mxu1 %vm950_vm12, %v1330_v38  ;;  %v1264_v30 = vsel %vm1261_vm3, %v1263_v45, %v1259_v35  ;;  %v1247_v50 = vor.u32 1.1754944e-38, %v1246_v59  ;;  %v1230_v20 = vand.u32 2147483648, %v3673_v33  ;;  %vm1209_vm5 = vweird.f32 %v3903_v63  ;;  %v4952_v59 = vld [vmem:[#allocation20_spill] sm:$0xff] }
 0x684   :  { %v1214_v26 = vand.u32 2147483648, %v3667_v8  ;;  %vm1245_vm7 = vcmp.eq.f32.partialorder %v1244_v17, 8.507059e+37  ;;  %vm1224_vm8 = vweird.f32 %v3673_v33  ;;  %v1228_v60 = vand.u32 2147483647, %v3673_v33  ;;  %v4955_v17 = vld [vmem:[#allocation5_spill] sm:$0xff] }
 0x685   :  { %v1207_v7 = vadd.f32 %v3903_v63, %v1206_v29  ;;  %v1461_v3 = vsub.f32 1.0, %v1460_v42  ;;  %v1265_v37 = vmul.f32 %v4940_v14, %v1264_v30  ;;  %v1266_v57 = vmul.f32 %v4941_v25, %v1264_v30  ;;  %vm4015_vm9 = vmor %vm1224_vm8, %vm1225_vm4  ;;  %v4953_v29 = vld [vmem:[#allocation19_spill] sm:$0xff] }
 0x686   :  { %v1248_v5 = vsel %vm1245_vm7, %v1247_v50, %v1243_v19  ;;  %v1227_v23 = vsel %vm4015_vm9, %v3912_v32, %v1223_v54  ;;  %vm1208_vm13 = vweird.f32 %v3667_v8  ;;  %v1212_v33 = vand.u32 2147483647, %v3667_v8  ;;  %v4954_v19 = vld [vmem:[#allocation16_spill] sm:$0xff]  ;;  %v1706_v54 = vpop.permute.xlu1 %1705 }
 0x687   :  { %1557 = vmatpush.xpose.msrb.mxu0 %v1313_v28  ;;  %2695 = vmatpush.xpose.msk.msrb.mxu1 %vm950_vm12, %v1314_v2  ;;  %v1231_v38 = vor.u32 1.1754944e-38, %v1230_v20  ;;  %vm1210_vm14 = vmor %vm1208_vm13, %vm1209_vm5  ;;  %v1249_v12 = vmul.f32 %v4944_v62, %v1248_v5  ;;  %vm1229_vm15 = vcmp.eq.f32.partialorder %v1228_v60, 8.507059e+37  ;;  %v1215_v48 = vor.u32 1.1754944e-38, %v1214_v26  ;;  %v4947_v2 = vld [vmem:[#allocation13_spill] sm:$0xff] }
 0x688   :  { %v1211_v55 = vsel %vm1210_vm14, %v3903_v63, %v1207_v7  ;;  %v1462_v32 = vmul.f32 %v3971_v18, %v1461_v3  ;;  %v1250_v8 = vmul.f32 %v4945_v43, %v1248_v5  ;;  %vm1213_vm0 = vcmp.eq.f32.partialorder %v1212_v33, 8.507059e+37  ;;  %v4080_v3 = vpop.f32.mrf.mxu1  ;;  %v4958_v5 = vld [vmem:[#allocation2_spill] sm:$0xff] }
 0x689   :  { %v1232_v4 = vsel %vm1229_vm15, %v1231_v38, %v1227_v23  ;;  %v1216_v22 = vsel %vm1213_vm0, %v1215_v48, %v1211_v55  ;;  %vm1465_vm1 = vweird.f32 %v3971_v18  ;;  %vm1464_vm3 = vweird.f32 %v3926_v16 }
 0x68a   :  { %v1233_v28 = vmul.f32 %v4946_v34, %v1232_v4  ;;  %v1234_v63 = vmul.f32 %v4947_v2, %v1232_v4  ;;  %v1463_v31 = vadd.f32 %v3971_v18, %v1462_v32  ;;  %v1470_v9 = vand.u32 2147483648, %v3926_v16  ;;  %vm4043_vm5 = vmor %vm1464_vm3, %vm1465_vm1 }
 0x68b   :  { %1558 = vmatpush.xpose.msrb.mxu0 %v1297_v51  ;;  %2696 = vmatpush.xpose.msk.msrb.mxu1 %vm950_vm12, %v1298_v41  ;;  %v1468_v10 = vand.u32 2147483647, %v3926_v16  ;;  %v1217_v51 = vmul.f32 %v4950_v52, %v1216_v22  ;;  %v659_v41 = vpop.f32.mrf.mxu0  ;;  %v1218_v49 = vmul.f32 %v4951_v6, %v1216_v22  ;;  %v640_v42 = vadd.f32 %v4955_v17, %v4954_v19 }
 0x68c   :  { %v1467_v61 = vsel %vm4043_vm5, %v3971_v18, %v1463_v31  ;;  %v1471_v35 = vor.u32 1.1754944e-38, %v1470_v9 }
 0x68d   :  { %v3997_v56 = vpop.xlane.xlu0 %1201  ;;  %vm1469_vm9 = vcmp.eq.f32.partialorder %v1468_v10, 8.507059e+37 }
 0x68e   :  { %2883 = vrcp.f32 %v3997_v56  ;;  %v1486_v39 = vand.u32 2147483648, %v3997_v56  ;;  %v1484_v46 = vand.u32 2147483647, %v3997_v56  ;;  %vm1480_vm4 = vweird.f32 %v3997_v56 }
 0x68f   :  { %1559 = vmatpush.xpose.msrb.mxu0 %v1281_v40  ;;  %2697 = vmatpush.xpose.msk.msrb.mxu1 %vm950_vm12, %v1282_v36  ;;  %v1472_v27 = vsel %vm1469_vm9, %v1471_v35, %v1467_v61  ;;  %v4956_v40 = vld [vmem:[#allocation18_spill] sm:$0xff]  ;;  %v4957_v36 = vld [vmem:[#allocation17_spill] sm:$0xff] }
 0x690   :  { %v1487_v53 = vor.u32 1.1754944e-38, %v1486_v39  ;;  %vm1485_vm8 = vcmp.eq.f32.partialorder %v1484_v46, 8.507059e+37  ;;  %v1473_v21 = vmul.f32 %v4956_v40, %v1472_v27  ;;  %v1474_v30 = vmul.f32 %v4957_v36, %v1472_v27 }
 0x693   :  { %1560 = vmatpush.xpose.msrb.mxu0 %v1265_v37  ;;  %2698 = vmatpush.xpose.msk.msrb.mxu1 %vm950_vm12, %v1266_v57 }
 0x694   :  { %v2884_v47 = vpop.eup %2883 }
 0x695   :  { %v1476_v0 = vmul.f32 %v2884_v47, %v3997_v56  ;;  %vm1481_vm2 = vweird.f32 %v2884_v47  ;;  %v4059_v56 = vadd.f32 %v659_v41, %v4954_v19 }
 0x696   :  { %vm1482_vm7 = vmor %vm1480_vm4, %vm1481_vm2 }
 0x697   :  { %v1477_v1 = vsub.f32 1.0, %v1476_v0  ;;  %1561 = vmatpush.xpose.msrb.mxu0 %v1249_v12  ;;  %2699 = vmatpush.xpose.msk.msrb.mxu1 %vm950_vm12, %v1250_v8 }
 0x699   :  { %v1478_v58 = vmul.f32 %v2884_v47, %v1477_v1 }
 0x69b   :  { %v1479_v44 = vadd.f32 %v2884_v47, %v1478_v58  ;;  %1562 = vmatpush.xpose.msrb.mxu0 %v1233_v28  ;;  %2700 = vmatpush.xpose.msk.msrb.mxu1 %vm950_vm12, %v1234_v63 }
 0x69d   :  { %v1483_v15 = vsel %vm1482_vm7, %v2884_v47, %v1479_v44 }
 0x69e   :  { %v1488_v11 = vsel %vm1485_vm8, %v1487_v53, %v1483_v15 }
 0x69f   :  { %1563 = vmatpush.xpose.msrb.mxu0 %v1217_v51  ;;  %2701 = vmatpush.xpose.msk.msrb.mxu1 %vm950_vm12, %v1218_v49  ;;  %v1489_v16 = vmul.f32 %v4952_v59, %v1488_v11  ;;  %v1490_v45 = vmul.f32 %v4953_v29, %v1488_v11 }
 0x6a0   :  { %v1704_v18 = vpop.permute.xlu0 %1703 }
 0x6a1   :  { %v1707_v50 = vsel %vm1634_vm6, %v1704_v18, %v1706_v54 }
 0x6a2   :  { %1564 = vmatmul.f32.vlgmr.msrb.gmra.mxu0 %v640_v42  ;;  %2702 = vmatmul.msk.f32.vlgmr.msrb.gmra.mxu1 %vm950_vm12, %v4059_v56 }
 0x6a3   :  { %1602 = vmatpush.xpose.msra.mxu0 %v1489_v16  ;;  %2703 = vmatpush.xpose.msk.msra.mxu1 %vm950_vm12, %v1490_v45 }
 0x6a7   :  { %1603 = vmatpush.xpose.msra.mxu0 %v1473_v21  ;;  %2704 = vmatpush.xpose.msk.msra.mxu1 %vm950_vm12, %v1474_v30 }
 0x6aa   :  { %1604 = vmatmul.f32.vlgmr.msra.gmra.mxu0 %v640_v42  ;;  %2705 = vmatmul.msk.f32.vlgmr.msra.gmra.mxu1 %vm950_vm12, %v4059_v56 }
 0x6ab   :  { %2706 = vmatpush.msk.msrb.mxu0 %vm801_vm10, %v1707_v50  ;;  %2725 = vmatpush.msk.msrb.mxu1 %vm801_vm10, %v1706_v54 }
 0x6fd   :  { %v1654_v20 = vpop.trf.xlu2 }
 0x6fe   :  { %2707 = vmatmul.msk.f32.vlgmr.msrb.gmra.mxu0 %vm746_vm11, %v1654_v20  ;;  %2726 = vmatmul.msk.f32.vlgmr.msrb.gmra.mxu1 %vm746_vm11, %v1654_v20 }
 0x705   :  { %v1655_v26 = vpop.trf.xlu2 }
 0x706   :  { %2708 = vmatmul.msk.f32.gmra.mxu0 %vm746_vm11, %v1655_v26  ;;  %2727 = vmatmul.msk.f32.gmra.mxu1 %vm746_vm11, %v1655_v26 }
 0x708   :  { %v1686_v1 = vpop.trf.xlu0 }
 0x70d   :  { %v1656_v60 = vpop.trf.xlu2 }
 0x70e   :  { %2709 = vmatmul.msk.f32.gmra.mxu0 %vm746_vm11, %v1656_v60  ;;  %2728 = vmatmul.msk.f32.gmra.mxu1 %vm746_vm11, %v1656_v60 }
 0x710   :  { %v1687_v34 = vpop.trf.xlu0 }
 0x715   :  { %v1657_v7 = vpop.trf.xlu2 }
 0x716   :  { %2710 = vmatmul.msk.f32.gmra.mxu0 %vm746_vm11, %v1657_v7  ;;  %2729 = vmatmul.msk.f32.gmra.mxu1 %vm746_vm11, %v1657_v7 }
 0x71d   :  { %v1658_v14 = vpop.trf.xlu2 }
 0x71e   :  { %2711 = vmatmul.msk.f32.gmra.mxu0 %vm746_vm11, %v1658_v14  ;;  %2730 = vmatmul.msk.f32.gmra.mxu1 %vm746_vm11, %v1658_v14 }
 0x71f   :  { %v1565_v37 = vpop.f32.mrf.mxu0  ;;  %v1585_v25 = vpop.f32.mrf.mxu1 }
 0x720   :  { %v1586_v57 = vadd.f32 %v1585_v25, %v1565_v37 }
 0x722   :  { %v2601_v24 = vadd.f32 %v1586_v57, %v4958_v5 }
 0x724   :  { %2604 = vst [vmem:[%s4868_s10] sm:$0x3f] %v2601_v24 }
 0x725   :  { %v1659_v23 = vpop.trf.xlu2 }
 0x726   :  { %2712 = vmatmul.msk.f32.gmra.mxu0 %vm746_vm11, %v1659_v23  ;;  %2731 = vmatmul.msk.f32.gmra.mxu1 %vm746_vm11, %v1659_v23 }
 0x727   :  { %v4108_v43 = vpop.f32.mrf.mxu0  ;;  %v4110_v8 = vpop.f32.mrf.mxu1 }
 0x728   :  { %4959 = vst [vmem:[#allocation11_spill] sm:$0xff] %v4108_v43 }
 0x729   :  { %4960 = vst [vmem:[#allocation10_spill] sm:$0xff] %v4110_v8 }
 0x72d   :  { %v1660_v33 = vpop.trf.xlu2 }
 0x72e   :  { %2713 = vmatmul.msk.f32.gmra.mxu0 %vm746_vm11, %v1660_v33  ;;  %2732 = vmatmul.msk.f32.gmra.mxu1 %vm746_vm11, %v1660_v33 }
 0x735   :  { %v1661_v38 = vpop.trf.xlu2 }
 0x736   :  { %2714 = vmatmul.msk.f32.gmra.mxu0 %vm746_vm11, %v1661_v38  ;;  %2733 = vmatmul.msk.f32.gmra.mxu1 %vm746_vm11, %v1661_v38 }
 0x73d   :  { %v1662_v47 = vpop.trf.xlu2 }
 0x73e   :  { %2715 = vmatmul.msk.f32.gmra.mxu0 %vm746_vm11, %v1662_v47  ;;  %2734 = vmatmul.msk.f32.gmra.mxu1 %vm746_vm11, %v1662_v47 }
 0x745   :  { %v1663_v62 = vpop.trf.xlu2 }
 0x746   :  { %2716 = vmatmul.msk.f32.gmra.mxu0 %vm746_vm11, %v1663_v62  ;;  %2735 = vmatmul.msk.f32.gmra.mxu1 %vm746_vm11, %v1663_v62 }
 0x74d   :  { %v1664_v12 = vpop.trf.xlu2 }
 0x74e   :  { %2717 = vmatmul.msk.f32.gmra.mxu0 %vm746_vm11, %v1664_v12  ;;  %2736 = vmatmul.msk.f32.gmra.mxu1 %vm746_vm11, %v1664_v12 }
 0x755   :  { %v1665_v55 = vpop.trf.xlu2 }
 0x756   :  { %2718 = vmatmul.msk.f32.gmra.mxu0 %vm746_vm11, %v1665_v55  ;;  %2737 = vmatmul.msk.f32.gmra.mxu1 %vm746_vm11, %v1665_v55 }
 0x75d   :  { %v1666_v48 = vpop.trf.xlu2 }
 0x75e   :  { %2719 = vmatmul.msk.f32.gmra.mxu0 %vm746_vm11, %v1666_v48  ;;  %2738 = vmatmul.msk.f32.gmra.mxu1 %vm746_vm11, %v1666_v48 }
 0x765   :  { %v1667_v32 = vpop.trf.xlu2 }
 0x766   :  { %2739 = vmatmul.msk.f32.gmra.mxu1 %vm746_vm11, %v1667_v32  ;;  %2720 = vmatmul.msk.f32.gmra.mxu0 %vm746_vm11, %v1667_v32 }
 0x76d   :  { %v1668_v0 = vpop.trf.xlu2 }
 0x76e   :  { %2740 = vmatmul.msk.f32.gmra.mxu1 %vm746_vm11, %v1668_v0  ;;  %2721 = vmatmul.msk.f32.gmra.mxu0 %vm746_vm11, %v1668_v0 }
 0x775   :  { %v1669_v4 = vpop.trf.xlu2 }
 0x776   :  { %2741 = vmatmul.msk.f32.gmra.mxu1 %vm746_vm11, %v1669_v4  ;;  %2722 = vmatmul.msk.f32.gmra.mxu0 %vm746_vm11, %v1669_v4 }
 0x77b   :  { %v4114_v22 = vpop.f32.mrf.mxu0  ;;  %v4116_v39 = vpop.f32.mrf.mxu1 }
 0x77c   :  { %v1908_v14 = vsel %vm950_vm12, %v4116_v39, -inf }
 0x77d   :  { %v1909_v24 = vmax.f32 %v4114_v22, %v1908_v14 }
 0x77e   :  { %2742 = vmatmul.msk.f32.gmra.mxu1 %vm746_vm11, %v1686_v1  ;;  %2723 = vmatmul.msk.f32.gmra.mxu0 %vm746_vm11, %v1686_v1 }
 0x783   :  { %v4120_v28 = vpop.f32.mrf.mxu0  ;;  %v4122_v2 = vpop.f32.mrf.mxu1 }
 0x786   :  { %2743 = vmatmul.msk.f32.gmra.mxu1 %vm746_vm11, %v1687_v34  ;;  %2724 = vmatmul.msk.f32.gmra.mxu0 %vm746_vm11, %v1687_v34 }
 0x78b   :  { %v4126_v63 = vpop.f32.mrf.mxu0  ;;  %v4128_v58 = vpop.f32.mrf.mxu1 }
 0x793   :  { %v4130_v46 = vpop.f32.mrf.mxu0  ;;  %v4132_v31 = vpop.f32.mrf.mxu1 }
 0x79b   :  { %v4134_v9 = vpop.f32.mrf.mxu0  ;;  %v4136_v44 = vpop.f32.mrf.mxu1 }
 0x7a3   :  { %v4138_v13 = vpop.f32.mrf.mxu0  ;;  %v4140_v10 = vpop.f32.mrf.mxu1 }
 0x7ab   :  { %v4142_v53 = vpop.f32.mrf.mxu0  ;;  %v4144_v52 = vpop.f32.mrf.mxu1 }
 0x7ac   :  { %v1932_v34 = vsel %vm950_vm12, %v4144_v52, -inf }
 0x7b3   :  { %v4146_v51 = vpop.f32.mrf.mxu0  ;;  %v4148_v41 = vpop.f32.mrf.mxu1 }
 0x7b4   :  { %v1936_v55 = vsel %vm950_vm12, %v4148_v41, -inf }
 0x7b5   :  { %v1937_v4 = vmax.f32 %v4146_v51, %v1936_v55 }
 0x7bb   :  { %v4150_v6 = vpop.f32.mrf.mxu0  ;;  %v4152_v49 = vpop.f32.mrf.mxu1 }
 0x7bc   :  { %v1940_v23 = vsel %vm950_vm12, %v4152_v49, -inf }
 0x7bd   :  { %v1941_v62 = vmax.f32 %v4150_v6, %v1940_v23 }
 0x7c3   :  { %v4154_v15 = vpop.f32.mrf.mxu0  ;;  %v4156_v61 = vpop.f32.mrf.mxu1 }
 0x7c4   :  { %v1944_v37 = vsel %vm950_vm12, %v4156_v61, -inf }
 0x7c5   :  { %v1945_v5 = vmax.f32 %v4154_v15, %v1944_v37  ;;  %v1912_v37 = vsel %vm950_vm12, %v4122_v2, -inf }
 0x7cb   :  { %v4158_v35 = vpop.f32.mrf.mxu0  ;;  %v4160_v11 = vpop.f32.mrf.mxu1 }
 0x7cc   :  { %v1948_v54 = vsel %vm950_vm12, %v4160_v11, -inf }
 0x7cd   :  { %v1949_v60 = vmax.f32 %v4158_v35, %v1948_v54 }
 0x7d3   :  { %v4162_v59 = vpop.f32.mrf.mxu0  ;;  %v4164_v16 = vpop.f32.mrf.mxu1 }
 0x7d4   :  { %v1952_v27 = vsel %vm950_vm12, %v4164_v16, -inf }
 0x7d5   :  { %v1953_v36 = vmax.f32 %v4162_v59, %v1952_v27 }
 0x7db   :  { %v4166_v29 = vpop.f32.mrf.mxu0  ;;  %v4168_v45 = vpop.f32.mrf.mxu1 }
 0x7dc   :  { %v1956_v17 = vsel %vm950_vm12, %v4168_v45, -inf }
 0x7dd   :  { %v1957_v42 = vmax.f32 %v4166_v29, %v1956_v17  ;;  %v1933_v17 = vmax.f32 %v4142_v53, %v1932_v34 }
 0x7df   :  { %1958 = vmax.xlane.f32.xlu1 %v1957_v42  ;;  %v1928_v42 = vsel %vm950_vm12, %v4140_v10, -inf }
 0x7e0   :  { %v1929_v27 = vmax.f32 %v4138_v13, %v1928_v42 }
 0x7e3   :  { %v4175_v18 = vpop.f32.mrf.mxu1  ;;  %v4177_v40 = vpop.f32.mrf.mxu0 }
 0x7e4   :  { %v1960_v21 = vsel %vm950_vm12, %v4175_v18, -inf }
 0x7e5   :  { %v1961_v30 = vmax.f32 %v4177_v40, %v1960_v21  ;;  %v1924_v21 = vsel %vm950_vm12, %v4136_v44, -inf }
 0x7e7   :  { %1954 = vmax.xlane.f32.xlu1 %v1953_v36  ;;  %1962 = vmax.xlane.f32.xlu2 %v1961_v30  ;;  %v1925_v36 = vmax.f32 %v4134_v9, %v1924_v21  ;;  %v1920_v30 = vsel %vm950_vm12, %v4132_v31, -inf }
 0x7e8   :  { %v1921_v54 = vmax.f32 %v4130_v46, %v1920_v30 }
 0x7eb   :  { %v4185_v50 = vpop.f32.mrf.mxu1  ;;  %v4187_v20 = vpop.f32.mrf.mxu0 }
 0x7ec   :  { %v1964_v26 = vsel %vm950_vm12, %v4185_v50, -inf }
 0x7ed   :  { %v1965_v7 = vmax.f32 %v4187_v20, %v1964_v26  ;;  %v1916_v26 = vsel %vm950_vm12, %v4128_v58, -inf }
 0x7ef   :  { %1950 = vmax.xlane.f32.xlu1 %v1949_v60  ;;  %1966 = vmax.xlane.f32.xlu0 %v1965_v7  ;;  %v1917_v60 = vmax.f32 %v4126_v63, %v1916_v26 }
 0x7f3   :  { %v4197_v25 = vpop.f32.mrf.mxu1  ;;  %v4199_v57 = vpop.f32.mrf.mxu0 }
 0x7f4   :  { %v1968_v7 = vsel %vm950_vm12, %v4197_v25, -inf }
 0x7f5   :  { %v1969_v14 = vmax.f32 %v4199_v57, %v1968_v7 }
 0x7f7   :  { %1946 = vmax.xlane.f32.xlu1 %v1945_v5  ;;  %1910 = vmax.xlane.f32.xlu0 %v1909_v24  ;;  %v1913_v5 = vmax.f32 %v4120_v28, %v1912_v37 }
 0x7fb   :  { %v4205_v33 = vpop.f32.mrf.mxu1  ;;  %v4207_v38 = vpop.f32.mrf.mxu0 }
 0x7fc   :  { %v1972_v47 = vsel %vm950_vm12, %v4205_v33, -inf }
 0x7fd   :  { %v1973_v12 = vmax.f32 %v4207_v38, %v1972_v47 }
 0x7ff   :  { %1942 = vmax.xlane.f32.xlu1 %v1941_v62  ;;  %1974 = vmax.xlane.f32.xlu0 %v1973_v12 }
 0x803   :  { %v4215_v48 = vpop.f32.mrf.mxu1  ;;  %v4217_v32 = vpop.f32.mrf.mxu0 }
 0x804   :  { %v1976_v0 = vsel %vm950_vm12, %v4215_v48, -inf }
 0x805   :  { %v1977_v1 = vmax.f32 %v4217_v32, %v1976_v0 }
 0x807   :  { %1938 = vmax.xlane.f32.xlu1 %v1937_v4  ;;  %1978 = vmax.xlane.f32.xlu0 %v1977_v1 }
 0x80f   :  { %1934 = vmax.xlane.f32.xlu1 %v1933_v17 }
 0x817   :  { %1930 = vmax.xlane.f32.xlu1 %v1929_v27 }
 0x81f   :  { %1926 = vmax.xlane.f32.xlu1 %v1925_v36 }
 0x827   :  { %1922 = vmax.xlane.f32.xlu1 %v1921_v54 }
 0x82f   :  { %1918 = vmax.xlane.f32.xlu1 %v1917_v60 }
 0x837   :  { %1970 = vmax.xlane.f32.xlu1 %v1969_v14 }
 0x83f   :  { %1914 = vmax.xlane.f32.xlu1 %v1913_v5 }
 0x852   :  { %v1959_v24 = vpop.xlane.xlu1 %1958 }
 0x853   :  { %v2005_v21 = vsub.f32 %v4168_v45, %v1959_v24 }
 0x855   :  { %v2066_v60 = vmul.f32 1.442695, %v2005_v21 }
 0x85a   :  { %v1955_v23 = vpop.xlane.xlu1 %1954  ;;  %v1963_v45 = vpop.xlane.xlu2 %1962 }
 0x85b   :  { %v2003_v0 = vsub.f32 %v4164_v16, %v1955_v23  ;;  %v2002_v34 = vsub.f32 %v4162_v59, %v1955_v23  ;;  %v2004_v59 = vsub.f32 %v4166_v29, %v1959_v24 }
 0x85d   :  { %v2062_v17 = vmul.f32 1.442695, %v2003_v0  ;;  %v2060_v42 = vmul.f32 1.442695, %v2002_v34  ;;  %v2064_v37 = vmul.f32 1.442695, %v2004_v59 }
 0x862   :  { %v1951_v47 = vpop.xlane.xlu1 %1950  ;;  %v1967_v34 = vpop.xlane.xlu0 %1966 }
 0x863   :  { %v2000_v7 = vsub.f32 %v4158_v35, %v1951_v47  ;;  %v2007_v35 = vsub.f32 %v4175_v18, %v1963_v45 }
 0x865   :  { %v2056_v29 = vmul.f32 1.442695, %v2000_v7  ;;  %v2070_v0 = vmul.f32 1.442695, %v2007_v35 }
 0x86a   :  { %v1947_v62 = vpop.xlane.xlu1 %1946 }
 0x86b   :  { %v1998_v12 = vsub.f32 %v4154_v15, %v1947_v62  ;;  %v1999_v55 = vsub.f32 %v4156_v61, %v1947_v62  ;;  %v2001_v15 = vsub.f32 %v4160_v11, %v1951_v47 }
 0x86d   :  { %v2052_v4 = vmul.f32 1.442695, %v1998_v12  ;;  %v2054_v1 = vmul.f32 1.442695, %v1999_v55  ;;  %v2006_v12 = vsub.f32 %v4177_v40, %v1963_v45 }
 0x86f   :  { %2885 = vpow2.f32 %v2052_v4 }
 0x870   :  { %2887 = vpow2.f32 %v2054_v1 }
 0x871   :  { %2889 = vpow2.f32 %v2062_v17 }
 0x872   :  { %v1943_v27 = vpop.xlane.xlu1 %1942  ;;  %2891 = vpow2.f32 %v2060_v42  ;;  %v2068_v42 = vmul.f32 1.442695, %v2006_v12 }
 0x873   :  { %v1996_v36 = vsub.f32 %v4150_v6, %v1943_v27  ;;  %v1997_v30 = vsub.f32 %v4152_v49, %v1943_v27  ;;  %v2058_v49 = vmul.f32 1.442695, %v2001_v15 }
 0x875   :  { %v4252_v61 = vpop.eup %2885  ;;  %v2048_v16 = vmul.f32 1.442695, %v1996_v36  ;;  %v2050_v54 = vmul.f32 1.442695, %v1997_v30  ;;  %v2009_v30 = vsub.f32 %v4185_v50, %v1967_v34 }
 0x876   :  { %v4254_v26 = vpop.eup %2887 }
 0x877   :  { %2893 = vpow2.f32 %v2048_v16  ;;  %v2124_v6 = vsel %vm950_vm12, %v4254_v26, 0.0  ;;  %v4261_v14 = vpop.eup %2889 }
 0x878   :  { %2895 = vpow2.f32 %v2050_v54  ;;  %v2125_v11 = vadd.f32 %v4252_v61, %v2124_v6  ;;  %v4265_v24 = vpop.eup %2891  ;;  %v2132_v47 = vsel %vm950_vm12, %v4261_v14, 0.0 }
 0x879   :  { %2897 = vpow2.f32 %v2066_v60  ;;  %v2133_v4 = vadd.f32 %v4265_v24, %v2132_v47 }
 0x87a   :  { %2126 = vadd.xlane.f32.xlu1 %v2125_v11  ;;  %v4263_v5 = vpop.xlane.xlu1 %1938  ;;  %2899 = vpow2.f32 %v2058_v49 }
 0x87b   :  { %2901 = vpow2.f32 %v2064_v37 }
 0x87c   :  { %2903 = vpow2.f32 %v2056_v29 }
 0x87d   :  { %v4268_v23 = vpop.eup %2893  ;;  %2905 = vpow2.f32 %v2070_v0 }
 0x87e   :  { %v4272_v62 = vpop.eup %2895  ;;  %2907 = vpow2.f32 %v2068_v42 }
 0x87f   :  { %v2120_v55 = vsel %vm950_vm12, %v4272_v62, 0.0  ;;  %v4279_v1 = vpop.eup %2897 }
 0x880   :  { %v2121_v18 = vadd.f32 %v4268_v23, %v2120_v55  ;;  %v4281_v17 = vpop.eup %2899  ;;  %v2136_v59 = vsel %vm950_vm12, %v4279_v1, 0.0 }
 0x881   :  { %v4285_v36 = vpop.eup %2901  ;;  %v2128_v60 = vsel %vm950_vm12, %v4281_v17, 0.0 }
 0x882   :  { %2134 = vadd.xlane.f32.xlu1 %v2133_v4  ;;  %2122 = vadd.xlane.f32.xlu0 %v2121_v18  ;;  %v1935_v27 = vpop.xlane.xlu1 %1934  ;;  %v4288_v15 = vpop.eup %2903  ;;  %v2137_v7 = vadd.f32 %v4285_v36, %v2136_v59 }
 0x883   :  { %v1992_v40 = vsub.f32 %v4142_v53, %v1935_v27  ;;  %v1993_v21 = vsub.f32 %v4144_v52, %v1935_v27  ;;  %v2008_v53 = vsub.f32 %v4187_v20, %v1967_v34  ;;  %v2074_v52 = vmul.f32 1.442695, %v2009_v30  ;;  %v4297_v6 = vpop.eup %2905 }
 0x884   :  { %v2129_v50 = vadd.f32 %v4288_v15, %v2128_v60  ;;  %v4301_v45 = vpop.eup %2907  ;;  %v2140_v20 = vsel %vm950_vm12, %v4297_v6, 0.0 }
 0x885   :  { %v2040_v16 = vmul.f32 1.442695, %v1992_v40  ;;  %v2042_v54 = vmul.f32 1.442695, %v1993_v21  ;;  %v2072_v11 = vmul.f32 1.442695, %v2008_v53  ;;  %v2141_v47 = vadd.f32 %v4301_v45, %v2140_v20 }
 0x887   :  { %2909 = vpow2.f32 %v2040_v16 }
 0x888   :  { %2911 = vpow2.f32 %v2042_v54 }
 0x889   :  { %2913 = vpow2.f32 %v2074_v52 }
 0x88a   :  { %2138 = vadd.xlane.f32.xlu1 %v2137_v7  ;;  %2130 = vadd.xlane.f32.xlu0 %v2129_v50  ;;  %v4299_v49 = vpop.xlane.xlu1 %1930  ;;  %2915 = vpow2.f32 %v2072_v11 }
 0x88d   :  { %v4303_v37 = vpop.eup %2909 }
 0x88e   :  { %v4307_v29 = vpop.eup %2911 }
 0x88f   :  { %v2112_v35 = vsel %vm950_vm12, %v4307_v29, 0.0  ;;  %v4313_v55 = vpop.eup %2913 }
 0x890   :  { %v2113_v12 = vadd.f32 %v4303_v37, %v2112_v35  ;;  %v4317_v34 = vpop.eup %2915  ;;  %v2144_v40 = vsel %vm950_vm12, %v4313_v55, 0.0 }
 0x891   :  { %v2145_v21 = vadd.f32 %v4317_v34, %v2144_v40 }
 0x892   :  { %2142 = vadd.xlane.f32.xlu1 %v2141_v47  ;;  %2114 = vadd.xlane.f32.xlu0 %v2113_v12  ;;  %v1927_v0 = vpop.xlane.xlu1 %1926 }
 0x893   :  { %v1988_v4 = vsub.f32 %v4134_v9, %v1927_v0  ;;  %v1989_v18 = vsub.f32 %v4136_v44, %v1927_v0  ;;  %v1911_v9 = vpop.xlane.xlu0 %1910 }
 0x894   :  { %v1981_v7 = vsub.f32 %v4116_v39, %v1911_v9  ;;  %v1980_v20 = vsub.f32 %v4114_v22, %v1911_v9  ;;  %v1995_v39 = vsub.f32 %v4148_v41, %v4263_v5 }
 0x895   :  { %v2032_v42 = vmul.f32 1.442695, %v1988_v4  ;;  %v2034_v27 = vmul.f32 1.442695, %v1989_v18 }
 0x896   :  { %v2018_v35 = vmul.f32 1.442695, %v1981_v7  ;;  %v2016_v12 = vmul.f32 1.442695, %v1980_v20 }
 0x897   :  { %2917 = vpow2.f32 %v2032_v42 }
 0x898   :  { %2919 = vpow2.f32 %v2034_v27 }
 0x89a   :  { %2146 = vadd.xlane.f32.xlu1 %v2145_v21  ;;  %v4322_v30 = vpop.xlane.xlu1 %1922  ;;  %v2046_v21 = vmul.f32 1.442695, %v1995_v39 }
 0x89b   :  { %v1975_v47 = vpop.xlane.xlu0 %1974 }
 0x89c   :  { %v2012_v40 = vsub.f32 %v4207_v38, %v1975_v47 }
 0x89d   :  { %v4324_v16 = vpop.eup %2917 }
 0x89e   :  { %v4326_v54 = vpop.eup %2919 }
 0x89f   :  { %v2104_v44 = vsel %vm950_vm12, %v4326_v54, 0.0 }
 0x8a0   :  { %v2105_v59 = vadd.f32 %v4324_v16, %v2104_v44  ;;  %v2080_v44 = vmul.f32 1.442695, %v2012_v40 }
 0x8a2   :  { %2106 = vadd.xlane.f32.xlu0 %v2105_v59  ;;  %v1919_v60 = vpop.xlane.xlu1 %1918 }
 0x8a3   :  { %v1984_v53 = vsub.f32 %v4126_v63, %v1919_v60  ;;  %v1985_v52 = vsub.f32 %v4128_v58, %v1919_v60  ;;  %v2013_v63 = vsub.f32 %v4205_v33, %v1975_v47 }
 0x8a5   :  { %v2024_v50 = vmul.f32 1.442695, %v1984_v53  ;;  %v2026_v11 = vmul.f32 1.442695, %v1985_v52  ;;  %v2082_v33 = vmul.f32 1.442695, %v2013_v63  ;;  %v1990_v52 = vsub.f32 %v4138_v13, %v4299_v49 }
 0x8a6   :  { %v1987_v13 = vsub.f32 %v4132_v31, %v4322_v30 }
 0x8a7   :  { %2921 = vpow2.f32 %v2024_v50  ;;  %v2036_v47 = vmul.f32 1.442695, %v1990_v52 }
 0x8a8   :  { %2923 = vpow2.f32 %v2026_v11  ;;  %v2030_v63 = vmul.f32 1.442695, %v1987_v13 }
 0x8a9   :  { %2925 = vpow2.f32 %v2018_v35 }
 0x8aa   :  { %v1971_v0 = vpop.xlane.xlu1 %1970  ;;  %2927 = vpow2.f32 %v2016_v12 }
 0x8ab   :  { %v2010_v4 = vsub.f32 %v4199_v57, %v1971_v0  ;;  %v2011_v18 = vsub.f32 %v4197_v25, %v1971_v0  ;;  %v1994_v57 = vsub.f32 %v4146_v51, %v4263_v5  ;;  %v1991_v51 = vsub.f32 %v4140_v10, %v4299_v49 }
 0x8ad   :  { %v4340_v58 = vpop.eup %2921  ;;  %v2076_v42 = vmul.f32 1.442695, %v2010_v4  ;;  %v2078_v22 = vmul.f32 1.442695, %v2011_v18  ;;  %v2044_v59 = vmul.f32 1.442695, %v1994_v57  ;;  %v1986_v18 = vsub.f32 %v4130_v46, %v4322_v30 }
 0x8ae   :  { %v4342_v27 = vpop.eup %2923  ;;  %v2038_v50 = vmul.f32 1.442695, %v1991_v51 }
 0x8af   :  { %2929 = vpow2.f32 %v2076_v42  ;;  %v2096_v25 = vsel %vm950_vm12, %v4342_v27, 0.0  ;;  %v4350_v9 = vpop.eup %2925  ;;  %v2028_v31 = vmul.f32 1.442695, %v1986_v18 }
 0x8b0   :  { %2931 = vpow2.f32 %v2078_v22  ;;  %v2097_v41 = vadd.f32 %v4340_v58, %v2096_v25  ;;  %4961 = vst [vmem:[#allocation15_spill] sm:$0xff] %v4350_v9  ;;  %v4352_v60 = vpop.eup %2927  ;;  %v2088_v5 = vsel %vm950_vm12, %v4350_v9, 0.0 }
 0x8b1   :  { %2933 = vpow2.f32 %v2082_v33  ;;  %4962 = vst [vmem:[#allocation14_spill] sm:$0xff] %v4352_v60  ;;  %v2089_v10 = vadd.f32 %v4352_v60, %v2088_v5 }
 0x8b2   :  { %2098 = vadd.xlane.f32.xlu0 %v2097_v41  ;;  %2935 = vpow2.f32 %v2046_v21  ;;  %v1915_v22 = vpop.xlane.xlu1 %1914  ;;  %v1979_v41 = vpop.xlane.xlu0 %1978 }
 0x8b3   :  { %2937 = vpow2.f32 %v2080_v44  ;;  %v1983_v57 = vsub.f32 %v4122_v2, %v1915_v22  ;;  %v1982_v46 = vsub.f32 %v4120_v28, %v1915_v22  ;;  %v2015_v51 = vsub.f32 %v4215_v48, %v1979_v41 }
 0x8b4   :  { %2939 = vpow2.f32 %v2044_v59  ;;  %v2014_v52 = vsub.f32 %v4217_v32, %v1979_v41 }
 0x8b5   :  { %v4356_v38 = vpop.eup %2929  ;;  %2941 = vpow2.f32 %v2038_v50  ;;  %v2022_v30 = vmul.f32 1.442695, %v1983_v57  ;;  %v2020_v59 = vmul.f32 1.442695, %v1982_v46  ;;  %v2086_v28 = vmul.f32 1.442695, %v2015_v51 }
 0x8b6   :  { %v4360_v53 = vpop.eup %2931  ;;  %2943 = vpow2.f32 %v2036_v47 }
 0x8b7   :  { %v2148_v7 = vsel %vm950_vm12, %v4360_v53, 0.0  ;;  %v4368_v20 = vpop.eup %2933  ;;  %2945 = vpow2.f32 %v2030_v63 }
 0x8b8   :  { %v2149_v11 = vadd.f32 %v4356_v38, %v2148_v7  ;;  %4963 = vst [vmem:[#allocation8_spill] sm:$0xff] %v4368_v20  ;;  %v4370_v35 = vpop.eup %2935  ;;  %v2152_v4 = vsel %vm950_vm12, %v4368_v20, 0.0  ;;  %2947 = vpow2.f32 %v2028_v31 }
 0x8b9   :  { %v4372_v12 = vpop.eup %2937  ;;  %v2116_v0 = vsel %vm950_vm12, %v4370_v35, 0.0  ;;  %2949 = vpow2.f32 %v2022_v30 }
 0x8ba   :  { %2150 = vadd.xlane.f32.xlu1 %v2149_v11  ;;  %2090 = vadd.xlane.f32.xlu0 %v2089_v10  ;;  %4964 = vst [vmem:[#allocation9_spill] sm:$0xff] %v4372_v12  ;;  %v4376_v49 = vpop.eup %2939  ;;  %v2153_v42 = vadd.f32 %v4372_v12, %v2152_v4  ;;  %2951 = vpow2.f32 %v2020_v59  ;;  %v2084_v11 = vmul.f32 1.442695, %v2014_v52  ;;  %v680_v10 = vadd.f32 %v4080_v3, %v4954_v19 }
 0x8bb   :  { %v2117_v39 = vadd.f32 %v4376_v49, %v2116_v0  ;;  %v4386_v40 = vpop.eup %2941  ;;  %2953 = vpow2.f32 %v2086_v28 }
 0x8bc   :  { %v4389_v25 = vpop.eup %2943  ;;  %v2108_v33 = vsel %vm950_vm12, %v4386_v40, 0.0  ;;  %2955 = vpow2.f32 %v2084_v11 }
 0x8bd   :  { %v2109_v21 = vadd.f32 %v4389_v25, %v2108_v33  ;;  %v4395_v44 = vpop.eup %2945 }
 0x8be   :  { %v4398_v2 = vpop.eup %2947  ;;  %v2100_v5 = vsel %vm950_vm12, %v4395_v44, 0.0 }
 0x8bf   :  { %v2101_v7 = vadd.f32 %v4398_v2, %v2100_v5  ;;  %v4404_v50 = vpop.eup %2949 }
 0x8c0   :  { %v4408_v48 = vpop.eup %2951  ;;  %v2092_v47 = vsel %vm950_vm12, %v4404_v50, 0.0 }
 0x8c1   :  { %v2093_v32 = vadd.f32 %v4408_v48, %v2092_v47  ;;  %v4414_v13 = vpop.eup %2953 }
 0x8c2   :  { %2118 = vadd.xlane.f32.xlu1 %v2117_v39  ;;  %2154 = vadd.xlane.f32.xlu0 %v2153_v42  ;;  %4965 = vst [vmem:[#allocation12_spill] sm:$0xff] %v4414_v13  ;;  %v4416_v0 = vpop.eup %2955  ;;  %v2156_v4 = vsel %vm950_vm12, %v4414_v13, 0.0 }
 0x8c3   :  { %4966 = vst [vmem:[#allocation13_spill] sm:$0xff] %v4416_v0  ;;  %v2157_v19 = vadd.f32 %v4416_v0, %v2156_v4 }
 0x8ca   :  { %2110 = vadd.xlane.f32.xlu1 %v2109_v21 }
 0x8d2   :  { %2102 = vadd.xlane.f32.xlu1 %v2101_v7 }
 0x8d6   :  { %2451 = vrot.lane.b32.xlu0 %v680_v10, %s2997_s9 }
 0x8da   :  { %2094 = vadd.xlane.f32.xlu1 %v2093_v32 }
 0x8e2   :  { %2158 = vadd.xlane.f32.xlu1 %v2157_v19 }
 0x8ed   :  { %v4421_v3 = vpop.xlane.xlu1 %2126 }
 0x8f5   :  { %v4425_v18 = vpop.xlane.xlu1 %2134  ;;  %v4434_v22 = vpop.xlane.xlu0 %2122 }
 0x8fb   :  { %2449 = vrot.lane.b32.xlu1 %v4059_v56, %s2997_s9 }
 0x8fd   :  { %v4427_v63 = vpop.xlane.xlu1 %2138  ;;  %v4446_v46 = vpop.xlane.xlu0 %2130 }
 0x8fe   :  { %vm2357_vm8 = vweird.f32 %v4427_v63 }
 0x905   :  { %v4429_v39 = vpop.xlane.xlu1 %2142 }
 0x906   :  { %vm2373_vm3 = vweird.f32 %v4429_v39 }
 0x90d   :  { %v4431_v42 = vpop.xlane.xlu1 %2146 }
 0x90e   :  { %2957 = vrcp.f32 %v4431_v42  ;;  %v2395_v13 = vand.u32 2147483648, %v4431_v42  ;;  %vm2389_vm14 = vweird.f32 %v4431_v42 }
 0x90f   :  { %2959 = vrcp.f32 %v4429_v39 }
 0x910   :  { %2961 = vrcp.f32 %v4427_v63 }
 0x911   :  { %2963 = vrcp.f32 %v4421_v3 }
 0x914   :  { %v4437_v31 = vpop.eup %2957 }
 0x915   :  { %v2385_v57 = vmul.f32 %v4437_v31, %v4431_v42  ;;  %v4443_v33 = vpop.eup %2959  ;;  %vm2390_vm11 = vweird.f32 %v4437_v31 }
 0x916   :  { %v4448_v30 = vpop.eup %2961  ;;  %v2369_v21 = vmul.f32 %v4443_v33, %v4429_v39  ;;  %vm4494_vm0 = vmor %vm2389_vm14, %vm2390_vm11  ;;  %vm2374_vm2 = vweird.f32 %v4443_v33 }
 0x917   :  { %v2386_v41 = vsub.f32 1.0, %v2385_v57  ;;  %v4452_v59 = vpop.eup %2963  ;;  %v2353_v52 = vmul.f32 %v4448_v30, %v4427_v63  ;;  %vm4511_vm5 = vmor %vm2373_vm3, %vm2374_vm2  ;;  %vm2358_vm7 = vweird.f32 %v4448_v30  ;;  %vm2325_vm3 = vweird.f32 %v4446_v46 }
 0x918   :  { %v2370_v11 = vsub.f32 1.0, %v2369_v21  ;;  %v4464_v32 = vmul.f32 %v4452_v59, %v4421_v3  ;;  %vm2310_vm14 = vweird.f32 %v4452_v59 }
 0x919   :  { %v2387_v10 = vmul.f32 %v4437_v31, %v2386_v41  ;;  %v2354_v19 = vsub.f32 1.0, %v2353_v52 }
 0x91a   :  { %v2371_v20 = vmul.f32 %v4443_v33, %v2370_v11 }
 0x91b   :  { %v2388_v21 = vadd.f32 %v4437_v31, %v2387_v10  ;;  %v2393_v10 = vand.u32 2147483647, %v4431_v42 }
 0x91d   :  { %v2392_v42 = vsel %vm4494_vm0, %v4437_v31, %v2388_v21  ;;  %vm2394_vm4 = vcmp.eq.f32.partialorder %v2393_v10, 8.507059e+37  ;;  %v2315_v10 = vand.u32 2147483648, %v4421_v3 }
 0x92d   :  { %v2151_v56 = vpop.xlane.xlu1 %2150 }
 0x92e   :  { %2965 = vrcp.f32 %v2151_v56  ;;  %v2411_v8 = vand.u32 2147483648, %v2151_v56  ;;  %v2409_v12 = vand.u32 2147483647, %v2151_v56  ;;  %vm2405_vm13 = vweird.f32 %v2151_v56 }
 0x92f   :  { %2967 = vrcp.f32 %v4425_v18 }
 0x930   :  { %2969 = vrcp.f32 %v4446_v46  ;;  %v2412_v9 = vor.u32 1.1754944e-38, %v2411_v8  ;;  %vm2410_vm1 = vcmp.eq.f32.partialorder %v2409_v12, 8.507059e+37  ;;  %v2379_v8 = vand.u32 2147483648, %v4429_v39 }
 0x931   :  { %2971 = vrcp.f32 %v4434_v22  ;;  %v2377_v12 = vand.u32 2147483647, %v4429_v39  ;;  %v2363_v39 = vand.u32 2147483648, %v4427_v63 }
 0x933   :  { %vm2378_vm9 = vcmp.eq.f32.partialorder %v2377_v12, 8.507059e+37  ;;  %v4975_v12 = vand.u32 2147483648, %v4425_v18 }
 0x934   :  { %v2966_v51 = vpop.eup %2965 }
 0x935   :  { %v4455_v5 = vpop.eup %2967  ;;  %v2401_v28 = vmul.f32 %v2966_v51, %v2151_v56  ;;  %v4459_v7 = vpop.xlane.xlu1 %2118  ;;  %vm2406_vm10 = vweird.f32 %v2966_v51 }
 0x936   :  { %v2337_v4 = vmul.f32 %v4455_v5, %v4425_v18  ;;  %v4468_v43 = vpop.eup %2969  ;;  %vm4480_vm15 = vmor %vm2405_vm13, %vm2406_vm10  ;;  %2973 = vrcp.f32 %v4459_v7  ;;  %vm2342_vm11 = vweird.f32 %v4455_v5  ;;  %vm2341_vm13 = vweird.f32 %v4425_v18 }
 0x937   :  { %v2402_v47 = vsub.f32 1.0, %v2401_v28  ;;  %v4474_v28 = vpop.xlane.xlu0 %2114  ;;  %v2321_v41 = vmul.f32 %v4468_v43, %v4446_v46  ;;  %vm4534_vm10 = vmor %vm2357_vm8, %vm2358_vm7  ;;  %vm2326_vm2 = vweird.f32 %v4468_v43 }
 0x938   :  { %v2338_v52 = vsub.f32 1.0, %v2337_v4  ;;  %v2306_v4 = vsub.f32 1.0, %v4464_v32  ;;  %v2380_v32 = vor.u32 1.1754944e-38, %v2379_v8  ;;  %2975 = vrcp.f32 %v4474_v28  ;;  %vm4562_vm0 = vmor %vm2341_vm13, %vm2342_vm11 }
 0x939   :  { %v2403_v57 = vmul.f32 %v2966_v51, %v2402_v47  ;;  %v2355_v47 = vmul.f32 %v4448_v30, %v2354_v19  ;;  %v2372_v19 = vadd.f32 %v4443_v33, %v2371_v20  ;;  %vm2293_vm11 = vweird.f32 %v4434_v22 }
 0x93a   :  { %v2339_v31 = vmul.f32 %v4455_v5, %v2338_v52 }
 0x93b   :  { %v2404_v0 = vadd.f32 %v2966_v51, %v2403_v57 }
 0x93d   :  { %v4488_v57 = vpop.xlane.xlu1 %2110  ;;  %v2408_v56 = vsel %vm4480_vm15, %v2966_v51, %v2404_v0  ;;  %v2396_v0 = vor.u32 1.1754944e-38, %v2395_v13  ;;  %v4515_v13 = vpop.eup %2971 }
 0x93e   :  { %v2413_v51 = vsel %vm2410_vm1, %v2412_v9, %v2408_v56  ;;  %v2322_v9 = vsub.f32 1.0, %v2321_v41  ;;  %2977 = vrcp.f32 %v4488_v57 }
 0x93f   :  { %v2414_v11 = vmul.f32 %v4356_v38, %v2413_v51  ;;  %v2415_v60 = vmul.f32 %v4360_v53, %v2413_v51  ;;  %v2397_v20 = vsel %vm2394_vm4, %v2396_v0, %v2392_v42  ;;  %v2376_v38 = vsel %vm4511_vm5, %v4443_v33, %v2372_v19  ;;  %v4526_v52 = vpop.xlane.xlu0 %2106  ;;  %vm4592_vm5 = vmor %vm2325_vm3, %vm2326_vm2 }
 0x940   :  { %v2356_v53 = vadd.f32 %v4448_v30, %v2355_v47  ;;  %v2398_v41 = vmul.f32 %v4317_v34, %v2397_v20  ;;  %v2361_v33 = vand.u32 2147483647, %v4427_v63  ;;  %v2289_v47 = vmul.f32 %v4515_v13, %v4434_v22  ;;  %v4546_v63 = vpop.eup %2973 }
 0x941   :  { %2511 = vmatpush.xpose.msrb.mxu2 %v2414_v11  ;;  %2744 = vmatpush.xpose.msk.msrb.mxu3 %vm950_vm12, %v2415_v60  ;;  %v2399_v60 = vmul.f32 %v4313_v55, %v2397_v20  ;;  %v2381_v56 = vsel %vm2378_vm9, %v2380_v32, %v2376_v38  ;;  %v2345_v19 = vand.u32 2147483647, %v4425_v18  ;;  %v2323_v8 = vmul.f32 %v4468_v43, %v2322_v9  ;;  %v4557_v21 = vpop.eup %2975 }
 0x942   :  { %v2360_v55 = vsel %vm4534_vm10, %v4448_v30, %v2356_v53  ;;  %v2340_v34 = vadd.f32 %v4455_v5, %v2339_v31  ;;  %v2307_v0 = vmul.f32 %v4452_v59, %v2306_v4  ;;  %v2364_v51 = vor.u32 1.1754944e-38, %v2363_v39 }
 0x943   :  { %v2348_v20 = vor.u32 1.1754944e-38, %v4975_v12  ;;  %v2382_v30 = vmul.f32 %v4301_v45, %v2381_v56  ;;  %v2383_v31 = vmul.f32 %v4297_v6, %v2381_v56  ;;  %vm2362_vm15 = vcmp.eq.f32.partialorder %v2361_v33, 8.507059e+37 }
 0x944   :  { %v2290_v9 = vsub.f32 1.0, %v2289_v47  ;;  %v2365_v4 = vsel %vm2362_vm15, %v2364_v51, %v2360_v55  ;;  %vm4566_vm1 = vcmp.eq.f32.partialorder %v2345_v19, 8.507059e+37  ;;  %v2273_v6 = vmul.f32 %v4546_v63, %v4459_v7  ;;  %v4608_v55 = vpop.eup %2977 }
 0x945   :  { %2512 = vmatpush.xpose.msrb.mxu2 %v2398_v41  ;;  %2745 = vmatpush.xpose.msk.msrb.mxu3 %vm950_vm12, %v2399_v60  ;;  %v4550_v11 = vpop.xlane.xlu1 %2102  ;;  %v2344_v45 = vsel %vm4562_vm0, %v4455_v5, %v2340_v34  ;;  %v2324_v53 = vadd.f32 %v4468_v43, %v2323_v8  ;;  %v2331_v39 = vand.u32 2147483648, %v4446_v46  ;;  %v2329_v41 = vand.u32 2147483647, %v4446_v46 }
 0x946   :  { %v2308_v60 = vadd.f32 %v4452_v59, %v2307_v0  ;;  %v2257_v33 = vmul.f32 %v4557_v21, %v4474_v28  ;;  %2979 = vrcp.f32 %v4526_v52  ;;  %v2366_v5 = vmul.f32 %v4285_v36, %v2365_v4 }
 0x947   :  { %v4580_v32 = vpop.xlane.xlu0 %2098  ;;  %v2367_v47 = vmul.f32 %v4279_v1, %v2365_v4  ;;  %vm2309_vm4 = vweird.f32 %v4421_v3  ;;  %v2349_v56 = vsel %vm4566_vm1, %v2348_v20, %v2344_v45  ;;  %v2313_v46 = vand.u32 2147483647, %v4421_v3 }
 0x948   :  { %v2291_v19 = vmul.f32 %v4515_v13, %v2290_v9  ;;  %v2274_v8 = vsub.f32 1.0, %v2273_v6  ;;  %v2328_v1 = vsel %vm4592_vm5, %v4468_v43, %v2324_v53  ;;  %vm4604_vm7 = vmor %vm2309_vm4, %vm2310_vm14  ;;  %v2316_v34 = vor.u32 1.1754944e-38, %v2315_v10 }
 0x949   :  { %2513 = vmatpush.xpose.msrb.mxu2 %v2382_v30  ;;  %2746 = vmatpush.xpose.msk.msrb.mxu3 %vm950_vm12, %v2383_v31  ;;  %v2332_v3 = vor.u32 1.1754944e-38, %v2331_v39  ;;  %v2312_v0 = vsel %vm4604_vm7, %v4452_v59, %v2308_v60  ;;  %v2258_v51 = vsub.f32 1.0, %v2257_v33  ;;  %v2350_v12 = vmul.f32 %v4265_v24, %v2349_v56 }
 0x94a   :  { %v2351_v20 = vmul.f32 %v4261_v14, %v2349_v56  ;;  %vm2330_vm8 = vcmp.eq.f32.partialorder %v2329_v41, 8.507059e+37  ;;  %v2299_v43 = vand.u32 2147483648, %v4434_v22  ;;  %2981 = vrcp.f32 %v4550_v11 }
 0x94b   :  { %v2333_v31 = vsel %vm2330_vm8, %v2332_v3, %v2328_v1  ;;  %vm2314_vm9 = vcmp.eq.f32.partialorder %v2313_v46, 8.507059e+37  ;;  %v2275_v9 = vmul.f32 %v4546_v63, %v2274_v8  ;;  %v2241_v59 = vmul.f32 %v4608_v55, %v4488_v57  ;;  %v5008_v3 = vld [vmem:[#allocation9_spill] sm:$0xff] }
 0x94c   :  { %v4619_v10 = vpop.eup %2979  ;;  %v2292_v14 = vadd.f32 %v4515_v13, %v2291_v19  ;;  %vm2294_vm10 = vweird.f32 %v4515_v13  ;;  %v2317_v24 = vsel %vm2314_vm9, %v2316_v34, %v2312_v0  ;;  %v2297_v4 = vand.u32 2147483647, %v4434_v22 }
 0x94d   :  { %2514 = vmatpush.xpose.msrb.mxu2 %v2366_v5  ;;  %2747 = vmatpush.xpose.msk.msrb.mxu3 %vm950_vm12, %v2367_v47  ;;  %v4617_v30 = vpop.xlane.xlu1 %2094  ;;  %v2259_v38 = vmul.f32 %v4557_v21, %v2258_v51  ;;  %2983 = vrcp.f32 %v4580_v32  ;;  %v2334_v18 = vmul.f32 %v4288_v15, %v2333_v31  ;;  %v2335_v6 = vmul.f32 %v4281_v17, %v2333_v31  ;;  %vm4637_vm13 = vmor %vm2293_vm11, %vm2294_vm10 }
 0x94e   :  { %v2300_v45 = vor.u32 1.1754944e-38, %v2299_v43  ;;  %v2225_v53 = vmul.f32 %v4619_v10, %v4526_v52  ;;  %v2242_v60 = vsub.f32 1.0, %v2241_v59  ;;  %v2296_v15 = vsel %vm4637_vm13, %v4515_v13, %v2292_v14 }
 0x94f   :  { %v4635_v39 = vpop.xlane.xlu0 %2090  ;;  %v2276_v17 = vadd.f32 %v4546_v63, %v2275_v9  ;;  %vm2278_vm14 = vweird.f32 %v4546_v63  ;;  %v2283_v33 = vand.u32 2147483648, %v4459_v7  ;;  %v2318_v5 = vmul.f32 %v4252_v61, %v2317_v24 }
 0x950   :  { %v4647_v22 = vpop.eup %2981  ;;  %v2319_v47 = vmul.f32 %v4254_v26, %v2317_v24  ;;  %vm2298_vm15 = vcmp.eq.f32.partialorder %v2297_v4, 8.507059e+37  ;;  %vm2277_vm0 = vweird.f32 %v4459_v7  ;;  %v2281_v56 = vand.u32 2147483647, %v4459_v7 }
 0x951   :  { %2515 = vmatpush.xpose.msrb.mxu2 %v2350_v12  ;;  %2748 = vmatpush.xpose.msk.msrb.mxu3 %vm950_vm12, %v2351_v20  ;;  %v2260_v42 = vadd.f32 %v4557_v21, %v2259_v38  ;;  %vm2262_vm1 = vweird.f32 %v4557_v21  ;;  %v2226_v13 = vsub.f32 1.0, %v2225_v53  ;;  %2985 = vrcp.f32 %v4617_v30  ;;  %vm4657_vm2 = vmor %vm2277_vm0, %vm2278_vm14 }
 0x952   :  { %v2301_v46 = vsel %vm2298_vm15, %v2300_v45, %v2296_v15  ;;  %vm2261_vm3 = vweird.f32 %v4474_v28  ;;  %v2243_v26 = vmul.f32 %v4608_v55, %v2242_v60  ;;  %v2209_v7 = vmul.f32 %v4647_v22, %v4550_v11 }
 0x953   :  { %v4661_v61 = vpop.eup %2983  ;;  %v2280_v8 = vsel %vm4657_vm2, %v4546_v63, %v2276_v17  ;;  %v2267_v1 = vand.u32 2147483648, %v4474_v28  ;;  %v2284_v36 = vor.u32 1.1754944e-38, %v2283_v33  ;;  %vm4676_vm4 = vmor %vm2261_vm3, %vm2262_vm1  ;;  %v2265_v0 = vand.u32 2147483647, %v4474_v28 }
 0x954   :  { %v2302_v51 = vmul.f32 %v4268_v23, %v2301_v46  ;;  %v2303_v12 = vmul.f32 %v4272_v62, %v2301_v46  ;;  %vm2282_vm5 = vcmp.eq.f32.partialorder %v2281_v56, 8.507059e+37  ;;  %v2264_v63 = vsel %vm4676_vm4, %v4557_v21, %v2260_v42 }
 0x955   :  { %2516 = vmatpush.xpose.msrb.mxu2 %v2334_v18  ;;  %2749 = vmatpush.xpose.msk.msrb.mxu3 %vm950_vm12, %v2335_v6  ;;  %v4672_v34 = vpop.xlane.xlu1 %2158  ;;  %v2227_v20 = vmul.f32 %v4619_v10, %v2226_v13  ;;  %v2193_v43 = vmul.f32 %v4661_v61, %v4580_v32  ;;  %2987 = vrcp.f32 %v4635_v39  ;;  %v2285_v31 = vsel %vm2282_vm5, %v2284_v36, %v2280_v8 }
 0x956   :  { %v2210_v9 = vsub.f32 1.0, %v2209_v7  ;;  %2989 = vrcp.f32 %v4672_v34  ;;  %v2244_v23 = vadd.f32 %v4608_v55, %v2243_v26  ;;  %vm2246_vm7 = vweird.f32 %v4608_v55 }
 0x957   :  { %v4694_v62 = vpop.eup %2985  ;;  %v2268_v28 = vor.u32 1.1754944e-38, %v2267_v1  ;;  %v4696_v21 = vpop.xlane.xlu0 %2154  ;;  %v2251_v59 = vand.u32 2147483648, %v4488_v57  ;;  %vm2266_vm8 = vcmp.eq.f32.partialorder %v2265_v0, 8.507059e+37  ;;  %vm2245_vm9 = vweird.f32 %v4488_v57 }
 0x958   :  { %v2286_v14 = vmul.f32 %v4376_v49, %v2285_v31  ;;  %v2287_v24 = vmul.f32 %v4370_v35, %v2285_v31  ;;  %v2249_v4 = vand.u32 2147483647, %v4488_v57  ;;  %v2194_v38 = vsub.f32 1.0, %v2193_v43  ;;  %vm4703_vm10 = vmor %vm2245_vm9, %vm2246_vm7 }
 0x959   :  { %2517 = vmatpush.xpose.msrb.mxu2 %v2318_v5  ;;  %2750 = vmatpush.xpose.msk.msrb.mxu3 %vm950_vm12, %v2319_v47  ;;  %v2269_v18 = vsel %vm2266_vm8, %v2268_v28, %v2264_v63  ;;  %v2228_v45 = vadd.f32 %v4619_v10, %v2227_v20  ;;  %vm2230_vm11 = vweird.f32 %v4619_v10  ;;  %2991 = vrcp.f32 %v4696_v21 }
 0x95a   :  { %v2211_v53 = vmul.f32 %v4647_v22, %v2210_v9  ;;  %v2177_v49 = vmul.f32 %v4694_v62, %v4617_v30  ;;  %v2248_v35 = vsel %vm4703_vm10, %v4608_v55, %v2244_v23  ;;  %vm2229_vm13 = vweird.f32 %v4526_v52 }
 0x95b   :  { %v4717_v57 = vpop.eup %2987  ;;  %v2235_v41 = vand.u32 2147483648, %v4526_v52  ;;  %v2252_v60 = vor.u32 1.1754944e-38, %v2251_v59  ;;  %v2233_v15 = vand.u32 2147483647, %v4526_v52  ;;  %v2270_v33 = vmul.f32 %v4303_v37, %v2269_v18  ;;  %vm4728_vm15 = vmor %vm2229_vm13, %vm2230_vm11 }
 0x95c   :  { %v4722_v17 = vpop.eup %2989  ;;  %v2271_v5 = vmul.f32 %v4307_v29, %v2269_v18  ;;  %vm2250_vm14 = vcmp.eq.f32.partialorder %v2249_v4, 8.507059e+37  ;;  %v2195_v47 = vmul.f32 %v4661_v61, %v2194_v38  ;;  %v2232_v52 = vsel %vm4728_vm15, %v4619_v10, %v2228_v45 }
 0x95d   :  { %2518 = vmatpush.xpose.msrb.mxu2 %v2302_v51  ;;  %2751 = vmatpush.xpose.msk.msrb.mxu3 %vm950_vm12, %v2303_v12  ;;  %v2253_v56 = vsel %vm2250_vm14, %v2252_v60, %v2248_v35  ;;  %v2161_v42 = vmul.f32 %v4717_v57, %v4635_v39  ;;  %v2178_v37 = vsub.f32 1.0, %v2177_v49  ;;  %v2212_v29 = vadd.f32 %v4647_v22, %v2211_v53 }
 0x95e   :  { %vm2214_vm0 = vweird.f32 %v4647_v22  ;;  %v2236_v13 = vor.u32 1.1754944e-38, %v2235_v41  ;;  %v2219_v46 = vand.u32 2147483648, %v4550_v11  ;;  %v2433_v19 = vmul.f32 %v4722_v17, %v4672_v34 }
 0x95f   :  { %vm2234_vm1 = vcmp.eq.f32.partialorder %v2233_v15, 8.507059e+37  ;;  %v4744_v26 = vpop.eup %2991  ;;  %vm2213_vm2 = vweird.f32 %v4550_v11  ;;  %v2254_v10 = vmul.f32 %v4389_v25, %v2253_v56  ;;  %v2255_v7 = vmul.f32 %v4386_v40, %v2253_v56 }
 0x960   :  { %v2217_v8 = vand.u32 2147483647, %v4550_v11  ;;  %v2203_v1 = vand.u32 2147483648, %v4580_v32  ;;  %v2237_v36 = vsel %vm2234_vm1, %v2236_v13, %v2232_v52  ;;  %vm4751_vm3 = vmor %vm2213_vm2, %vm2214_vm0  ;;  %vm2198_vm4 = vweird.f32 %v4661_v61  ;;  %v5004_v13 = vld [vmem:[#allocation14_spill] sm:$0xff] }
 0x961   :  { %2519 = vmatpush.xpose.msrb.mxu2 %v2286_v14  ;;  %2752 = vmatpush.xpose.msk.msrb.mxu3 %vm950_vm12, %v2287_v24  ;;  %v2162_v0 = vsub.f32 1.0, %v2161_v42  ;;  %v2179_v51 = vmul.f32 %v4694_v62, %v2178_v37  ;;  %v2216_v40 = vsel %vm4751_vm3, %v4647_v22, %v2212_v29  ;;  %v2196_v25 = vadd.f32 %v4661_v61, %v2195_v47 }
 0x962   :  { %v2417_v11 = vmul.f32 %v4744_v26, %v4696_v21  ;;  %v2220_v12 = vor.u32 1.1754944e-38, %v2219_v46  ;;  %v2434_v63 = vsub.f32 1.0, %v2433_v19  ;;  %v2201_v20 = vand.u32 2147483647, %v4580_v32  ;;  %v5005_v19 = vld [vmem:[#allocation15_spill] sm:$0xff] }
 0x963   :  { %vm2197_vm5 = vweird.f32 %v4580_v32  ;;  %v2238_v43 = vmul.f32 %v4324_v16, %v2237_v36  ;;  %v2239_v31 = vmul.f32 %v4326_v54, %v2237_v36  ;;  %vm2218_vm7 = vcmp.eq.f32.partialorder %v2217_v8, 8.507059e+37  ;;  %v5007_v8 = vld [vmem:[#allocation12_spill] sm:$0xff]  ;;  %v2452_v36 = vpop.permute.xlu0 %2451 }
 0x964   :  { %v2204_v9 = vor.u32 1.1754944e-38, %v2203_v1  ;;  %v2221_v23 = vsel %vm2218_vm7, %v2220_v12, %v2216_v40  ;;  %vm4770_vm8 = vmor %vm2197_vm5, %vm2198_vm4  ;;  %v2163_v28 = vmul.f32 %v4717_v57, %v2162_v0  ;;  %v2180_v54 = vadd.f32 %v4694_v62, %v2179_v51  ;;  %v5009_v51 = vld [vmem:[#allocation8_spill] sm:$0xff] }
 0x965   :  { %2520 = vmatpush.xpose.msrb.mxu2 %v2270_v33  ;;  %2753 = vmatpush.xpose.msk.msrb.mxu3 %vm950_vm12, %v2271_v5  ;;  %v2200_v16 = vsel %vm4770_vm8, %v4661_v61, %v2196_v25  ;;  %vm2182_vm9 = vweird.f32 %v4694_v62  ;;  %v2418_v32 = vsub.f32 1.0, %v2417_v11  ;;  %v2187_v59 = vand.u32 2147483648, %v4617_v30 }
 0x966   :  { %v2435_v14 = vmul.f32 %v4722_v17, %v2434_v63  ;;  %vm2202_vm10 = vcmp.eq.f32.partialorder %v2201_v20, 8.507059e+37  ;;  %vm2181_vm11 = vweird.f32 %v4617_v30  ;;  %v2222_v24 = vmul.f32 %v4398_v2, %v2221_v23 }
 0x967   :  { %v2223_v4 = vmul.f32 %v4395_v44, %v2221_v23  ;;  %v2185_v38 = vand.u32 2147483647, %v4617_v30  ;;  %vm2165_vm13 = vweird.f32 %v4635_v39  ;;  %v2171_v61 = vand.u32 2147483648, %v4635_v39  ;;  %vm4789_vm14 = vmor %vm2181_vm11, %vm2182_vm9 }
 0x968   :  { %v2205_v18 = vsel %vm2202_vm10, %v2204_v9, %v2200_v16  ;;  %v2184_v2 = vsel %vm4789_vm14, %v4694_v62, %v2180_v54  ;;  %v2164_v44 = vadd.f32 %v4717_v57, %v2163_v28  ;;  %vm2166_vm15 = vweird.f32 %v4717_v57  ;;  %v5011_v9 = vld [vmem:[#allocation10_spill] sm:$0xff]  ;;  %v5012_v16 = vld [vmem:[#allocation4_spill] sm:$0xff] }
 0x969   :  { %2521 = vmatpush.xpose.msrb.mxu2 %v2254_v10  ;;  %2754 = vmatpush.xpose.msk.msrb.mxu3 %vm950_vm12, %v2255_v7  ;;  %v2169_v30 = vand.u32 2147483647, %v4635_v39  ;;  %v2419_v45 = vmul.f32 %v4744_v26, %v2418_v32  ;;  %v2188_v53 = vor.u32 1.1754944e-38, %v2187_v59  ;;  %v2436_v49 = vadd.f32 %v4722_v17, %v2435_v14  ;;  %vm4810_vm3 = vmor %vm2165_vm13, %vm2166_vm15  ;;  %v5013_v14 = vld [vmem:[#allocation3_spill] sm:$0xff] }
 0x96a   :  { %vm2438_vm0 = vweird.f32 %v4722_v17  ;;  %v2443_v35 = vand.u32 2147483648, %v4672_v34  ;;  %v2206_v41 = vmul.f32 %v4340_v58, %v2205_v18  ;;  %v2207_v60 = vmul.f32 %v4342_v27, %v2205_v18 }
 0x96b   :  { %vm2186_vm1 = vcmp.eq.f32.partialorder %v2185_v38, 8.507059e+37  ;;  %vm2437_vm2 = vweird.f32 %v4672_v34  ;;  %v2441_v62 = vand.u32 2147483647, %v4672_v34  ;;  %v2172_v5 = vor.u32 1.1754944e-38, %v2171_v61 }
 0x96c   :  { %v2189_v15 = vsel %vm2186_vm1, %v2188_v53, %v2184_v2  ;;  %vm4814_vm4 = vmor %vm2437_vm2, %vm2438_vm0  ;;  %v2168_v58 = vsel %vm4810_vm3, %v4717_v57, %v2164_v44  ;;  %vm2170_vm5 = vcmp.eq.f32.partialorder %v2169_v30, 8.507059e+37  ;;  %v2420_v39 = vadd.f32 %v4744_v26, %v2419_v45 }
 0x96d   :  { %2522 = vmatpush.xpose.msrb.mxu2 %v2238_v43  ;;  %2755 = vmatpush.xpose.msk.msrb.mxu3 %vm950_vm12, %v2239_v31  ;;  %v2440_v27 = vsel %vm4814_vm4, %v4722_v17, %v2436_v49  ;;  %vm2422_vm7 = vweird.f32 %v4744_v26  ;;  %v2427_v34 = vand.u32 2147483648, %v4696_v21  ;;  %v2444_v47 = vor.u32 1.1754944e-38, %v2443_v35  ;;  %v2450_v10 = vpop.permute.xlu1 %2449  ;;  %v5010_v31 = vld [vmem:[#allocation11_spill] sm:$0xff] }
 0x96e   :  { %v2190_v56 = vmul.f32 %v4408_v48, %v2189_v15  ;;  %v2191_v52 = vmul.f32 %v4404_v50, %v2189_v15  ;;  %vm2421_vm8 = vweird.f32 %v4696_v21  ;;  %vm2442_vm9 = vcmp.eq.f32.partialorder %v2441_v62, 8.507059e+37  ;;  %v5006_v50 = vld [vmem:[#allocation13_spill] sm:$0xff] }
 0x96f   :  { %v2173_v57 = vsel %vm2170_vm5, %v2172_v5, %v2168_v58  ;;  %v2425_v42 = vand.u32 2147483647, %v4696_v21  ;;  %v2445_v17 = vsel %vm2442_vm9, %v2444_v47, %v2440_v27  ;;  %vm2423_vm10 = vmor %vm2421_vm8, %vm2422_vm7  ;;  %v2428_v29 = vor.u32 1.1754944e-38, %v2427_v34 }
 0x970   :  { %v2424_v37 = vsel %vm2423_vm10, %v4744_v26, %v2420_v39  ;;  %v2174_v46 = vmul.f32 %v5004_v13, %v2173_v57  ;;  %v2175_v48 = vmul.f32 %v5005_v19, %v2173_v57  ;;  %v2446_v7 = vmul.f32 %v5006_v50, %v2445_v17 }
 0x971   :  { %2523 = vmatpush.xpose.msrb.mxu2 %v2222_v24  ;;  %2756 = vmatpush.xpose.msk.msrb.mxu3 %vm950_vm12, %v2223_v4  ;;  %v2447_v1 = vmul.f32 %v5007_v8, %v2445_v17  ;;  %vm2426_vm11 = vcmp.eq.f32.partialorder %v2425_v42, 8.507059e+37  ;;  %v2453_v26 = vsel %vm1634_vm6, %v2450_v10, %v2452_v36  ;;  %v1626_v23 = vadd.f32 %v5011_v9, %v5010_v31 }
 0x972   :  { %v2429_v21 = vsel %vm2426_vm11, %v2428_v29, %v2424_v37  ;;  %vm2606_vm6 = vcmask 259072  }
 0x973   :  { %v2430_v0 = vmul.f32 %v5008_v3, %v2429_v21  ;;  %v2431_v40 = vmul.f32 %v5009_v51, %v2429_v21 }
 0x975   :  { %2524 = vmatpush.xpose.msrb.mxu2 %v2206_v41  ;;  %2757 = vmatpush.xpose.msk.msrb.mxu3 %vm950_vm12, %v2207_v60 }
 0x979   :  { %2525 = vmatpush.xpose.msrb.mxu2 %v2190_v56  ;;  %2758 = vmatpush.xpose.msk.msrb.mxu3 %vm950_vm12, %v2191_v52 }
 0x97d   :  { %2526 = vmatpush.xpose.msrb.mxu2 %v2174_v46  ;;  %2759 = vmatpush.xpose.msk.msrb.mxu3 %vm950_vm12, %v2175_v48 }
 0x980   :  { %2527 = vmatmul.f32.vlgmr.msrb.gmra.mxu2 %v2453_v26  ;;  %2760 = vmatmul.msk.f32.vlgmr.msrb.gmra.mxu3 %vm950_vm12, %v2452_v36 }
 0x981   :  { %2565 = vmatpush.xpose.msra.mxu2 %v2446_v7  ;;  %2761 = vmatpush.xpose.msk.msra.mxu3 %vm950_vm12, %v2447_v1 }
 0x985   :  { %2566 = vmatpush.xpose.msra.mxu2 %v2430_v0  ;;  %2762 = vmatpush.xpose.msk.msra.mxu3 %vm950_vm12, %v2431_v40 }
 0x988   :  { %2567 = vmatmul.f32.vlgmr.msra.gmra.mxu2 %v2453_v26  ;;  %2763 = vmatmul.msk.f32.vlgmr.msra.gmra.mxu3 %vm950_vm12, %v2452_v36 }
 0xa03   :  { %v2528_v25 = vpop.f32.mrf.mxu2  ;;  %v2548_v11 = vpop.f32.mrf.mxu3 }
 0xa04   :  { %v2549_v12 = vadd.f32 %v2548_v11, %v2528_v25 }
 0xa06   :  { %2593 = vrot.lane.b32.xlu0 %v2549_v12, %s2998_s1 }
 0xa0b   :  { %v2568_v63 = vpop.f32.mrf.mxu2  ;;  %v2588_v20 = vpop.f32.mrf.mxu3 }
 0xa0c   :  { %v2589_v43 = vadd.f32 %v2588_v20, %v2568_v63 }
 0xa0e   :  { %2595 = vrot.lane.b32.xlu1 %v2589_v43, %s2998_s1 }
 0xa78   :  { %v2594_v22 = vpop.permute.xlu0 %2593 }
 0xa79   :  { %v2600_v28 = vsel %vm950_vm12, %v1626_v23, %v2594_v22 }
 0xa7a   :  { %v2602_v54 = vadd.f32 %v2600_v28, %v5012_v16 }
 0xa7c   :  { %2605 = vst [vmem:[%s4868_s10 + $0x8] sm:$0x3f] %v2602_v54 }
 0xa80   :  { %v2596_v32 = vpop.permute.xlu1 %2595 }
 0xa81   :  { %v2597_v59 = vsel %vm950_vm12, %v2594_v22, %v2596_v32 }
 0xa82   :  { %v2603_v24 = vadd.f32 %v2597_v59, %v5013_v14 }
 0xa84   :  { %2607 = vst.msk [vmem:[%s4868_s10 + $0x10] sm:$0x3f] %vm2606_vm6, %v2603_v24 }

// kernel: lenet_forward.3
= control target key start
LH: loop header
LB: loop body
LE: loop exit
PB: predicated region body
PF: predicated region fallthrough
CT: control target
= control target key end

     0   :  { %s1942_s0 = inlined_call_operand.vmem [shape: f32[150,128], index: 0, kind: input, shape index: {}]   ;;  %s1943_s1 = inlined_call_operand.vmem [shape: f32[16,150], index: 1, kind: input, shape index: {}]   ;;  %s1944_s2 = inlined_call_operand.vmem [shape: f32[16,1], index: 2, kind: input, shape index: {}]   ;;  %s1945_s3 = inlined_call_operand.vmem [shape: f32[16,1], index: 3, kind: input, shape index: {}]   ;;  %s1946_s4 = inlined_call_operand.vmem [shape: f32[8,16], index: 4, kind: input, shape index: {}]   ;;  %s1947_s5 = inlined_call_operand.vmem [shape: f32[8,1], index: 5, kind: input, shape index: {}]   ;;  %s1948_s6 = inlined_call_operand.vmem [shape: f32[8,16], index: 6, kind: input, shape index: {}]   ;;  %s1949_s7 = inlined_call_operand.vmem [shape: f32[8,1], index: 7, kind: input, shape index: {}]   ;;  %s1950_s8 = inlined_call_operand.vmem [shape: f32[16,16], index: 8, kind: input, shape index: {}]   ;;  %s1951_s9 = inlined_call_operand.vmem [shape: f32[16,1], index: 9, kind: input, shape index: {}]   ;;  %s1952_s10 = inlined_call_operand.vmem [shape: f32[16,16,120], index: 10, kind: input, shape index: {}]   ;;  %s1953_s11 = inlined_call_operand.vmem [shape: f32[1,120], index: 11, kind: input, shape index: {}]   ;;  %s1954_s12 = inlined_call_operand.vmem [shape: f32[120,84], index: 12, kind: input, shape index: {}]   ;;  %s1955_s13 = inlined_call_operand.vmem [shape: f32[1,84], index: 13, kind: input, shape index: {}]   ;;  %s1956_s14 = inlined_call_operand.vmem [shape: f32[84,11], index: 14, kind: input, shape index: {}]   ;;  %s1957_s15 = inlined_call_operand.vmem [shape: f32[1,11], index: 15, kind: input, shape index: {}]   ;;  %s1958_s16 = inlined_call_operand.hbm [shape: f32[2,11], index: 16, kind: output, shape index: {}]  }
   0x1   :  { %1960 = sst [smem:[#allocation5_spill]] %s1942_s0 }
   0x2   :  { %s1961_s23 = sld [smem:[#allocation5_spill]]  ;;  %vm84_vm0 = vcmask 1045504   ;;  %v55_v9 = vld [vmem:[%s1943_s1 + $0x8] sm:$0xff]  ;;  %vm77_vm1 = vcmask 179200  }
   0x8   :  { %v73_v0 = vld [vmem:[%s1961_s23 + $0x78] sm:$0xff]  ;;  %v72_v1 = vld [vmem:[%s1961_s23 + $0x70] sm:$0xff]  ;;  %v71_v2 = vld [vmem:[%s1961_s23 + $0x68] sm:$0xff] }
   0x9   :  { %88 = vmatpush.msra.mxu0 %v73_v0  ;;  %v70_v3 = vld [vmem:[%s1961_s23 + $0x60] sm:$0xff]  ;;  %v76_v4 = vld [vmem:[%s1961_s23 + $0x90] sm:$0x3f]  ;;  %v75_v5 = vld [vmem:[%s1961_s23 + $0x88] sm:$0xff] }
   0xa   :  { %1300 = vmatpush.msk.msra.mxu1 %vm84_vm0, %v76_v4  ;;  %v69_v6 = vld [vmem:[%s1961_s23 + $0x58] sm:$0xff]  ;;  %v74_v7 = vld [vmem:[%s1961_s23 + $0x80] sm:$0xff]  ;;  %v68_v8 = vld [vmem:[%s1961_s23 + $0x50] sm:$0xff] }
   0xb   :  { %89 = vmatpush.msra.mxu0 %v72_v1 }
   0xc   :  { %125 = vmatpush.msra.mxu1 %v75_v5 }
   0xd   :  { %90 = vmatpush.msra.mxu0 %v71_v2 }
   0xf   :  { %91 = vmatpush.msra.mxu0 %v70_v3 }
  0x10   :  { %21 = vsyncpa [#allocation3], 0  ;;  %126 = vmatpush.msra.mxu1 %v74_v7  ;;  %v67_v10 = vld [vmem:[%s1961_s23 + $0x48] sm:$0xff]  ;;  %v66_v11 = vld [vmem:[%s1961_s23 + $0x40] sm:$0xff]  ;;  %v1432_v29 = vmov 128.0   ;;  %v1433_v32 = vmov 0  }
  0x11   :  { %92 = vmatpush.msra.mxu0 %v69_v6  ;;  %1301 = vmatmul.msk.f32.vlgmr.msra.gmra.mxu1 %vm77_vm1, %v55_v9  ;;  %v65_v12 = vld [vmem:[%s1961_s23 + $0x38] sm:$0xff]  ;;  %v64_v14 = vld [vmem:[%s1961_s23 + $0x30] sm:$0xff]  ;;  %v63_v15 = vld [vmem:[%s1961_s23 + $0x28] sm:$0xff]  ;;  %1384 = vrcp.f32 %v1432_v29  ;;  %vm238_vm9 = vcmask 130048   ;;  %vm367_vm10 = vcmask 64512   ;;  %s1440_s26 = smov [#allocation2]  }
  0x12   :  { %v57_v13 = vld [vmem:[%s1943_s1 + $0x18] sm:$0xff]  ;;  %v62_v16 = vld [vmem:[%s1961_s23 + $0x20] sm:$0xff]  ;;  %v60_v18 = vld [vmem:[%s1961_s23 + $0x10] sm:$0xff]  ;;  %1380 = vset.pattern.permute.xlu1 %v1433_v32  ;;  %1379 = vset.pattern.permute.xlu0 %v1433_v32 }
  0x13   :  { %93 = vmatpush.msra.mxu0 %v68_v8  ;;  %v61_v17 = vld [vmem:[%s1961_s23 + $0x18] sm:$0xff]  ;;  %v59_v19 = vld [vmem:[%s1961_s23 + $0x8] sm:$0xff]  ;;  %v58_v20 = vld [vmem:[%s1961_s23] sm:$0xff]  ;;  %1378 = vset.pattern.permute.xlu2 %v1433_v32 }
  0x14   :  { %v54_v21 = vld [vmem:[%s1943_s1] sm:$0xff]  ;;  %v56_v22 = vld [vmem:[%s1943_s1 + $0x10] sm:$0xff]  ;;  %v137_v43 = vld [vmem:[%s1945_s3 + $0x8] sm:$0xff] }
  0x15   :  { %94 = vmatpush.msra.mxu0 %v67_v10  ;;  %v135_v44 = vld [vmem:[%s1944_s2 + $0x8] sm:$0xff]  ;;  %v134_v47 = vld [vmem:[%s1944_s2] sm:$0xff]  ;;  %s1434_s2 = smov 96  }
  0x16   :  { %192 = vperm.xlu2 %1378, %v135_v44   ;;  %v136_v48 = vld [vmem:[%s1945_s3] sm:$0xff]  ;;  %s1435_s3 = smov 64  }
  0x17   :  { %95 = vmatpush.msra.mxu0 %v66_v11  ;;  %v1385_v30 = vpop.eup %1384  ;;  %v232_v49 = vld [vmem:[%s1947_s5] sm:$0xff] }
  0x18   :  { %v143_v31 = vmul.f32 128.0, %v1385_v30  ;;  %vm147_vm2 = vweird.f32 %v1385_v30  ;;  %v292_v29 = vld [vmem:[%s1950_s8] sm:$0xff] }
  0x19   :  { %96 = vmatpush.msra.mxu0 %v65_v12  ;;  %1302 = vmatmul.msk.f32.gmra.mxu1 %vm77_vm1, %v57_v13 }
  0x1a   :  { %v144_v33 = vsub.f32 1.0, %v143_v31 }
  0x1b   :  { %97 = vmatpush.msra.mxu0 %v64_v14 }
  0x1c   :  { %v145_v34 = vmul.f32 %v1385_v30, %v144_v33 }
  0x1d   :  { %98 = vmatpush.msra.mxu0 %v63_v15 }
  0x1e   :  { %v146_v36 = vadd.f32 %v1385_v30, %v145_v34  ;;  %187 = vperm.xlu2 %1378, %v134_v47  }
  0x1f   :  { %99 = vmatpush.msra.mxu0 %v62_v16 }
  0x20   :  { %v148_v37 = vsel %vm147_vm2, %v1385_v30, %v146_v36  ;;  %v294_v36 = vld [vmem:[%s1951_s9] sm:$0xff] }
  0x21   :  { %100 = vmatpush.msra.mxu0 %v61_v17 }
  0x23   :  { %101 = vmatpush.msra.mxu0 %v60_v18 }
  0x25   :  { %102 = vmatpush.msra.mxu0 %v59_v19 }
  0x27   :  { %103 = vmatpush.msra.mxu0 %v58_v20 }
  0x28   :  { %104 = vmatmul.f32.vlgmr.msra.gmra.mxu0 %v54_v21 }
  0x30   :  { %107 = vmatmul.f32.gmra.mxu0 %v56_v22  ;;  %v263_v22 = vld [vmem:[%s1949_s7] sm:$0xff] }
  0x70   :  { %v193_v2 = vpop.permute.xlu2 %192 }
  0x78   :  { %v188_v12 = vpop.permute.xlu2 %187 }
  0x8e   :  { %v128_v23 = vpop.f32.mrf.mxu1 }
  0x96   :  { %v131_v25 = vpop.f32.mrf.mxu1 }
  0xa5   :  { %v105_v24 = vpop.f32.mrf.mxu0 }
  0xa6   :  { %v129_v28 = vadd.f32 %v128_v23, %v105_v24 }
  0xad   :  { %v108_v26 = vpop.f32.mrf.mxu0 }
  0xae   :  { %v132_v27 = vadd.f32 %v131_v25, %v108_v26 }
  0xb0   :  { %140 = vadd.xlane.f32.xlu0 %v132_v27 }
  0xb8   :  { %138 = vadd.xlane.f32.xlu0 %v129_v28 }
  0xcc   :  { %204 = vperm.xlu0 %1379, %v137_v43  }
 0x123   :  { %v141_v35 = vpop.xlane.xlu0 %140 }
 0x124   :  { %v150_v41 = vmul.f32 %v148_v37, %v141_v35 }
 0x126   :  { %v152_v45 = vsub.f32 %v132_v27, %v150_v41  ;;  %v231_v27 = vld [vmem:[%s1946_s4] sm:$0xff]  ;;  %s1436_s4 = smov 112  }
 0x128   :  { %v154_v46 = vmul.f32 %v152_v45, %v152_v45 }
 0x12b   :  { %v139_v38 = vpop.xlane.xlu0 %138 }
 0x12c   :  { %v149_v39 = vmul.f32 %v148_v37, %v139_v38 }
 0x12e   :  { %v151_v40 = vsub.f32 %v129_v28, %v149_v39  ;;  %v262_v28 = vld [vmem:[%s1948_s6] sm:$0xff]  ;;  %v293_v39 = vld [vmem:[%s1950_s8 + $0x8] sm:$0xff]  ;;  %s1289_s8 = sshll.u32 %s1440_s26, 4  ;;  %s1290_s8 = int_to_ptr.vmem [resolvable:$true] %s1289_s8 }
 0x130   :  { %v153_v42 = vmul.f32 %v151_v40, %v151_v40 }
 0x132   :  { %155 = vadd.xlane.f32.xlu1 %v153_v42 }
 0x13a   :  { %157 = vadd.xlane.f32.xlu1 %v154_v46 }
 0x13e   :  { %v205_v8 = vpop.permute.xlu0 %204 }
 0x153   :  { %199 = vperm.xlu1 %1380, %v136_v48  }
 0x15b   :  { %235 = vperm.xlu1 %1380, %v232_v49  }
 0x1a5   :  { %v156_v50 = vpop.xlane.xlu1 %155 }
 0x1a6   :  { %v159_v51 = vmul.f32 %v156_v50, %v148_v37 }
 0x1a8   :  { %v161_v52 = vadd.f32 1e-05, %v159_v51 }
 0x1aa   :  { %1386 = vrsqrt.f32 %v161_v52  ;;  %vm169_vm7 = vweird.f32 %v161_v52 }
 0x1ad   :  { %v158_v53 = vpop.xlane.xlu1 %157 }
 0x1ae   :  { %v160_v54 = vmul.f32 %v158_v53, %v148_v37 }
 0x1b0   :  { %v1387_v55 = vpop.eup %1386  ;;  %v162_v56 = vadd.f32 1e-05, %v160_v54  ;;  %v295_v54 = vld [vmem:[%s1951_s9 + $0x8] sm:$0xff]  ;;  %s1437_s9 = smov 16  }
 0x1b1   :  { %v164_v57 = vmul.f32 %v1387_v55, %v161_v52  ;;  %vm170_vm5 = vweird.f32 %v1387_v55 }
 0x1b2   :  { %1388 = vrsqrt.f32 %v162_v56  ;;  %vm179_vm4 = vweird.f32 %v162_v56  ;;  %vm171_vm8 = vmor %vm169_vm7, %vm170_vm5 }
 0x1b3   :  { %v165_v58 = vmul.f32 %v1387_v55, %v164_v57 }
 0x1b5   :  { %v166_v60 = vmul.f32 0.5, %v165_v58 }
 0x1b7   :  { %v167_v63 = vsub.f32 1.5, %v166_v60 }
 0x1b8   :  { %v1389_v59 = vpop.eup %1388 }
 0x1b9   :  { %v174_v61 = vmul.f32 %v1389_v59, %v162_v56  ;;  %vm180_vm3 = vweird.f32 %v1389_v59  ;;  %v168_v4 = vmul.f32 %v1387_v55, %v167_v63 }
 0x1ba   :  { %vm181_vm6 = vmor %vm179_vm4, %vm180_vm3 }
 0x1bb   :  { %v175_v62 = vmul.f32 %v1389_v59, %v174_v61  ;;  %v172_v7 = vsel %vm171_vm8, %v1387_v55, %v168_v4 }
 0x1bc   :  { %v183_v10 = vmul.f32 %v172_v7, %v151_v40 }
 0x1bd   :  { %v176_v0 = vmul.f32 0.5, %v175_v62 }
 0x1be   :  { %v195_v15 = vmul.f32 %v188_v12, %v183_v10 }
 0x1bf   :  { %v177_v1 = vsub.f32 1.5, %v176_v0 }
 0x1c1   :  { %v178_v3 = vmul.f32 %v1389_v59, %v177_v1 }
 0x1c3   :  { %v182_v5 = vsel %vm181_vm6, %v1389_v59, %v178_v3 }
 0x1c4   :  { %v184_v6 = vmul.f32 %v182_v5, %v152_v45 }
 0x1c5   :  { %v200_v14 = vpop.permute.xlu1 %199 }
 0x1c6   :  { %v196_v9 = vmul.f32 %v193_v2, %v184_v6  ;;  %v207_v16 = vadd.f32 %v200_v14, %v195_v15 }
 0x1c8   :  { %v208_v11 = vadd.f32 %v205_v8, %v196_v9  ;;  %v209_v17 = vmax.f32 %v207_v16, 0.0 }
 0x1ca   :  { %v210_v13 = vmax.f32 %v208_v11, 0.0 }
 0x1cc   :  { %215 = vrot.lane.b32.xlu2 %v210_v13, %s1434_s2 }
 0x1cd   :  { %v236_v30 = vpop.permute.xlu1 %235 }
 0x1d4   :  { %213 = vrot.lane.b32.xlu2 %v209_v17, %s1434_s2 }
 0x226   :  { %v216_v18 = vpop.permute.xlu2 %215 }
 0x227   :  { %v220_v19 = vmax.f32 %v210_v13, %v216_v18 }
 0x229   :  { %225 = vrot.lane.b32.xlu2 %v220_v19, %s1435_s3 }
 0x22e   :  { %v214_v20 = vpop.permute.xlu2 %213 }
 0x22f   :  { %v219_v21 = vmax.f32 %v209_v17, %v214_v20 }
 0x231   :  { %223 = vrot.lane.b32.xlu2 %v219_v21, %s1435_s3 }
 0x239   :  { %266 = vperm.xlu2 %1378, %v263_v22  }
 0x283   :  { %v226_v23 = vpop.permute.xlu2 %225 }
 0x284   :  { %v1613_v24 = vmax.f32 %v220_v19, %v226_v23 }
 0x286   :  { %256 = vmatpush.msrb.mxu1 %v1613_v24  ;;  %286 = vmatpush.msra.mxu3 %v1613_v24 }
 0x287   :  { %326 = vmatpush.msra.mxu2 %v1613_v24 }
 0x28b   :  { %v224_v25 = vpop.permute.xlu2 %223 }
 0x28c   :  { %v1618_v26 = vmax.f32 %v219_v21, %v224_v25 }
 0x28e   :  { %257 = vmatpush.msrb.mxu1 %v1618_v26  ;;  %287 = vmatpush.msra.mxu3 %v1618_v26 }
 0x28f   :  { %327 = vmatpush.msra.mxu2 %v1618_v26  ;;  %1303 = vmatmul.msk.f32.vlgmr.msrb.gmra.mxu1 %vm238_vm9, %v231_v27 }
 0x290   :  { %1304 = vmatmul.msk.f32.vlgmr.msra.gmra.mxu3 %vm238_vm9, %v262_v28  ;;  %1305 = vmatmul.msk.f32.vlgmr.msra.gmra.mxu2 %vm238_vm9, %v292_v29 }
 0x293   :  { %v267_v33 = vpop.permute.xlu2 %266 }
 0x298   :  { %1306 = vmatmul.msk.f32.gmra.mxu2 %vm238_vm9, %v293_v39 }
 0x30c   :  { %v259_v31 = vpop.f32.mrf.mxu1 }
 0x30d   :  { %v260_v32 = vadd.f32 %v259_v31, %v236_v30 }
 0x30f   :  { %481 = vrot.lane.b32.xlu1 %v260_v32, %s1436_s4 }
 0x313   :  { %v289_v34 = vpop.f32.mrf.mxu3  ;;  %v329_v48 = vpop.f32.mrf.mxu2 }
 0x314   :  { %v290_v35 = vadd.f32 %v289_v34, %v267_v33 }
 0x316   :  { %517 = vrot.lane.b32.xlu0 %v290_v35, %s1436_s4  ;;  %389 = vmatpush.msrb.mxu3 %v290_v35 }
 0x31b   :  { %v332_v49 = vpop.f32.mrf.mxu2 }
 0x31e   :  { %298 = vperm.xlu0 %1379, %v294_v36  }
 0x344   :  { %335 = vxpose.xlu1.b32.start.end [1/1] (short) (narrow) %v260_v32, 16 }
 0x381   :  { %v482_v37 = vpop.permute.xlu1 %481 }
 0x382   :  { %484 = vxpose.xlu2.b32.start.end [1/1] (short) (narrow) %v482_v37, 16 }
 0x388   :  { %v518_v38 = vpop.permute.xlu0 %517 }
 0x389   :  { %541 = vmatpush.msrb.mxu2 %v518_v38 }
 0x390   :  { %v299_v55 = vpop.permute.xlu0 %298 }
 0x391   :  { %v1661_v9 = vadd.f32 %v329_v48, %v299_v55 }
 0x3e8   :  { %v351_v40 = vpop.trf.xlu1 }
 0x3e9   :  { %1307 = vmatmul.msk.f32.vlgmr.msrb.gmra.mxu3 %vm367_vm10, %v351_v40 }
 0x3f0   :  { %v352_v41 = vpop.trf.xlu1 }
 0x3f1   :  { %1308 = vmatmul.msk.f32.gmra.mxu3 %vm367_vm10, %v352_v41 }
 0x41b   :  { %v500_v42 = vpop.trf.xlu2 }
 0x41c   :  { %1313 = vmatmul.msk.f32.vlgmr.msrb.gmra.mxu2 %vm367_vm10, %v500_v42 }
 0x423   :  { %v501_v43 = vpop.trf.xlu2 }
 0x424   :  { %1314 = vmatmul.msk.f32.gmra.mxu2 %vm367_vm10, %v501_v43 }
 0x46c   :  { %v391_v44 = vpop.f32.mrf.mxu3 }
 0x46d   :  { %v397_v45 = vsel %vm238_vm9, %v391_v44, -inf }
 0x46e   :  { %398 = vmax.xlane.f32.xlu0 %v397_v45 }
 0x474   :  { %v394_v46 = vpop.f32.mrf.mxu3 }
 0x475   :  { %v400_v47 = vsel %vm238_vm9, %v394_v46, -inf }
 0x476   :  { %401 = vmax.xlane.f32.xlu1 %v400_v47 }
 0x49f   :  { %v543_v50 = vpop.f32.mrf.mxu2 }
 0x4a0   :  { %v549_v51 = vsel %vm238_vm9, %v543_v50, -inf }
 0x4a1   :  { %550 = vmax.xlane.f32.xlu2 %v549_v51 }
 0x4a7   :  { %v546_v52 = vpop.f32.mrf.mxu2 }
 0x4a8   :  { %v552_v53 = vsel %vm238_vm9, %v546_v52, -inf }
 0x4a9   :  { %553 = vmax.xlane.f32.xlu0 %v552_v53 }
 0x4bd   :  { %303 = vperm.xlu0 %1379, %v295_v54  }
 0x4e1   :  { %v399_v56 = vpop.xlane.xlu0 %398 }
 0x4e2   :  { %v403_v57 = vsub.f32 %v391_v44, %v399_v56 }
 0x4e4   :  { %v405_v58 = vmul.f32 1.442695, %v403_v57 }
 0x4e6   :  { %1390 = vpow2.f32 %v405_v58 }
 0x4e9   :  { %v402_v10 = vpop.xlane.xlu1 %401 }
 0x4ea   :  { %v404_v11 = vsub.f32 %v394_v46, %v402_v10 }
 0x4ec   :  { %v1651_v59 = vpop.eup %1390  ;;  %v407_v12 = vmul.f32 1.442695, %v404_v11 }
 0x4ed   :  { %v409_v60 = vsel %vm238_vm9, %v1651_v59, 0.0 }
 0x4ee   :  { %410 = vadd.xlane.f32.xlu1 %v409_v60 }
 0x514   :  { %v551_v61 = vpop.xlane.xlu2 %550 }
 0x515   :  { %v555_v62 = vsub.f32 %v543_v50, %v551_v61 }
 0x517   :  { %v557_v63 = vmul.f32 1.442695, %v555_v62 }
 0x519   :  { %1392 = vpow2.f32 %v557_v63 }
 0x51c   :  { %v554_v0 = vpop.xlane.xlu0 %553 }
 0x51d   :  { %v556_v1 = vsub.f32 %v546_v52, %v554_v0 }
 0x51f   :  { %v1393_v2 = vpop.eup %1392  ;;  %v559_v3 = vmul.f32 1.442695, %v556_v1 }
 0x520   :  { %v561_v4 = vsel %vm238_vm9, %v1393_v2, 0.0 }
 0x521   :  { %1394 = vpow2.f32 %v559_v3  ;;  %562 = vadd.xlane.f32.xlu0 %v561_v4 }
 0x522   :  { %1396 = vpow2.f32 %v407_v12 }
 0x527   :  { %v1395_v5 = vpop.eup %1394 }
 0x528   :  { %v564_v6 = vsel %vm238_vm9, %v1395_v5, 0.0  ;;  %v1665_v13 = vpop.eup %1396 }
 0x529   :  { %565 = vadd.xlane.f32.xlu0 %v564_v6  ;;  %v412_v14 = vsel %vm238_vm9, %v1665_v13, 0.0 }
 0x52f   :  { %v304_v7 = vpop.permute.xlu0 %303 }
 0x530   :  { %v1657_v8 = vadd.f32 %v332_v49, %v304_v7 }
 0x532   :  { %599 = vrot.lane.b32.xlu2 %v1657_v8, %s1436_s4 }
 0x53d   :  { %597 = vrot.lane.b32.xlu0 %v1661_v9, %s1436_s4 }
 0x561   :  { %v411_v43 = vpop.xlane.xlu1 %410 }
 0x562   :  { %vm420_vm5 = vweird.f32 %v411_v43  ;;  %v426_v56 = vand.u32 2147483648, %v411_v43  ;;  %v424_v57 = vand.u32 2147483647, %v411_v43 }
 0x564   :  { %v427_v63 = vor.u32 1.1754944e-38, %v426_v56 }
 0x567   :  { %413 = vadd.xlane.f32.xlu0 %v412_v14  ;;  %v1353_v14 = vld [vmem:[%s1952_s10 + $0xc0] sm:$0xff] }
 0x58c   :  { %v600_v42 = vpop.permute.xlu2 %599 }
 0x594   :  { %v563_v15 = vpop.xlane.xlu0 %562 }
 0x595   :  { %1398 = vrcp.f32 %v563_v15  ;;  %vm572_vm13 = vweird.f32 %v563_v15  ;;  %v578_v30 = vand.u32 2147483648, %v563_v15  ;;  %v576_v31 = vand.u32 2147483647, %v563_v15 }
 0x597   :  { %v579_v36 = vor.u32 1.1754944e-38, %v578_v30  ;;  %vm577_vm2 = vcmp.eq.f32.partialorder %v576_v31, 8.507059e+37 }
 0x59b   :  { %v1399_v16 = vpop.eup %1398 }
 0x59c   :  { %v568_v17 = vmul.f32 %v1399_v16, %v563_v15  ;;  %v566_v18 = vpop.xlane.xlu0 %565  ;;  %vm573_vm11 = vweird.f32 %v1399_v16 }
 0x59d   :  { %1400 = vrcp.f32 %v566_v18  ;;  %v593_v25 = vand.u32 2147483648, %v566_v18  ;;  %v591_v29 = vand.u32 2147483647, %v566_v18  ;;  %vm574_vm14 = vmor %vm572_vm13, %vm573_vm11  ;;  %vm587_vm15 = vweird.f32 %v566_v18 }
 0x59e   :  { %v569_v19 = vsub.f32 1.0, %v568_v17  ;;  %1402 = vrcp.f32 %v411_v43  ;;  %vm425_vm11 = vcmp.eq.f32.partialorder %v424_v57, 8.507059e+37  ;;  %vm1214_vm13 = vcmask 982016  }
 0x59f   :  { %v594_v33 = vor.u32 1.1754944e-38, %v593_v25  ;;  %vm592_vm1 = vcmp.eq.f32.partialorder %v591_v29, 8.507059e+37 }
 0x5a0   :  { %v570_v21 = vmul.f32 %v1399_v16, %v569_v19 }
 0x5a2   :  { %v571_v27 = vadd.f32 %v1399_v16, %v570_v21  ;;  %v1439_v21 = vmov 1934713408  }
 0x5a3   :  { %v1401_v20 = vpop.eup %1400 }
 0x5a4   :  { %v583_v22 = vmul.f32 %v1401_v20, %v566_v18  ;;  %vm588_vm12 = vweird.f32 %v1401_v20  ;;  %v575_v35 = vsel %vm574_vm14, %v1399_v16, %v571_v27  ;;  %v1403_v44 = vpop.eup %1402  ;;  %vm1254_vm14 = vcmask 687104  }
 0x5a5   :  { %vm589_vm0 = vmor %vm587_vm15, %vm588_vm12  ;;  %v580_v39 = vsel %vm577_vm2, %v579_v36, %v575_v35  ;;  %v416_v45 = vmul.f32 %v1403_v44, %v411_v43  ;;  %vm421_vm3 = vweird.f32 %v1403_v44  ;;  %vm655_vm12 = vcmask 1047556   ;;  %v761_v35 = vld [vmem:[%s1952_s10 + $0x8] sm:$0xff]  ;;  %v1323_v36 = vld [vmem:[%s1952_s10 + $0x20] sm:$0xff] }
 0x5a6   :  { %v584_v23 = vsub.f32 1.0, %v583_v22  ;;  %v581_v40 = vmul.f32 %v1393_v2, %v580_v39  ;;  %vm422_vm6 = vmor %vm420_vm5, %vm421_vm3  ;;  %v680_v22 = vunpack.c.l.s4 %v1439_v21  ;;  %v1320_v39 = vld [vmem:[%s1952_s10 + $0x10] sm:$0xff]  ;;  %vm1282_vm15 = vcmask 82944  }
 0x5a7   :  { %v417_v47 = vsub.f32 1.0, %v416_v45  ;;  %v1326_v43 = vld [vmem:[%s1952_s10 + $0x30] sm:$0xff] }
 0x5a8   :  { %v585_v28 = vmul.f32 %v1401_v20, %v584_v23  ;;  %v1706_v29 = vunpack.c.0.s8 %v680_v22  ;;  %v1332_v45 = vld [vmem:[%s1952_s10 + $0x50] sm:$0xff] }
 0x5a9   :  { %v418_v49 = vmul.f32 %v1403_v44, %v417_v47 }
 0x5aa   :  { %v586_v32 = vadd.f32 %v1401_v20, %v585_v28 }
 0x5ab   :  { %v419_v53 = vadd.f32 %v1403_v44, %v418_v49 }
 0x5ac   :  { %v590_v34 = vsel %vm589_vm0, %v1401_v20, %v586_v32 }
 0x5ad   :  { %v595_v37 = vsel %vm592_vm1, %v594_v33, %v590_v34  ;;  %v423_v62 = vsel %vm422_vm6, %v1403_v44, %v419_v53  ;;  %v1333_v44 = vld [vmem:[%s1952_s10 + $0x58] sm:$0xff] }
 0x5ae   :  { %v596_v38 = vmul.f32 %v1395_v5, %v595_v37  ;;  %v428_v2 = vsel %vm425_vm11, %v427_v63, %v423_v62  ;;  %v760_v37 = vld [vmem:[%s1952_s10] sm:$0xff] }
 0x5af   :  { %v598_v41 = vpop.permute.xlu0 %597  ;;  %v429_v3 = vmul.f32 %v1651_v59, %v428_v2 }
 0x5b0   :  { %1315 = vmatpush.xpose.msk.msra.mxu3 %vm238_vm9, %v596_v38  ;;  %v1321_v38 = vld [vmem:[%s1952_s10 + $0x18] sm:$0xff] }
 0x5b1   :  { %809 = vmatpush.msra.mxu2 %v1321_v38  ;;  %v1362_v38 = vld [vmem:[%s1952_s10 + $0xf0] sm:$0xff] }
 0x5b3   :  { %810 = vmatpush.msra.mxu2 %v1320_v39 }
 0x5b4   :  { %1316 = vmatpush.xpose.msk.msra.mxu3 %vm238_vm9, %v581_v40  ;;  %v1330_v40 = vld [vmem:[%s1952_s10 + $0x48] sm:$0xff] }
 0x5b5   :  { %917 = vmatpush.msrb.mxu2 %v1333_v44 }
 0x5b7   :  { %1317 = vmatmul.msk.f32.vlgmr.msra.gmra.mxu3 %vm238_vm9, %v598_v41  ;;  %v1327_v41 = vld [vmem:[%s1952_s10 + $0x38] sm:$0xff]  ;;  %918 = vmatpush.msrb.mxu2 %v1332_v45 }
 0x5bf   :  { %1318 = vmatmul.msk.f32.gmra.mxu3 %vm238_vm9, %v600_v42  ;;  %v1329_v42 = vld [vmem:[%s1952_s10 + $0x40] sm:$0xff] }
 0x5da   :  { %v414_v46 = vpop.xlane.xlu0 %413 }
 0x5db   :  { %1404 = vrcp.f32 %v414_v46  ;;  %v441_v52 = vand.u32 2147483648, %v414_v46  ;;  %v439_v55 = vand.u32 2147483647, %v414_v46  ;;  %vm435_vm7 = vweird.f32 %v414_v46 }
 0x5dd   :  { %v442_v60 = vor.u32 1.1754944e-38, %v441_v52  ;;  %vm440_vm10 = vcmp.eq.f32.partialorder %v439_v55, 8.507059e+37 }
 0x5e1   :  { %v1405_v48 = vpop.eup %1404 }
 0x5e2   :  { %v431_v50 = vmul.f32 %v1405_v48, %v414_v46  ;;  %vm436_vm4 = vweird.f32 %v1405_v48 }
 0x5e3   :  { %vm437_vm8 = vmor %vm435_vm7, %vm436_vm4 }
 0x5e4   :  { %v432_v51 = vsub.f32 1.0, %v431_v50 }
 0x5e6   :  { %v433_v54 = vmul.f32 %v1405_v48, %v432_v51 }
 0x5e8   :  { %v434_v58 = vadd.f32 %v1405_v48, %v433_v54 }
 0x5ea   :  { %v438_v61 = vsel %vm437_vm8, %v1405_v48, %v434_v58  ;;  %v1336_v58 = vld [vmem:[%s1952_s10 + $0x68] sm:$0xff] }
 0x5eb   :  { %v443_v0 = vsel %vm440_vm10, %v442_v60, %v438_v61 }
 0x5ec   :  { %v444_v1 = vmul.f32 %v1665_v13, %v443_v0  ;;  %v1354_v13 = vld [vmem:[%s1952_s10 + $0xc8] sm:$0xff]  ;;  %v1335_v0 = vld [vmem:[%s1952_s10 + $0x60] sm:$0xff] }
 0x5ed   :  { %1106 = vmatpush.msrb.mxu0 %v1354_v13 }
 0x5ee   :  { %1309 = vmatpush.xpose.msk.msra.mxu1 %vm238_vm9, %v444_v1  ;;  %v1339_v1 = vld [vmem:[%s1952_s10 + $0x78] sm:$0xff] }
 0x5ef   :  { %1107 = vmatpush.msrb.mxu0 %v1353_v14  ;;  %v1342_v14 = vld [vmem:[%s1952_s10 + $0x88] sm:$0xff] }
 0x5f2   :  { %1310 = vmatpush.xpose.msk.msra.mxu1 %vm238_vm9, %v429_v3 }
 0x5f5   :  { %1311 = vmatmul.msk.f32.vlgmr.msra.gmra.mxu1 %vm238_vm9, %v1661_v9 }
 0x5f6   :  { %779 = vmatpush.msrb.mxu1 %v761_v35  ;;  %v1363_v35 = vld [vmem:[%s1952_s10 + $0xf8] sm:$0xff] }
 0x5f8   :  { %780 = vmatpush.msrb.mxu1 %v760_v37 }
 0x5fa   :  { %863 = vmatpush.msra.mxu1 %v1327_v41 }
 0x5fc   :  { %864 = vmatpush.msra.mxu1 %v1326_v43 }
 0x5fd   :  { %1312 = vmatmul.msk.f32.gmra.mxu1 %vm238_vm9, %v1657_v8 }
 0x63a   :  { %v628_v4 = vpop.f32.mrf.mxu3 }
 0x63b   :  { %636 = vrot.lane.b32.xlu1 %v628_v4, %s1437_s9 }
 0x642   :  { %v631_v5 = vpop.f32.mrf.mxu3 }
 0x643   :  { %638 = vrot.lane.b32.xlu2 %v631_v5, %s1437_s9  ;;  %v1338_v5 = vld [vmem:[%s1952_s10 + $0x70] sm:$0xff] }
 0x672   :  { %v474_v6 = vpop.f32.mrf.mxu1 }
 0x67a   :  { %v477_v7 = vpop.f32.mrf.mxu1 }
 0x69d   :  { %v639_v10 = vpop.permute.xlu2 %638 }
 0x69e   :  { %v643_v11 = vsel %vm238_vm9, %v477_v7, %v639_v10 }
 0x69f   :  { %v1683_v59 = vadd.f32 %v643_v11, %v1613_v24  ;;  %v1324_v24 = vld [vmem:[%s1952_s10 + $0x28] sm:$0xff] }
 0x6a0   :  { %836 = vmatpush.msrb.mxu3 %v1324_v24 }
 0x6a1   :  { %650 = vrot.lane.b32.xlu2 %v1683_v59, %s1436_s4  ;;  %v707_v15 = vrot.slane %v1683_v59, 4 }
 0x6a2   :  { %837 = vmatpush.msrb.mxu3 %v1323_v36 }
 0x6a3   :  { %v708_v17 = vsel %vm655_vm12, 0.0, %v707_v15 }
 0x6a4   :  { %890 = vmatpush.msra.mxu3 %v1330_v40 }
 0x6a6   :  { %891 = vmatpush.msra.mxu3 %v1329_v42  ;;  %v1359_v42 = vld [vmem:[%s1952_s10 + $0xe0] sm:$0xff] }
 0x6ad   :  { %v637_v9 = vpop.permute.xlu1 %636 }
 0x6ae   :  { %v642_v12 = vsel %vm238_vm9, %v474_v6, %v637_v9  ;;  %v1345_v6 = vld [vmem:[%s1952_s10 + $0x98] sm:$0xff] }
 0x6af   :  { %v644_v8 = vadd.f32 %v642_v12, %v1618_v26  ;;  %v1438_v26 = vmov 1983009808  }
 0x6b0   :  { %v658_v16 = vunpack.c.l.s4 %v1438_v26  ;;  %v1341_v26 = vld [vmem:[%s1952_s10 + $0x80] sm:$0xff] }
 0x6b1   :  { %648 = vrot.lane.b32.xlu1 %v644_v8, %s1436_s4  ;;  %v654_v47 = vrot.slane %v644_v8, 4 }
 0x6b2   :  { %v1701_v18 = vunpack.c.0.s8 %v658_v16  ;;  %v1351_v16 = vld [vmem:[%s1952_s10 + $0xb8] sm:$0xff] }
 0x6b3   :  { %v656_v52 = vsel %vm655_vm12, 0.0, %v654_v47  ;;  %v1208_v47 = vld [vmem:[%s1954_s12 + $0x68] sm:$0xff] }
 0x6b4   :  { %v716_v19 = vperm.slane %v708_v17, %v1701_v18  ;;  %v660_v46 = vperm.slane %v644_v8, %v1701_v18  ;;  %v664_v61 = vperm.slane %v656_v52, %v1701_v18  ;;  %v1344_v8 = vld [vmem:[%s1952_s10 + $0x90] sm:$0xff]  ;;  %v712_v24 = vperm.slane %v1683_v59, %v1701_v18 }
 0x6b5   :  { %v1350_v59 = vld [vmem:[%s1952_s10 + $0xb0] sm:$0xff] }
 0x6b6   :  { %v741_v27 = vrot.slane %v716_v19, 4  ;;  %v677_v49 = vrot.slane %v660_v46, 4  ;;  %v689_v7 = vrot.slane %v664_v61, 4  ;;  %v729_v21 = vrot.slane %v712_v24, 4 }
 0x6fb   :  { %v651_v20 = vpop.permute.xlu2 %650 }
 0x6fc   :  { %v717_v23 = vrot.slane %v651_v20, 4  ;;  %v722_v2 = vperm.slane %v651_v20, %v1701_v18 }
 0x6fe   :  { %v718_v25 = vsel %vm655_vm12, 0.0, %v717_v23  ;;  %v727_v9 = vrot.slane %v722_v2, 4 }
 0x6ff   :  { %v726_v28 = vperm.slane %v718_v25, %v1701_v18 }
 0x700   :  { %v728_v17 = vsel %vm655_vm12, %v727_v9, %v712_v24  ;;  %v1248_v9 = vld [vmem:[%s1956_s14 + $0x48] sm:$0xff] }
 0x701   :  { %v739_v30 = vrot.slane %v726_v28, 4  ;;  %v742_v31 = vsel %vm655_vm12, %v726_v28, %v741_v27  ;;  %v734_v22 = vperm.slane %v728_v17, %v1706_v29  ;;  %v1356_v27 = vld [vmem:[%s1952_s10 + $0xd0] sm:$0xff]  ;;  %v730_v28 = vsel %vm655_vm12, %v722_v2, %v729_v21 }
 0x702   :  { %v1710_v32 = vperm.slane %v742_v31, %v1706_v29  ;;  %v738_v36 = vperm.slane %v730_v28, %v1706_v29 }
 0x703   :  { %v740_v33 = vsel %vm655_vm12, %v739_v30, %v716_v19  ;;  %v1348_v30 = vld [vmem:[%s1952_s10 + $0xa8] sm:$0xff]  ;;  %v751_v31 = vrot.slane %v734_v22, 4 }
 0x704   :  { %v1714_v34 = vperm.slane %v740_v33, %v1706_v29  ;;  %v1347_v33 = vld [vmem:[%s1952_s10 + $0xa0] sm:$0xff]  ;;  %v753_v40 = vrot.slane %v738_v36, 4  ;;  %v757_v45 = vrot.slane %v1710_v32, 4 }
 0x705   :  { %v752_v39 = vsel %vm655_vm12, 0.0, %v751_v31 }
 0x706   :  { %1355 = vmatmul.msk.f32.vlgmr.msrb.gmra.mxu0 %vm238_vm9, %v1714_v34  ;;  %v755_v41 = vrot.slane %v1714_v34, 4  ;;  %v754_v43 = vsel %vm655_vm12, 0.0, %v753_v40  ;;  %v758_v34 = vsel %vm655_vm12, 0.0, %v757_v45 }
 0x708   :  { %v756_v44 = vsel %vm655_vm12, 0.0, %v755_v41  ;;  %v1240_v41 = vld [vmem:[%s1956_s14 + $0x8] sm:$0xff] }
 0x723   :  { %v649_v48 = vpop.permute.xlu1 %648 }
 0x724   :  { %v665_v50 = vrot.slane %v649_v48, 4  ;;  %v670_v51 = vperm.slane %v649_v48, %v1701_v18  ;;  %v1207_v48 = vld [vmem:[%s1954_s12 + $0x60] sm:$0xff] }
 0x726   :  { %v666_v53 = vsel %vm655_vm12, 0.0, %v665_v50  ;;  %v675_v54 = vrot.slane %v670_v51, 4  ;;  %v678_v55 = vsel %vm655_vm12, %v670_v51, %v677_v49  ;;  %v1206_v49 = vld [vmem:[%s1954_s12 + $0x58] sm:$0xff]  ;;  %v1204_v50 = vld [vmem:[%s1954_s12 + $0x48] sm:$0xff]  ;;  %v1203_v51 = vld [vmem:[%s1954_s12 + $0x40] sm:$0xff] }
 0x727   :  { %v674_v56 = vperm.slane %v666_v53, %v1701_v18  ;;  %v686_v57 = vperm.slane %v678_v55, %v1706_v29  ;;  %v1357_v18 = vld [vmem:[%s1952_s10 + $0xd8] sm:$0xff]  ;;  %v1381_v53 = vld [vmem:[%s1953_s11] ss:$0 sm:$0xff] }
 0x728   :  { %v676_v60 = vsel %vm655_vm12, %v675_v54, %v660_v46  ;;  %v1209_v46 = vld [vmem:[%s1954_s12 + $0x70] sm:$0xff]  ;;  %v1202_v55 = vld [vmem:[%s1954_s12 + $0x38] sm:$0xff] }
 0x729   :  { %v682_v62 = vperm.slane %v676_v60, %v1706_v29  ;;  %v687_v63 = vrot.slane %v674_v56, 4  ;;  %1325 = vmatmul.msk.f32.vlgmr.msrb.gmra.mxu3 %vm238_vm9, %v686_v57  ;;  %v701_v12 = vrot.slane %v686_v57, 4  ;;  %v690_v13 = vsel %vm655_vm12, %v674_v56, %v689_v7  ;;  %1219 = vmatpush.msra.mxu0 %v1209_v46  ;;  %v1201_v56 = vld [vmem:[%s1954_s12 + $0x30] sm:$0xff]  ;;  %v1200_v57 = vld [vmem:[%s1954_s12 + $0x28] sm:$0xff]  ;;  %v1199_v60 = vld [vmem:[%s1954_s12 + $0x20] sm:$0xff] }
 0x72a   :  { %944 = vmatpush.msrb.mxu3 %v1336_v58  ;;  %v698_v19 = vperm.slane %v690_v13, %v1706_v29  ;;  %v1195_v7 = vld [vmem:[%s1954_s12] sm:$0xff] }
 0x72b   :  { %v688_v3 = vsel %vm655_vm12, %v687_v63, %v664_v61  ;;  %1319 = vmatmul.msk.f32.vlgmr.msrb.gmra.mxu1 %vm238_vm9, %v682_v62  ;;  %v699_v4 = vrot.slane %v682_v62, 4  ;;  %v702_v20 = vsel %vm655_vm12, 0.0, %v701_v12  ;;  %1220 = vmatpush.msra.mxu0 %v1208_v47  ;;  %v1247_v13 = vld [vmem:[%s1956_s14 + $0x40] sm:$0xff] }
 0x72c   :  { %945 = vmatpush.msrb.mxu3 %v1335_v0  ;;  %971 = vmatpush.msrb.mxu1 %v1339_v1  ;;  %v694_v10 = vperm.slane %v688_v3, %v1706_v29  ;;  %v705_v25 = vrot.slane %v698_v19, 4  ;;  %v1360_v29 = vld [vmem:[%s1952_s10 + $0xe8] sm:$0xff]  ;;  %v1198_v1 = vld [vmem:[%s1954_s12 + $0x18] sm:$0xff]  ;;  %v1383_v46 = vld [vmem:[%s1957_s15] ss:$0 sm:$0xff] }
 0x72d   :  { %v700_v11 = vsel %vm655_vm12, 0.0, %v699_v4  ;;  %1221 = vmatpush.msra.mxu0 %v1207_v48  ;;  %v1197_v4 = vld [vmem:[%s1954_s12 + $0x10] sm:$0xff] }
 0x72e   :  { %1322 = vmatmul.msk.f32.vlgmr.msra.gmra.mxu2 %vm238_vm9, %v700_v11  ;;  %972 = vmatpush.msrb.mxu1 %v1338_v5  ;;  %v703_v15 = vrot.slane %v694_v10, 4  ;;  %v706_v37 = vsel %vm655_vm12, 0.0, %v705_v25  ;;  %v1196_v5 = vld [vmem:[%s1954_s12 + $0x8] sm:$0xff]  ;;  %v1249_v11 = vld [vmem:[%s1956_s14 + $0x50] sm:$0xf] }
 0x72f   :  { %1025 = vmatpush.msra.mxu2 %v1345_v6  ;;  %1222 = vmatpush.msra.mxu0 %v1206_v49 }
 0x730   :  { %v704_v23 = vsel %vm655_vm12, 0.0, %v703_v15  ;;  %v1245_v15 = vld [vmem:[%s1956_s14 + $0x30] sm:$0xff] }
 0x731   :  { %1331 = vmatmul.msk.f32.vlgmr.msra.gmra.mxu3 %vm238_vm9, %v694_v10  ;;  %1026 = vmatpush.msra.mxu2 %v1344_v8 }
 0x732   :  { %998 = vmatpush.msra.mxu3 %v1342_v14  ;;  %v1246_v14 = vld [vmem:[%s1956_s14 + $0x38] sm:$0xff] }
 0x733   :  { %1328 = vmatmul.msk.f32.vlgmr.msra.gmra.mxu1 %vm238_vm9, %v702_v20  ;;  %v1243_v20 = vld [vmem:[%s1956_s14 + $0x20] sm:$0xff] }
 0x734   :  { %999 = vmatpush.msra.mxu3 %v1341_v26  ;;  %1079 = vmatpush.msra.mxu1 %v1351_v16  ;;  %v1244_v16 = vld [vmem:[%s1956_s14 + $0x28] sm:$0xff] }
 0x736   :  { %1334 = vmatmul.msk.f32.vlgmr.msrb.gmra.mxu2 %vm238_vm9, %v704_v23  ;;  %1080 = vmatpush.msra.mxu1 %v1350_v59 }
 0x737   :  { %1133 = vmatpush.msrb.mxu2 %v1357_v18  ;;  %v1242_v18 = vld [vmem:[%s1956_s14 + $0x18] sm:$0xff] }
 0x739   :  { %1337 = vmatmul.msk.f32.vlgmr.msrb.gmra.mxu3 %vm238_vm9, %v698_v19  ;;  %1134 = vmatpush.msrb.mxu2 %v1356_v27 }
 0x73a   :  { %1052 = vmatpush.msrb.mxu3 %v1348_v30 }
 0x73b   :  { %1340 = vmatmul.msk.f32.vlgmr.msrb.gmra.mxu1 %vm238_vm9, %v706_v37 }
 0x73c   :  { %1053 = vmatpush.msrb.mxu3 %v1347_v33  ;;  %1187 = vmatpush.msrb.mxu1 %v1363_v35 }
 0x73e   :  { %1346 = vmatmul.msk.f32.vlgmr.msra.gmra.mxu2 %vm238_vm9, %v752_v39  ;;  %1188 = vmatpush.msrb.mxu1 %v1362_v38 }
 0x741   :  { %1343 = vmatmul.msk.f32.vlgmr.msra.gmra.mxu3 %vm238_vm9, %v734_v22 }
 0x742   :  { %1160 = vmatpush.msra.mxu3 %v1360_v29  ;;  %v1241_v29 = vld [vmem:[%s1956_s14 + $0x10] sm:$0xff] }
 0x743   :  { %1352 = vmatmul.msk.f32.vlgmr.msra.gmra.mxu1 %vm238_vm9, %v754_v43  ;;  %v1382_v43 = vld [vmem:[%s1955_s13] ss:$0 sm:$0xff] }
 0x744   :  { %1161 = vmatpush.msra.mxu3 %v1359_v42  ;;  %v1239_v42 = vld [vmem:[%s1956_s14] sm:$0xff]  ;;  %s1291_s14 = sshll.u32 %s1958_s16, 4  ;;  %s1292_s14 = int_to_ptr.hbm [resolvable:$true] %s1291_s14 }
 0x746   :  { %1358 = vmatmul.msk.f32.vlgmr.msrb.gmra.mxu2 %vm238_vm9, %v756_v44 }
 0x749   :  { %1349 = vmatmul.msk.f32.vlgmr.msrb.gmra.mxu3 %vm238_vm9, %v738_v36 }
 0x74b   :  { %1364 = vmatmul.msk.f32.vlgmr.msrb.gmra.mxu1 %vm238_vm9, %v758_v34 }
 0x751   :  { %1361 = vmatmul.msk.f32.vlgmr.msra.gmra.mxu3 %vm238_vm9, %v1710_v32  ;;  %v1205_v32 = vld [vmem:[%s1954_s12 + $0x50] sm:$0xff]  ;;  %vm1258_vm9 = vcmask 1043456  }
 0x752   :  { %1223 = vmatpush.msra.mxu0 %v1205_v32  ;;  %1366 = vmatpush.msk.msra.mxu2 %vm1258_vm9, %v1249_v11 }
 0x754   :  { %1224 = vmatpush.msra.mxu0 %v1204_v50  ;;  %1268 = vmatpush.msra.mxu2 %v1248_v9 }
 0x756   :  { %1225 = vmatpush.msra.mxu0 %v1203_v51  ;;  %1269 = vmatpush.msra.mxu2 %v1247_v13 }
 0x758   :  { %1226 = vmatpush.msra.mxu0 %v1202_v55  ;;  %1270 = vmatpush.msra.mxu2 %v1246_v14 }
 0x75a   :  { %1227 = vmatpush.msra.mxu0 %v1201_v56  ;;  %1271 = vmatpush.msra.mxu2 %v1245_v15 }
 0x75c   :  { %1228 = vmatpush.msra.mxu0 %v1200_v57  ;;  %1272 = vmatpush.msra.mxu2 %v1244_v16 }
 0x75e   :  { %1229 = vmatpush.msra.mxu0 %v1199_v60  ;;  %1273 = vmatpush.msra.mxu2 %v1243_v20 }
 0x760   :  { %1230 = vmatpush.msra.mxu0 %v1198_v1  ;;  %1274 = vmatpush.msra.mxu2 %v1242_v18 }
 0x762   :  { %1231 = vmatpush.msra.mxu0 %v1197_v4  ;;  %1275 = vmatpush.msra.mxu2 %v1241_v29 }
 0x764   :  { %1232 = vmatpush.msra.mxu0 %v1196_v5  ;;  %1276 = vmatpush.msra.mxu2 %v1240_v41 }
 0x766   :  { %1233 = vmatpush.msra.mxu0 %v1195_v7  ;;  %1277 = vmatpush.msra.mxu2 %v1239_v42 }
 0x783   :  { %v1109_v30 = vpop.f32.mrf.mxu0 }
 0x7a8   :  { %v782_v52 = vpop.f32.mrf.mxu1 }
 0x7a9   :  { %v788_v58 = vadd.f32 %v1381_v53, %v782_v52 }
 0x7ac   :  { %v839_v54 = vpop.f32.mrf.mxu3 }
 0x7b0   :  { %v866_v2 = vpop.f32.mrf.mxu1 }
 0x7b1   :  { %v812_v61 = vpop.f32.mrf.mxu2 }
 0x7b2   :  { %v815_v62 = vadd.f32 %v812_v61, %v788_v58 }
 0x7b4   :  { %v842_v63 = vadd.f32 %v839_v54, %v815_v62  ;;  %v893_v0 = vpop.f32.mrf.mxu3 }
 0x7b6   :  { %v869_v3 = vadd.f32 %v866_v2, %v842_v63 }
 0x7b8   :  { %v896_v6 = vadd.f32 %v893_v0, %v869_v3  ;;  %v974_v26 = vpop.f32.mrf.mxu1 }
 0x7b9   :  { %v920_v10 = vpop.f32.mrf.mxu2 }
 0x7ba   :  { %v923_v8 = vadd.f32 %v920_v10, %v896_v6 }
 0x7bc   :  { %v947_v12 = vpop.f32.mrf.mxu3 }
 0x7bd   :  { %v950_v24 = vadd.f32 %v947_v12, %v923_v8 }
 0x7bf   :  { %v977_v19 = vadd.f32 %v974_v26, %v950_v24 }
 0x7c0   :  { %v1082_v23 = vpop.f32.mrf.mxu1 }
 0x7c1   :  { %v1028_v21 = vpop.f32.mrf.mxu2 }
 0x7c4   :  { %v1001_v17 = vpop.f32.mrf.mxu3 }
 0x7c5   :  { %v1004_v59 = vadd.f32 %v1001_v17, %v977_v19 }
 0x7c7   :  { %v1031_v22 = vadd.f32 %v1028_v21, %v1004_v59 }
 0x7c8   :  { %v1190_v38 = vpop.f32.mrf.mxu1 }
 0x7c9   :  { %v1136_v33 = vpop.f32.mrf.mxu2 }
 0x7cc   :  { %v1055_v25 = vpop.f32.mrf.mxu3 }
 0x7cd   :  { %v1058_v27 = vadd.f32 %v1055_v25, %v1031_v22 }
 0x7cf   :  { %v1085_v28 = vadd.f32 %v1082_v23, %v1058_v27 }
 0x7d1   :  { %v1112_v31 = vadd.f32 %v1109_v30, %v1085_v28 }
 0x7d3   :  { %v1139_v35 = vadd.f32 %v1136_v33, %v1112_v31 }
 0x7d4   :  { %v1163_v36 = vpop.f32.mrf.mxu3 }
 0x7d5   :  { %v1166_v37 = vadd.f32 %v1163_v36, %v1139_v35 }
 0x7d7   :  { %v1193_v39 = vadd.f32 %v1190_v38, %v1166_v37 }
 0x7d9   :  { %v1194_v40 = vmax.f32 %v1193_v39, 0.0 }
 0x7db   :  { %1365 = vmatmul.msk.f32.vlgmr.msra.gmra.mxu0 %vm1214_vm13, %v1194_v40 }
 0x858   :  { %v1235_v44 = vpop.f32.mrf.mxu0 }
 0x859   :  { %v1236_v45 = vadd.f32 %v1382_v43, %v1235_v44 }
 0x85b   :  { %v1238_v34 = vmax.f32 %v1236_v45, 0.0 }
 0x85d   :  { %1367 = vmatmul.msk.f32.vlgmr.msra.gmra.mxu2 %vm1254_vm14, %v1238_v34 }
 0x8e0   :  { %v1279_v47 = vpop.f32.mrf.mxu2 }
 0x8e1   :  { %v1280_v48 = vadd.f32 %v1383_v46, %v1279_v47 }
 0x8e3   :  { %1283 = vst.msk [vmem:[#allocation2] sm:$0x3] %vm1282_vm15, %v1280_v48 }
 0x8e4   :  { %1294 = dma.vmem_to_hbm [thread:$0]  %s1290_s8, 32, %s1292_s14, [#allocation3]  }
 0x8e5   :  { %1430 = dma.done.wait [#allocation3], 32  }
 0x8e6   :  { %1431 = vsyncadd [#allocation3], 4294967264 }
 0x8e7   :  { %1299 = vsyncpa [#allocation3], 1 }

</bundles_post_ra>
